<compile_context>
chip_gen: v7x
topology: tpu7x:2x2x1
jax: 0.10.0
libtpu: 0.0.40
codegen_flags: <defaults>
</compile_context>

<pallas_src>
import jax
import jax.numpy as jnp
from jax.experimental import pallas as pl
from jax.experimental.pallas import tpu as pltpu


# ----------------------------------------------------------------------------
# Fused kernel: embedding output (already flattened seq-major) -> LSTM layers
# -> gather-at-lengths -> FC, all inside one kernel body.
# ----------------------------------------------------------------------------
def make_fused_kernel(T, B, H, layer_dim):
    def kernel(*refs):
        idx = 0
        len_ref = refs[idx]; idx += 1          # (B, 1) int32
        x_ref = refs[idx]; idx += 1            # (T*B, E) f32, row = t*B + b
        layer_refs = []
        for _ in range(layer_dim):
            layer_refs.append((refs[idx], refs[idx + 1], refs[idx + 2]))
            idx += 3
        fcw_ref = refs[idx]; idx += 1          # (H, O)
        fcb_ref = refs[idx]; idx += 1          # (1, O)
        out_ref = refs[idx]; idx += 1          # (B, O)
        gates_sc, seq_sc, h_sc, c_sc, final_sc = refs[idx:idx + 5]

        lengths = len_ref[...]                 # (B, 1) int32
        final_sc[...] = jnp.zeros_like(final_sc)

        for layer, (wih_ref, whh_ref, b_ref) in enumerate(layer_refs):
            is_last = (layer == layer_dim - 1)

            # ---- Hoisted input projection for ALL timesteps (one MXU matmul),
            #      bias folded in so the per-step path has no bias add. ----
            layer_in = x_ref[...] if layer == 0 else seq_sc[...]   # (T*B, in)
            gates_sc[...] = (jnp.dot(layer_in, wih_ref[...],
                                     preferred_element_type=jnp.float32)
                             + b_ref[...])                          # (T*B, 4H)

            h_sc[...] = jnp.zeros_like(h_sc)
            c_sc[...] = jnp.zeros_like(c_sc)

            # ---- Recurrence: only h @ w_hh per step. T is small & static, so
            #      statically unroll (full scheduler visibility). ----
            for t in range(T):
                gx_t = gates_sc[t * B:(t + 1) * B, :]               # (B, 4H)
                gates = gx_t + jnp.dot(h_sc[...], whh_ref[...],
                                       preferred_element_type=jnp.float32)

                i_g = jax.nn.sigmoid(gates[:, 0 * H:1 * H])
                f_g = jax.nn.sigmoid(gates[:, 1 * H:2 * H])
                g_g = jnp.tanh(gates[:, 2 * H:3 * H])
                o_g = jax.nn.sigmoid(gates[:, 3 * H:4 * H])

                c_new = f_g * c_sc[...] + i_g * g_g
                h_new = o_g * jnp.tanh(c_new)
                c_sc[...] = c_new
                h_sc[...] = h_new

                if not is_last:
                    # Feed next layer straight from VMEM (no HBM round trip).
                    seq_sc[t * B:(t + 1) * B, :] = h_new
                else:
                    # PyTorch: out.gather(1, lengths) -> hidden at step t == lengths[b]
                    final_sc[...] = jnp.where(lengths == t, h_new, final_sc[...])

        # ---- Fused final FC epilogue ----
        out_ref[...] = (jnp.dot(final_sc[...], fcw_ref[...],
                                preferred_element_type=jnp.float32)
                        + fcb_ref[...])

    return kernel


def fused_lstm_fc(x_flat, lengths_2d, layer_params, fc_w, fc_b):
    """x_flat: (T*B, E) seq-major flattened, lengths_2d: (B, 1) int32."""
    TB, E = x_flat.shape
    B = lengths_2d.shape[0]
    T = TB // B
    H = layer_params[0][1].shape[0]
    O = fc_w.shape[1]
    layer_dim = len(layer_params)

    kernel = make_fused_kernel(T, B, H, layer_dim)

    inputs = [lengths_2d, x_flat]
    in_specs = [
        pl.BlockSpec((B, 1), lambda i: (0, 0)),
        pl.BlockSpec((TB, E), lambda i: (0, 0)),
    ]
    for w_ih, w_hh, b in layer_params:
        inputs += [w_ih, w_hh, b]
        in_specs += [
            pl.BlockSpec(w_ih.shape, lambda i: (0, 0)),
            pl.BlockSpec(w_hh.shape, lambda i: (0, 0)),
            pl.BlockSpec(b.shape, lambda i: (0, 0)),
        ]
    inputs += [fc_w, fc_b]
    in_specs += [
        pl.BlockSpec(fc_w.shape, lambda i: (0, 0)),
        pl.BlockSpec(fc_b.shape, lambda i: (0, 0)),
    ]

    return pl.pallas_call(
        kernel,
        out_shape=jax.ShapeDtypeStruct((B, O), jnp.float32),
        grid_spec=pltpu.PrefetchScalarGridSpec(
            num_scalar_prefetch=0,
            grid=(1,),
            in_specs=in_specs,
            out_specs=pl.BlockSpec((B, O), lambda i: (0, 0)),
            scratch_shapes=[
                pltpu.VMEM((TB, 4 * H), jnp.float32),   # precomputed input gates
                pltpu.VMEM((TB, H), jnp.float32),       # inter-layer h sequence
                pltpu.VMEM((B, H), jnp.float32),        # h state
                pltpu.VMEM((B, H), jnp.float32),        # c state
                pltpu.VMEM((B, H), jnp.float32),        # gathered final hidden
            ],
        ),
        compiler_params=pltpu.CompilerParams(
            dimension_semantics=("arbitrary",)),
    )(*inputs)


# ----------------------------------------------------------------------------
# Full model forward (embedding token gather is XLA glue; everything else is
# one fused Pallas kernel).
# ----------------------------------------------------------------------------
def lstm_model_forward(params, x_tokens, lengths):
    B, T = x_tokens.shape
    # TODO(synk): nn.Embedding lookup (data-dependent gather) stays in XLA.
    emb = jnp.take(params["embedding"], x_tokens, axis=0)        # (B, T, E)
    seq = jnp.transpose(emb, (1, 0, 2))                          # (T, B, E)
    x_flat = seq.reshape(T * B, -1)                              # row = t*B + b
    lengths_2d = lengths.reshape(B, 1).astype(jnp.int32)

    layer_params = [(l["w_ih"], l["w_hh"], l["b"]) for l in params["lstm"]]
    return fused_lstm_fc(x_flat, lengths_2d, layer_params,
                         params["fc_w"], params["fc_b"])         # (B, O)


def init_params(key, vocab, dim_embedding, hidden_dim, layer_dim, output_dim):
    keys = jax.random.split(key, 2 + 4 * layer_dim + 2)
    k = iter(keys)
    scale = 0.1

    embedding = scale * jax.random.normal(next(k), (vocab, dim_embedding),
                                          jnp.float32)
    embedding = embedding.at[0].set(0.0)   # padding_idx=0

    lstm_layers = []
    in_dim = dim_embedding
    for _ in range(layer_dim):
        w_ih = scale * jax.random.normal(next(k), (in_dim, 4 * hidden_dim),
                                         jnp.float32)
        w_hh = scale * jax.random.normal(next(k), (hidden_dim, 4 * hidden_dim),
                                         jnp.float32)
        b_ih = scale * jax.random.normal(next(k), (1, 4 * hidden_dim), jnp.float32)
        b_hh = scale * jax.random.normal(next(k), (1, 4 * hidden_dim), jnp.float32)
        lstm_layers.append({"w_ih": w_ih, "w_hh": w_hh, "b": b_ih + b_hh})
        in_dim = hidden_dim

    fc_w = scale * jax.random.normal(next(k), (hidden_dim, output_dim), jnp.float32)
    fc_b = scale * jax.random.normal(next(k), (1, output_dim), jnp.float32)

    return {"embedding": embedding, "lstm": lstm_layers,
            "fc_w": fc_w, "fc_b": fc_b}


if __name__ == "__main__":
    # Small, hardware-friendly shapes
    VOCAB = 50
    DIM_EMBEDDING = 128
    HIDDEN_DIM = 128
    LAYER_DIM = 2
    OUTPUT_DIM = 16
    B, T = 8, 8

    key = jax.random.PRNGKey(0)
    k_params, k_tok, k_len = jax.random.split(key, 3)

    params = init_params(k_params, VOCAB, DIM_EMBEDDING, HIDDEN_DIM,
                         LAYER_DIM, OUTPUT_DIM)

    x_tokens = jax.random.randint(k_tok, (B, T), 0, VOCAB, dtype=jnp.int32)
    lengths = jax.random.randint(k_len, (B,), 0, T, dtype=jnp.int32)

    out = jax.jit(lstm_model_forward)(params, x_tokens, lengths)
    out = jax.block_until_ready(out)
    assert out.shape == (B, OUTPUT_DIM)
    print("KERNEL_OK")
</pallas_src>

<mosaic_0001>
module attributes {stable_mosaic.version = 11 : i64} {
  func.func @kernel(%arg0: i32, %arg1: memref<8x1xi32, #tpu.memory_space<vmem>>, %arg2: memref<64x128xf32, #tpu.memory_space<vmem>>, %arg3: memref<128x512xf32, #tpu.memory_space<vmem>>, %arg4: memref<128x512xf32, #tpu.memory_space<vmem>>, %arg5: memref<1x512xf32, #tpu.memory_space<vmem>>, %arg6: memref<128x512xf32, #tpu.memory_space<vmem>>, %arg7: memref<128x512xf32, #tpu.memory_space<vmem>>, %arg8: memref<1x512xf32, #tpu.memory_space<vmem>>, %arg9: memref<128x16xf32, #tpu.memory_space<vmem>>, %arg10: memref<1x16xf32, #tpu.memory_space<vmem>>, %arg11: memref<8x16xf32, #tpu.memory_space<vmem>>, %arg12: memref<64x512xf32, #tpu.memory_space<vmem>>, %arg13: memref<64x128xf32, #tpu.memory_space<vmem>>, %arg14: memref<8x128xf32, #tpu.memory_space<vmem>>, %arg15: memref<8x128xf32, #tpu.memory_space<vmem>>, %arg16: memref<8x128xf32, #tpu.memory_space<vmem>>) attributes {dimension_semantics = [#tpu.dimension_semantics<arbitrary>], iteration_bounds = array<i64: 1>, scalar_prefetch = 0 : i64, scratch_operands = 5 : i64, tpu.core_type = #tpu.core_type<tc>, window_params = [{pipeline_mode = #tpu.pipeline_mode<synchronous>, transform_indices = @transform_0, window_bounds = array<i64: 8, 1>}, {pipeline_mode = #tpu.pipeline_mode<synchronous>, transform_indices = @transform_1, window_bounds = array<i64: 64, 128>}, {pipeline_mode = #tpu.pipeline_mode<synchronous>, transform_indices = @transform_2, window_bounds = array<i64: 128, 512>}, {pipeline_mode = #tpu.pipeline_mode<synchronous>, transform_indices = @transform_3, window_bounds = array<i64: 128, 512>}, {pipeline_mode = #tpu.pipeline_mode<synchronous>, transform_indices = @transform_4, window_bounds = array<i64: 1, 512>}, {pipeline_mode = #tpu.pipeline_mode<synchronous>, transform_indices = @transform_5, window_bounds = array<i64: 128, 512>}, {pipeline_mode = #tpu.pipeline_mode<synchronous>, transform_indices = @transform_6, window_bounds = array<i64: 128, 512>}, {pipeline_mode = #tpu.pipeline_mode<synchronous>, transform_indices = @transform_7, window_bounds = array<i64: 1, 512>}, {pipeline_mode = #tpu.pipeline_mode<synchronous>, transform_indices = @transform_8, window_bounds = array<i64: 128, 16>}, {pipeline_mode = #tpu.pipeline_mode<synchronous>, transform_indices = @transform_9, window_bounds = array<i64: 1, 16>}, {pipeline_mode = #tpu.pipeline_mode<synchronous>, transform_indices = @transform_10, window_bounds = array<i64: 8, 16>}]} {
    %c0 = arith.constant 0 : index
    %c0_0 = arith.constant 0 : index
    %0 = vector.load %arg1[%c0, %c0_0] : memref<8x1xi32, #tpu.memory_space<vmem>>, vector<8x1xi32>
    %cst = arith.constant 0.000000e+00 : f32
    %1 = vector.broadcast %cst : f32 to vector<8x128xf32>
    %c0_1 = arith.constant 0 : index
    %c0_2 = arith.constant 0 : index
    %2 = vector.load %arg16[%c0_1, %c0_2] : memref<8x128xf32, #tpu.memory_space<vmem>>, vector<8x128xf32>
    tpu.vector_store %arg16[%c0_1, %c0_2], %1 {strides = array<i32>} : memref<8x128xf32, #tpu.memory_space<vmem>>, vector<8x128xf32>,
    %c0_3 = arith.constant 0 : index
    %c0_4 = arith.constant 0 : index
    %3 = vector.load %arg2[%c0_3, %c0_4] : memref<64x128xf32, #tpu.memory_space<vmem>>, vector<64x128xf32>
    %c0_5 = arith.constant 0 : index
    %c0_6 = arith.constant 0 : index
    %4 = vector.load %arg3[%c0_5, %c0_6] : memref<128x512xf32, #tpu.memory_space<vmem>>, vector<128x512xf32>
    %cst_7 = arith.constant dense<0.000000e+00> : vector<64x512xf32>
    %5 = tpu.matmul %3, %4, %cst_7 {dimension_numbers = #tpu.dot_dimension_numbers<[1], [0], [0], [1], [0, 0, 1, 1], [], []>} : vector<64x128xf32>, vector<128x512xf32>, vector<64x512xf32> -> vector<64x512xf32>
    %c0_8 = arith.constant 0 : index
    %c0_9 = arith.constant 0 : index
    %6 = vector.load %arg5[%c0_8, %c0_9] : memref<1x512xf32, #tpu.memory_space<vmem>>, vector<1x512xf32>
    %7 = vector.broadcast %6 : vector<1x512xf32> to vector<64x512xf32>
    %8 = arith.addf %5, %7 : vector<64x512xf32>
    %c0_10 = arith.constant 0 : index
    %c0_11 = arith.constant 0 : index
    %9 = vector.load %arg12[%c0_10, %c0_11] : memref<64x512xf32, #tpu.memory_space<vmem>>, vector<64x512xf32>
    tpu.vector_store %arg12[%c0_10, %c0_11], %8 {strides = array<i32>} : memref<64x512xf32, #tpu.memory_space<vmem>>, vector<64x512xf32>,
    %cst_12 = arith.constant 0.000000e+00 : f32
    %10 = vector.broadcast %cst_12 : f32 to vector<8x128xf32>
    %c0_13 = arith.constant 0 : index
    %c0_14 = arith.constant 0 : index
    %11 = vector.load %arg14[%c0_13, %c0_14] : memref<8x128xf32, #tpu.memory_space<vmem>>, vector<8x128xf32>
    tpu.vector_store %arg14[%c0_13, %c0_14], %10 {strides = array<i32>} : memref<8x128xf32, #tpu.memory_space<vmem>>, vector<8x128xf32>,
    %cst_15 = arith.constant 0.000000e+00 : f32
    %12 = vector.broadcast %cst_15 : f32 to vector<8x128xf32>
    %c0_16 = arith.constant 0 : index
    %c0_17 = arith.constant 0 : index
    %13 = vector.load %arg15[%c0_16, %c0_17] : memref<8x128xf32, #tpu.memory_space<vmem>>, vector<8x128xf32>
    tpu.vector_store %arg15[%c0_16, %c0_17], %12 {strides = array<i32>} : memref<8x128xf32, #tpu.memory_space<vmem>>, vector<8x128xf32>,
    %c0_18 = arith.constant 0 : index
    %c0_19 = arith.constant 0 : index
    %14 = vector.load %arg12[%c0_18, %c0_19] : memref<64x512xf32, #tpu.memory_space<vmem>>, vector<8x512xf32>
    %c0_20 = arith.constant 0 : index
    %c0_21 = arith.constant 0 : index
    %15 = vector.load %arg14[%c0_20, %c0_21] : memref<8x128xf32, #tpu.memory_space<vmem>>, vector<8x128xf32>
    %c0_22 = arith.constant 0 : index
    %c0_23 = arith.constant 0 : index
    %16 = vector.load %arg4[%c0_22, %c0_23] : memref<128x512xf32, #tpu.memory_space<vmem>>, vector<128x512xf32>
    %cst_24 = arith.constant dense<0.000000e+00> : vector<8x512xf32>
    %17 = tpu.matmul %15, %16, %cst_24 {dimension_numbers = #tpu.dot_dimension_numbers<[1], [0], [0], [1], [0, 0, 1, 1], [], []>} : vector<8x128xf32>, vector<128x512xf32>, vector<8x512xf32> -> vector<8x512xf32>
    %18 = arith.addf %14, %17 : vector<8x512xf32>
    %19 = vector.extract_strided_slice %18 {offsets = [0, 0], sizes = [8, 128], strides = [1, 1]} : vector<8x512xf32> to vector<8x128xf32>
    %20 = arith.negf %19 : vector<8x128xf32>
    %21 = math.exp %20 : vector<8x128xf32>
    %cst_25 = arith.constant 1.000000e+00 : f32
    %22 = vector.broadcast %cst_25 : f32 to vector<8x128xf32>
    %23 = arith.addf %22, %21 : vector<8x128xf32>
    %24 = arith.divf %22, %23 : vector<8x128xf32>
    %25 = vector.extract_strided_slice %18 {offsets = [0, 128], sizes = [8, 128], strides = [1, 1]} : vector<8x512xf32> to vector<8x128xf32>
    %26 = arith.negf %25 : vector<8x128xf32>
    %27 = math.exp %26 : vector<8x128xf32>
    %cst_26 = arith.constant 1.000000e+00 : f32
    %28 = vector.broadcast %cst_26 : f32 to vector<8x128xf32>
    %29 = arith.addf %28, %27 : vector<8x128xf32>
    %30 = arith.divf %28, %29 : vector<8x128xf32>
    %31 = vector.extract_strided_slice %18 {offsets = [0, 256], sizes = [8, 128], strides = [1, 1]} : vector<8x512xf32> to vector<8x128xf32>
    %32 = math.tanh %31 : vector<8x128xf32>
    %33 = vector.extract_strided_slice %18 {offsets = [0, 384], sizes = [8, 128], strides = [1, 1]} : vector<8x512xf32> to vector<8x128xf32>
    %34 = arith.negf %33 : vector<8x128xf32>
    %35 = math.exp %34 : vector<8x128xf32>
    %cst_27 = arith.constant 1.000000e+00 : f32
    %36 = vector.broadcast %cst_27 : f32 to vector<8x128xf32>
    %37 = arith.addf %36, %35 : vector<8x128xf32>
    %38 = arith.divf %36, %37 : vector<8x128xf32>
    %c0_28 = arith.constant 0 : index
    %c0_29 = arith.constant 0 : index
    %39 = vector.load %arg15[%c0_28, %c0_29] : memref<8x128xf32, #tpu.memory_space<vmem>>, vector<8x128xf32>
    %40 = arith.mulf %30, %39 : vector<8x128xf32>
    %41 = arith.mulf %24, %32 : vector<8x128xf32>
    %42 = arith.addf %40, %41 : vector<8x128xf32>
    %43 = math.tanh %42 : vector<8x128xf32>
    %44 = arith.mulf %38, %43 : vector<8x128xf32>
    %c0_30 = arith.constant 0 : index
    %c0_31 = arith.constant 0 : index
    %45 = vector.load %arg15[%c0_30, %c0_31] : memref<8x128xf32, #tpu.memory_space<vmem>>, vector<8x128xf32>
    tpu.vector_store %arg15[%c0_30, %c0_31], %42 {strides = array<i32>} : memref<8x128xf32, #tpu.memory_space<vmem>>, vector<8x128xf32>,
    %c0_32 = arith.constant 0 : index
    %c0_33 = arith.constant 0 : index
    %46 = vector.load %arg14[%c0_32, %c0_33] : memref<8x128xf32, #tpu.memory_space<vmem>>, vector<8x128xf32>
    tpu.vector_store %arg14[%c0_32, %c0_33], %44 {strides = array<i32>} : memref<8x128xf32, #tpu.memory_space<vmem>>, vector<8x128xf32>,
    %c0_34 = arith.constant 0 : index
    %c0_35 = arith.constant 0 : index
    %47 = vector.load %arg13[%c0_34, %c0_35] : memref<64x128xf32, #tpu.memory_space<vmem>>, vector<8x128xf32>
    tpu.vector_store %arg13[%c0_34, %c0_35], %44 {strides = array<i32>} : memref<64x128xf32, #tpu.memory_space<vmem>>, vector<8x128xf32>,
    %c8 = arith.constant 8 : index
    %c0_36 = arith.constant 0 : index
    %48 = vector.load %arg12[%c8, %c0_36] : memref<64x512xf32, #tpu.memory_space<vmem>>, vector<8x512xf32>
    %c0_37 = arith.constant 0 : index
    %c0_38 = arith.constant 0 : index
    %49 = vector.load %arg14[%c0_37, %c0_38] : memref<8x128xf32, #tpu.memory_space<vmem>>, vector<8x128xf32>
    %c0_39 = arith.constant 0 : index
    %c0_40 = arith.constant 0 : index
    %50 = vector.load %arg4[%c0_39, %c0_40] : memref<128x512xf32, #tpu.memory_space<vmem>>, vector<128x512xf32>
    %cst_41 = arith.constant dense<0.000000e+00> : vector<8x512xf32>
    %51 = tpu.matmul %49, %50, %cst_41 {dimension_numbers = #tpu.dot_dimension_numbers<[1], [0], [0], [1], [0, 0, 1, 1], [], []>} : vector<8x128xf32>, vector<128x512xf32>, vector<8x512xf32> -> vector<8x512xf32>
    %52 = arith.addf %48, %51 : vector<8x512xf32>
    %53 = vector.extract_strided_slice %52 {offsets = [0, 0], sizes = [8, 128], strides = [1, 1]} : vector<8x512xf32> to vector<8x128xf32>
    %54 = arith.negf %53 : vector<8x128xf32>
    %55 = math.exp %54 : vector<8x128xf32>
    %cst_42 = arith.constant 1.000000e+00 : f32
    %56 = vector.broadcast %cst_42 : f32 to vector<8x128xf32>
    %57 = arith.addf %56, %55 : vector<8x128xf32>
    %58 = arith.divf %56, %57 : vector<8x128xf32>
    %59 = vector.extract_strided_slice %52 {offsets = [0, 128], sizes = [8, 128], strides = [1, 1]} : vector<8x512xf32> to vector<8x128xf32>
    %60 = arith.negf %59 : vector<8x128xf32>
    %61 = math.exp %60 : vector<8x128xf32>
    %cst_43 = arith.constant 1.000000e+00 : f32
    %62 = vector.broadcast %cst_43 : f32 to vector<8x128xf32>
    %63 = arith.addf %62, %61 : vector<8x128xf32>
    %64 = arith.divf %62, %63 : vector<8x128xf32>
    %65 = vector.extract_strided_slice %52 {offsets = [0, 256], sizes = [8, 128], strides = [1, 1]} : vector<8x512xf32> to vector<8x128xf32>
    %66 = math.tanh %65 : vector<8x128xf32>
    %67 = vector.extract_strided_slice %52 {offsets = [0, 384], sizes = [8, 128], strides = [1, 1]} : vector<8x512xf32> to vector<8x128xf32>
    %68 = arith.negf %67 : vector<8x128xf32>
    %69 = math.exp %68 : vector<8x128xf32>
    %cst_44 = arith.constant 1.000000e+00 : f32
    %70 = vector.broadcast %cst_44 : f32 to vector<8x128xf32>
    %71 = arith.addf %70, %69 : vector<8x128xf32>
    %72 = arith.divf %70, %71 : vector<8x128xf32>
    %c0_45 = arith.constant 0 : index
    %c0_46 = arith.constant 0 : index
    %73 = vector.load %arg15[%c0_45, %c0_46] : memref<8x128xf32, #tpu.memory_space<vmem>>, vector<8x128xf32>
    %74 = arith.mulf %64, %73 : vector<8x128xf32>
    %75 = arith.mulf %58, %66 : vector<8x128xf32>
    %76 = arith.addf %74, %75 : vector<8x128xf32>
    %77 = math.tanh %76 : vector<8x128xf32>
    %78 = arith.mulf %72, %77 : vector<8x128xf32>
    %c0_47 = arith.constant 0 : index
    %c0_48 = arith.constant 0 : index
    %79 = vector.load %arg15[%c0_47, %c0_48] : memref<8x128xf32, #tpu.memory_space<vmem>>, vector<8x128xf32>
    tpu.vector_store %arg15[%c0_47, %c0_48], %76 {strides = array<i32>} : memref<8x128xf32, #tpu.memory_space<vmem>>, vector<8x128xf32>,
    %c0_49 = arith.constant 0 : index
    %c0_50 = arith.constant 0 : index
    %80 = vector.load %arg14[%c0_49, %c0_50] : memref<8x128xf32, #tpu.memory_space<vmem>>, vector<8x128xf32>
    tpu.vector_store %arg14[%c0_49, %c0_50], %78 {strides = array<i32>} : memref<8x128xf32, #tpu.memory_space<vmem>>, vector<8x128xf32>,
    %c8_51 = arith.constant 8 : index
    %c0_52 = arith.constant 0 : index
    %81 = vector.load %arg13[%c8_51, %c0_52] : memref<64x128xf32, #tpu.memory_space<vmem>>, vector<8x128xf32>
    tpu.vector_store %arg13[%c8_51, %c0_52], %78 {strides = array<i32>} : memref<64x128xf32, #tpu.memory_space<vmem>>, vector<8x128xf32>,
    %c16 = arith.constant 16 : index
    %c0_53 = arith.constant 0 : index
    %82 = vector.load %arg12[%c16, %c0_53] : memref<64x512xf32, #tpu.memory_space<vmem>>, vector<8x512xf32>
    %c0_54 = arith.constant 0 : index
    %c0_55 = arith.constant 0 : index
    %83 = vector.load %arg14[%c0_54, %c0_55] : memref<8x128xf32, #tpu.memory_space<vmem>>, vector<8x128xf32>
    %c0_56 = arith.constant 0 : index
    %c0_57 = arith.constant 0 : index
    %84 = vector.load %arg4[%c0_56, %c0_57] : memref<128x512xf32, #tpu.memory_space<vmem>>, vector<128x512xf32>
    %cst_58 = arith.constant dense<0.000000e+00> : vector<8x512xf32>
    %85 = tpu.matmul %83, %84, %cst_58 {dimension_numbers = #tpu.dot_dimension_numbers<[1], [0], [0], [1], [0, 0, 1, 1], [], []>} : vector<8x128xf32>, vector<128x512xf32>, vector<8x512xf32> -> vector<8x512xf32>
    %86 = arith.addf %82, %85 : vector<8x512xf32>
    %87 = vector.extract_strided_slice %86 {offsets = [0, 0], sizes = [8, 128], strides = [1, 1]} : vector<8x512xf32> to vector<8x128xf32>
    %88 = arith.negf %87 : vector<8x128xf32>
    %89 = math.exp %88 : vector<8x128xf32>
    %cst_59 = arith.constant 1.000000e+00 : f32
    %90 = vector.broadcast %cst_59 : f32 to vector<8x128xf32>
    %91 = arith.addf %90, %89 : vector<8x128xf32>
    %92 = arith.divf %90, %91 : vector<8x128xf32>
    %93 = vector.extract_strided_slice %86 {offsets = [0, 128], sizes = [8, 128], strides = [1, 1]} : vector<8x512xf32> to vector<8x128xf32>
    %94 = arith.negf %93 : vector<8x128xf32>
    %95 = math.exp %94 : vector<8x128xf32>
    %cst_60 = arith.constant 1.000000e+00 : f32
    %96 = vector.broadcast %cst_60 : f32 to vector<8x128xf32>
    %97 = arith.addf %96, %95 : vector<8x128xf32>
    %98 = arith.divf %96, %97 : vector<8x128xf32>
    %99 = vector.extract_strided_slice %86 {offsets = [0, 256], sizes = [8, 128], strides = [1, 1]} : vector<8x512xf32> to vector<8x128xf32>
    %100 = math.tanh %99 : vector<8x128xf32>
    %101 = vector.extract_strided_slice %86 {offsets = [0, 384], sizes = [8, 128], strides = [1, 1]} : vector<8x512xf32> to vector<8x128xf32>
    %102 = arith.negf %101 : vector<8x128xf32>
    %103 = math.exp %102 : vector<8x128xf32>
    %cst_61 = arith.constant 1.000000e+00 : f32
    %104 = vector.broadcast %cst_61 : f32 to vector<8x128xf32>
    %105 = arith.addf %104, %103 : vector<8x128xf32>
    %106 = arith.divf %104, %105 : vector<8x128xf32>
    %c0_62 = arith.constant 0 : index
    %c0_63 = arith.constant 0 : index
    %107 = vector.load %arg15[%c0_62, %c0_63] : memref<8x128xf32, #tpu.memory_space<vmem>>, vector<8x128xf32>
    %108 = arith.mulf %98, %107 : vector<8x128xf32>
    %109 = arith.mulf %92, %100 : vector<8x128xf32>
    %110 = arith.addf %108, %109 : vector<8x128xf32>
    %111 = math.tanh %110 : vector<8x128xf32>
    %112 = arith.mulf %106, %111 : vector<8x128xf32>
    %c0_64 = arith.constant 0 : index
    %c0_65 = arith.constant 0 : index
    %113 = vector.load %arg15[%c0_64, %c0_65] : memref<8x128xf32, #tpu.memory_space<vmem>>, vector<8x128xf32>
    tpu.vector_store %arg15[%c0_64, %c0_65], %110 {strides = array<i32>} : memref<8x128xf32, #tpu.memory_space<vmem>>, vector<8x128xf32>,
    %c0_66 = arith.constant 0 : index
    %c0_67 = arith.constant 0 : index
    %114 = vector.load %arg14[%c0_66, %c0_67] : memref<8x128xf32, #tpu.memory_space<vmem>>, vector<8x128xf32>
    tpu.vector_store %arg14[%c0_66, %c0_67], %112 {strides = array<i32>} : memref<8x128xf32, #tpu.memory_space<vmem>>, vector<8x128xf32>,
    %c16_68 = arith.constant 16 : index
    %c0_69 = arith.constant 0 : index
    %115 = vector.load %arg13[%c16_68, %c0_69] : memref<64x128xf32, #tpu.memory_space<vmem>>, vector<8x128xf32>
    tpu.vector_store %arg13[%c16_68, %c0_69], %112 {strides = array<i32>} : memref<64x128xf32, #tpu.memory_space<vmem>>, vector<8x128xf32>,
    %c24 = arith.constant 24 : index
    %c0_70 = arith.constant 0 : index
    %116 = vector.load %arg12[%c24, %c0_70] : memref<64x512xf32, #tpu.memory_space<vmem>>, vector<8x512xf32>
    %c0_71 = arith.constant 0 : index
    %c0_72 = arith.constant 0 : index
    %117 = vector.load %arg14[%c0_71, %c0_72] : memref<8x128xf32, #tpu.memory_space<vmem>>, vector<8x128xf32>
    %c0_73 = arith.constant 0 : index
    %c0_74 = arith.constant 0 : index
    %118 = vector.load %arg4[%c0_73, %c0_74] : memref<128x512xf32, #tpu.memory_space<vmem>>, vector<128x512xf32>
    %cst_75 = arith.constant dense<0.000000e+00> : vector<8x512xf32>
    %119 = tpu.matmul %117, %118, %cst_75 {dimension_numbers = #tpu.dot_dimension_numbers<[1], [0], [0], [1], [0, 0, 1, 1], [], []>} : vector<8x128xf32>, vector<128x512xf32>, vector<8x512xf32> -> vector<8x512xf32>
    %120 = arith.addf %116, %119 : vector<8x512xf32>
    %121 = vector.extract_strided_slice %120 {offsets = [0, 0], sizes = [8, 128], strides = [1, 1]} : vector<8x512xf32> to vector<8x128xf32>
    %122 = arith.negf %121 : vector<8x128xf32>
    %123 = math.exp %122 : vector<8x128xf32>
    %cst_76 = arith.constant 1.000000e+00 : f32
    %124 = vector.broadcast %cst_76 : f32 to vector<8x128xf32>
    %125 = arith.addf %124, %123 : vector<8x128xf32>
    %126 = arith.divf %124, %125 : vector<8x128xf32>
    %127 = vector.extract_strided_slice %120 {offsets = [0, 128], sizes = [8, 128], strides = [1, 1]} : vector<8x512xf32> to vector<8x128xf32>
    %128 = arith.negf %127 : vector<8x128xf32>
    %129 = math.exp %128 : vector<8x128xf32>
    %cst_77 = arith.constant 1.000000e+00 : f32
    %130 = vector.broadcast %cst_77 : f32 to vector<8x128xf32>
    %131 = arith.addf %130, %129 : vector<8x128xf32>
    %132 = arith.divf %130, %131 : vector<8x128xf32>
    %133 = vector.extract_strided_slice %120 {offsets = [0, 256], sizes = [8, 128], strides = [1, 1]} : vector<8x512xf32> to vector<8x128xf32>
    %134 = math.tanh %133 : vector<8x128xf32>
    %135 = vector.extract_strided_slice %120 {offsets = [0, 384], sizes = [8, 128], strides = [1, 1]} : vector<8x512xf32> to vector<8x128xf32>
    %136 = arith.negf %135 : vector<8x128xf32>
    %137 = math.exp %136 : vector<8x128xf32>
    %cst_78 = arith.constant 1.000000e+00 : f32
    %138 = vector.broadcast %cst_78 : f32 to vector<8x128xf32>
    %139 = arith.addf %138, %137 : vector<8x128xf32>
    %140 = arith.divf %138, %139 : vector<8x128xf32>
    %c0_79 = arith.constant 0 : index
    %c0_80 = arith.constant 0 : index
    %141 = vector.load %arg15[%c0_79, %c0_80] : memref<8x128xf32, #tpu.memory_space<vmem>>, vector<8x128xf32>
    %142 = arith.mulf %132, %141 : vector<8x128xf32>
    %143 = arith.mulf %126, %134 : vector<8x128xf32>
    %144 = arith.addf %142, %143 : vector<8x128xf32>
    %145 = math.tanh %144 : vector<8x128xf32>
    %146 = arith.mulf %140, %145 : vector<8x128xf32>
    %c0_81 = arith.constant 0 : index
    %c0_82 = arith.constant 0 : index
    %147 = vector.load %arg15[%c0_81, %c0_82] : memref<8x128xf32, #tpu.memory_space<vmem>>, vector<8x128xf32>
    tpu.vector_store %arg15[%c0_81, %c0_82], %144 {strides = array<i32>} : memref<8x128xf32, #tpu.memory_space<vmem>>, vector<8x128xf32>,
    %c0_83 = arith.constant 0 : index
    %c0_84 = arith.constant 0 : index
    %148 = vector.load %arg14[%c0_83, %c0_84] : memref<8x128xf32, #tpu.memory_space<vmem>>, vector<8x128xf32>
    tpu.vector_store %arg14[%c0_83, %c0_84], %146 {strides = array<i32>} : memref<8x128xf32, #tpu.memory_space<vmem>>, vector<8x128xf32>,
    %c24_85 = arith.constant 24 : index
    %c0_86 = arith.constant 0 : index
    %149 = vector.load %arg13[%c24_85, %c0_86] : memref<64x128xf32, #tpu.memory_space<vmem>>, vector<8x128xf32>
    tpu.vector_store %arg13[%c24_85, %c0_86], %146 {strides = array<i32>} : memref<64x128xf32, #tpu.memory_space<vmem>>, vector<8x128xf32>,
    %c32 = arith.constant 32 : index
    %c0_87 = arith.constant 0 : index
    %150 = vector.load %arg12[%c32, %c0_87] : memref<64x512xf32, #tpu.memory_space<vmem>>, vector<8x512xf32>
    %c0_88 = arith.constant 0 : index
    %c0_89 = arith.constant 0 : index
    %151 = vector.load %arg14[%c0_88, %c0_89] : memref<8x128xf32, #tpu.memory_space<vmem>>, vector<8x128xf32>
    %c0_90 = arith.constant 0 : index
    %c0_91 = arith.constant 0 : index
    %152 = vector.load %arg4[%c0_90, %c0_91] : memref<128x512xf32, #tpu.memory_space<vmem>>, vector<128x512xf32>
    %cst_92 = arith.constant dense<0.000000e+00> : vector<8x512xf32>
    %153 = tpu.matmul %151, %152, %cst_92 {dimension_numbers = #tpu.dot_dimension_numbers<[1], [0], [0], [1], [0, 0, 1, 1], [], []>} : vector<8x128xf32>, vector<128x512xf32>, vector<8x512xf32> -> vector<8x512xf32>
    %154 = arith.addf %150, %153 : vector<8x512xf32>
    %155 = vector.extract_strided_slice %154 {offsets = [0, 0], sizes = [8, 128], strides = [1, 1]} : vector<8x512xf32> to vector<8x128xf32>
    %156 = arith.negf %155 : vector<8x128xf32>
    %157 = math.exp %156 : vector<8x128xf32>
    %cst_93 = arith.constant 1.000000e+00 : f32
    %158 = vector.broadcast %cst_93 : f32 to vector<8x128xf32>
    %159 = arith.addf %158, %157 : vector<8x128xf32>
    %160 = arith.divf %158, %159 : vector<8x128xf32>
    %161 = vector.extract_strided_slice %154 {offsets = [0, 128], sizes = [8, 128], strides = [1, 1]} : vector<8x512xf32> to vector<8x128xf32>
    %162 = arith.negf %161 : vector<8x128xf32>
    %163 = math.exp %162 : vector<8x128xf32>
    %cst_94 = arith.constant 1.000000e+00 : f32
    %164 = vector.broadcast %cst_94 : f32 to vector<8x128xf32>
    %165 = arith.addf %164, %163 : vector<8x128xf32>
    %166 = arith.divf %164, %165 : vector<8x128xf32>
    %167 = vector.extract_strided_slice %154 {offsets = [0, 256], sizes = [8, 128], strides = [1, 1]} : vector<8x512xf32> to vector<8x128xf32>
    %168 = math.tanh %167 : vector<8x128xf32>
    %169 = vector.extract_strided_slice %154 {offsets = [0, 384], sizes = [8, 128], strides = [1, 1]} : vector<8x512xf32> to vector<8x128xf32>
    %170 = arith.negf %169 : vector<8x128xf32>
    %171 = math.exp %170 : vector<8x128xf32>
    %cst_95 = arith.constant 1.000000e+00 : f32
    %172 = vector.broadcast %cst_95 : f32 to vector<8x128xf32>
    %173 = arith.addf %172, %171 : vector<8x128xf32>
    %174 = arith.divf %172, %173 : vector<8x128xf32>
    %c0_96 = arith.constant 0 : index
    %c0_97 = arith.constant 0 : index
    %175 = vector.load %arg15[%c0_96, %c0_97] : memref<8x128xf32, #tpu.memory_space<vmem>>, vector<8x128xf32>
    %176 = arith.mulf %166, %175 : vector<8x128xf32>
    %177 = arith.mulf %160, %168 : vector<8x128xf32>
    %178 = arith.addf %176, %177 : vector<8x128xf32>
    %179 = math.tanh %178 : vector<8x128xf32>
    %180 = arith.mulf %174, %179 : vector<8x128xf32>
    %c0_98 = arith.constant 0 : index
    %c0_99 = arith.constant 0 : index
    %181 = vector.load %arg15[%c0_98, %c0_99] : memref<8x128xf32, #tpu.memory_space<vmem>>, vector<8x128xf32>
    tpu.vector_store %arg15[%c0_98, %c0_99], %178 {strides = array<i32>} : memref<8x128xf32, #tpu.memory_space<vmem>>, vector<8x128xf32>,
    %c0_100 = arith.constant 0 : index
    %c0_101 = arith.constant 0 : index
    %182 = vector.load %arg14[%c0_100, %c0_101] : memref<8x128xf32, #tpu.memory_space<vmem>>, vector<8x128xf32>
    tpu.vector_store %arg14[%c0_100, %c0_101], %180 {strides = array<i32>} : memref<8x128xf32, #tpu.memory_space<vmem>>, vector<8x128xf32>,
    %c32_102 = arith.constant 32 : index
    %c0_103 = arith.constant 0 : index
    %183 = vector.load %arg13[%c32_102, %c0_103] : memref<64x128xf32, #tpu.memory_space<vmem>>, vector<8x128xf32>
    tpu.vector_store %arg13[%c32_102, %c0_103], %180 {strides = array<i32>} : memref<64x128xf32, #tpu.memory_space<vmem>>, vector<8x128xf32>,
    %c40 = arith.constant 40 : index
    %c0_104 = arith.constant 0 : index
    %184 = vector.load %arg12[%c40, %c0_104] : memref<64x512xf32, #tpu.memory_space<vmem>>, vector<8x512xf32>
    %c0_105 = arith.constant 0 : index
    %c0_106 = arith.constant 0 : index
    %185 = vector.load %arg14[%c0_105, %c0_106] : memref<8x128xf32, #tpu.memory_space<vmem>>, vector<8x128xf32>
    %c0_107 = arith.constant 0 : index
    %c0_108 = arith.constant 0 : index
    %186 = vector.load %arg4[%c0_107, %c0_108] : memref<128x512xf32, #tpu.memory_space<vmem>>, vector<128x512xf32>
    %cst_109 = arith.constant dense<0.000000e+00> : vector<8x512xf32>
    %187 = tpu.matmul %185, %186, %cst_109 {dimension_numbers = #tpu.dot_dimension_numbers<[1], [0], [0], [1], [0, 0, 1, 1], [], []>} : vector<8x128xf32>, vector<128x512xf32>, vector<8x512xf32> -> vector<8x512xf32>
    %188 = arith.addf %184, %187 : vector<8x512xf32>
    %189 = vector.extract_strided_slice %188 {offsets = [0, 0], sizes = [8, 128], strides = [1, 1]} : vector<8x512xf32> to vector<8x128xf32>
    %190 = arith.negf %189 : vector<8x128xf32>
    %191 = math.exp %190 : vector<8x128xf32>
    %cst_110 = arith.constant 1.000000e+00 : f32
    %192 = vector.broadcast %cst_110 : f32 to vector<8x128xf32>
    %193 = arith.addf %192, %191 : vector<8x128xf32>
    %194 = arith.divf %192, %193 : vector<8x128xf32>
    %195 = vector.extract_strided_slice %188 {offsets = [0, 128], sizes = [8, 128], strides = [1, 1]} : vector<8x512xf32> to vector<8x128xf32>
    %196 = arith.negf %195 : vector<8x128xf32>
    %197 = math.exp %196 : vector<8x128xf32>
    %cst_111 = arith.constant 1.000000e+00 : f32
    %198 = vector.broadcast %cst_111 : f32 to vector<8x128xf32>
    %199 = arith.addf %198, %197 : vector<8x128xf32>
    %200 = arith.divf %198, %199 : vector<8x128xf32>
    %201 = vector.extract_strided_slice %188 {offsets = [0, 256], sizes = [8, 128], strides = [1, 1]} : vector<8x512xf32> to vector<8x128xf32>
    %202 = math.tanh %201 : vector<8x128xf32>
    %203 = vector.extract_strided_slice %188 {offsets = [0, 384], sizes = [8, 128], strides = [1, 1]} : vector<8x512xf32> to vector<8x128xf32>
    %204 = arith.negf %203 : vector<8x128xf32>
    %205 = math.exp %204 : vector<8x128xf32>
    %cst_112 = arith.constant 1.000000e+00 : f32
    %206 = vector.broadcast %cst_112 : f32 to vector<8x128xf32>
    %207 = arith.addf %206, %205 : vector<8x128xf32>
    %208 = arith.divf %206, %207 : vector<8x128xf32>
    %c0_113 = arith.constant 0 : index
    %c0_114 = arith.constant 0 : index
    %209 = vector.load %arg15[%c0_113, %c0_114] : memref<8x128xf32, #tpu.memory_space<vmem>>, vector<8x128xf32>
    %210 = arith.mulf %200, %209 : vector<8x128xf32>
    %211 = arith.mulf %194, %202 : vector<8x128xf32>
    %212 = arith.addf %210, %211 : vector<8x128xf32>
    %213 = math.tanh %212 : vector<8x128xf32>
    %214 = arith.mulf %208, %213 : vector<8x128xf32>
    %c0_115 = arith.constant 0 : index
    %c0_116 = arith.constant 0 : index
    %215 = vector.load %arg15[%c0_115, %c0_116] : memref<8x128xf32, #tpu.memory_space<vmem>>, vector<8x128xf32>
    tpu.vector_store %arg15[%c0_115, %c0_116], %212 {strides = array<i32>} : memref<8x128xf32, #tpu.memory_space<vmem>>, vector<8x128xf32>,
    %c0_117 = arith.constant 0 : index
    %c0_118 = arith.constant 0 : index
    %216 = vector.load %arg14[%c0_117, %c0_118] : memref<8x128xf32, #tpu.memory_space<vmem>>, vector<8x128xf32>
    tpu.vector_store %arg14[%c0_117, %c0_118], %214 {strides = array<i32>} : memref<8x128xf32, #tpu.memory_space<vmem>>, vector<8x128xf32>,
    %c40_119 = arith.constant 40 : index
    %c0_120 = arith.constant 0 : index
    %217 = vector.load %arg13[%c40_119, %c0_120] : memref<64x128xf32, #tpu.memory_space<vmem>>, vector<8x128xf32>
    tpu.vector_store %arg13[%c40_119, %c0_120], %214 {strides = array<i32>} : memref<64x128xf32, #tpu.memory_space<vmem>>, vector<8x128xf32>,
    %c48 = arith.constant 48 : index
    %c0_121 = arith.constant 0 : index
    %218 = vector.load %arg12[%c48, %c0_121] : memref<64x512xf32, #tpu.memory_space<vmem>>, vector<8x512xf32>
    %c0_122 = arith.constant 0 : index
    %c0_123 = arith.constant 0 : index
    %219 = vector.load %arg14[%c0_122, %c0_123] : memref<8x128xf32, #tpu.memory_space<vmem>>, vector<8x128xf32>
    %c0_124 = arith.constant 0 : index
    %c0_125 = arith.constant 0 : index
    %220 = vector.load %arg4[%c0_124, %c0_125] : memref<128x512xf32, #tpu.memory_space<vmem>>, vector<128x512xf32>
    %cst_126 = arith.constant dense<0.000000e+00> : vector<8x512xf32>
    %221 = tpu.matmul %219, %220, %cst_126 {dimension_numbers = #tpu.dot_dimension_numbers<[1], [0], [0], [1], [0, 0, 1, 1], [], []>} : vector<8x128xf32>, vector<128x512xf32>, vector<8x512xf32> -> vector<8x512xf32>
    %222 = arith.addf %218, %221 : vector<8x512xf32>
    %223 = vector.extract_strided_slice %222 {offsets = [0, 0], sizes = [8, 128], strides = [1, 1]} : vector<8x512xf32> to vector<8x128xf32>
    %224 = arith.negf %223 : vector<8x128xf32>
    %225 = math.exp %224 : vector<8x128xf32>
    %cst_127 = arith.constant 1.000000e+00 : f32
    %226 = vector.broadcast %cst_127 : f32 to vector<8x128xf32>
    %227 = arith.addf %226, %225 : vector<8x128xf32>
    %228 = arith.divf %226, %227 : vector<8x128xf32>
    %229 = vector.extract_strided_slice %222 {offsets = [0, 128], sizes = [8, 128], strides = [1, 1]} : vector<8x512xf32> to vector<8x128xf32>
    %230 = arith.negf %229 : vector<8x128xf32>
    %231 = math.exp %230 : vector<8x128xf32>
    %cst_128 = arith.constant 1.000000e+00 : f32
    %232 = vector.broadcast %cst_128 : f32 to vector<8x128xf32>
    %233 = arith.addf %232, %231 : vector<8x128xf32>
    %234 = arith.divf %232, %233 : vector<8x128xf32>
    %235 = vector.extract_strided_slice %222 {offsets = [0, 256], sizes = [8, 128], strides = [1, 1]} : vector<8x512xf32> to vector<8x128xf32>
    %236 = math.tanh %235 : vector<8x128xf32>
    %237 = vector.extract_strided_slice %222 {offsets = [0, 384], sizes = [8, 128], strides = [1, 1]} : vector<8x512xf32> to vector<8x128xf32>
    %238 = arith.negf %237 : vector<8x128xf32>
    %239 = math.exp %238 : vector<8x128xf32>
    %cst_129 = arith.constant 1.000000e+00 : f32
    %240 = vector.broadcast %cst_129 : f32 to vector<8x128xf32>
    %241 = arith.addf %240, %239 : vector<8x128xf32>
    %242 = arith.divf %240, %241 : vector<8x128xf32>
    %c0_130 = arith.constant 0 : index
    %c0_131 = arith.constant 0 : index
    %243 = vector.load %arg15[%c0_130, %c0_131] : memref<8x128xf32, #tpu.memory_space<vmem>>, vector<8x128xf32>
    %244 = arith.mulf %234, %243 : vector<8x128xf32>
    %245 = arith.mulf %228, %236 : vector<8x128xf32>
    %246 = arith.addf %244, %245 : vector<8x128xf32>
    %247 = math.tanh %246 : vector<8x128xf32>
    %248 = arith.mulf %242, %247 : vector<8x128xf32>
    %c0_132 = arith.constant 0 : index
    %c0_133 = arith.constant 0 : index
    %249 = vector.load %arg15[%c0_132, %c0_133] : memref<8x128xf32, #tpu.memory_space<vmem>>, vector<8x128xf32>
    tpu.vector_store %arg15[%c0_132, %c0_133], %246 {strides = array<i32>} : memref<8x128xf32, #tpu.memory_space<vmem>>, vector<8x128xf32>,
    %c0_134 = arith.constant 0 : index
    %c0_135 = arith.constant 0 : index
    %250 = vector.load %arg14[%c0_134, %c0_135] : memref<8x128xf32, #tpu.memory_space<vmem>>, vector<8x128xf32>
    tpu.vector_store %arg14[%c0_134, %c0_135], %248 {strides = array<i32>} : memref<8x128xf32, #tpu.memory_space<vmem>>, vector<8x128xf32>,
    %c48_136 = arith.constant 48 : index
    %c0_137 = arith.constant 0 : index
    %251 = vector.load %arg13[%c48_136, %c0_137] : memref<64x128xf32, #tpu.memory_space<vmem>>, vector<8x128xf32>
    tpu.vector_store %arg13[%c48_136, %c0_137], %248 {strides = array<i32>} : memref<64x128xf32, #tpu.memory_space<vmem>>, vector<8x128xf32>,
    %c56 = arith.constant 56 : index
    %c0_138 = arith.constant 0 : index
    %252 = vector.load %arg12[%c56, %c0_138] : memref<64x512xf32, #tpu.memory_space<vmem>>, vector<8x512xf32>
    %c0_139 = arith.constant 0 : index
    %c0_140 = arith.constant 0 : index
    %253 = vector.load %arg14[%c0_139, %c0_140] : memref<8x128xf32, #tpu.memory_space<vmem>>, vector<8x128xf32>
    %c0_141 = arith.constant 0 : index
    %c0_142 = arith.constant 0 : index
    %254 = vector.load %arg4[%c0_141, %c0_142] : memref<128x512xf32, #tpu.memory_space<vmem>>, vector<128x512xf32>
    %cst_143 = arith.constant dense<0.000000e+00> : vector<8x512xf32>
    %255 = tpu.matmul %253, %254, %cst_143 {dimension_numbers = #tpu.dot_dimension_numbers<[1], [0], [0], [1], [0, 0, 1, 1], [], []>} : vector<8x128xf32>, vector<128x512xf32>, vector<8x512xf32> -> vector<8x512xf32>
    %256 = arith.addf %252, %255 : vector<8x512xf32>
    %257 = vector.extract_strided_slice %256 {offsets = [0, 0], sizes = [8, 128], strides = [1, 1]} : vector<8x512xf32> to vector<8x128xf32>
    %258 = arith.negf %257 : vector<8x128xf32>
    %259 = math.exp %258 : vector<8x128xf32>
    %cst_144 = arith.constant 1.000000e+00 : f32
    %260 = vector.broadcast %cst_144 : f32 to vector<8x128xf32>
    %261 = arith.addf %260, %259 : vector<8x128xf32>
    %262 = arith.divf %260, %261 : vector<8x128xf32>
    %263 = vector.extract_strided_slice %256 {offsets = [0, 128], sizes = [8, 128], strides = [1, 1]} : vector<8x512xf32> to vector<8x128xf32>
    %264 = arith.negf %263 : vector<8x128xf32>
    %265 = math.exp %264 : vector<8x128xf32>
    %cst_145 = arith.constant 1.000000e+00 : f32
    %266 = vector.broadcast %cst_145 : f32 to vector<8x128xf32>
    %267 = arith.addf %266, %265 : vector<8x128xf32>
    %268 = arith.divf %266, %267 : vector<8x128xf32>
    %269 = vector.extract_strided_slice %256 {offsets = [0, 256], sizes = [8, 128], strides = [1, 1]} : vector<8x512xf32> to vector<8x128xf32>
    %270 = math.tanh %269 : vector<8x128xf32>
    %271 = vector.extract_strided_slice %256 {offsets = [0, 384], sizes = [8, 128], strides = [1, 1]} : vector<8x512xf32> to vector<8x128xf32>
    %272 = arith.negf %271 : vector<8x128xf32>
    %273 = math.exp %272 : vector<8x128xf32>
    %cst_146 = arith.constant 1.000000e+00 : f32
    %274 = vector.broadcast %cst_146 : f32 to vector<8x128xf32>
    %275 = arith.addf %274, %273 : vector<8x128xf32>
    %276 = arith.divf %274, %275 : vector<8x128xf32>
    %c0_147 = arith.constant 0 : index
    %c0_148 = arith.constant 0 : index
    %277 = vector.load %arg15[%c0_147, %c0_148] : memref<8x128xf32, #tpu.memory_space<vmem>>, vector<8x128xf32>
    %278 = arith.mulf %268, %277 : vector<8x128xf32>
    %279 = arith.mulf %262, %270 : vector<8x128xf32>
    %280 = arith.addf %278, %279 : vector<8x128xf32>
    %281 = math.tanh %280 : vector<8x128xf32>
    %282 = arith.mulf %276, %281 : vector<8x128xf32>
    %c0_149 = arith.constant 0 : index
    %c0_150 = arith.constant 0 : index
    %283 = vector.load %arg15[%c0_149, %c0_150] : memref<8x128xf32, #tpu.memory_space<vmem>>, vector<8x128xf32>
    tpu.vector_store %arg15[%c0_149, %c0_150], %280 {strides = array<i32>} : memref<8x128xf32, #tpu.memory_space<vmem>>, vector<8x128xf32>,
    %c0_151 = arith.constant 0 : index
    %c0_152 = arith.constant 0 : index
    %284 = vector.load %arg14[%c0_151, %c0_152] : memref<8x128xf32, #tpu.memory_space<vmem>>, vector<8x128xf32>
    tpu.vector_store %arg14[%c0_151, %c0_152], %282 {strides = array<i32>} : memref<8x128xf32, #tpu.memory_space<vmem>>, vector<8x128xf32>,
    %c56_153 = arith.constant 56 : index
    %c0_154 = arith.constant 0 : index
    %285 = vector.load %arg13[%c56_153, %c0_154] : memref<64x128xf32, #tpu.memory_space<vmem>>, vector<8x128xf32>
    tpu.vector_store %arg13[%c56_153, %c0_154], %282 {strides = array<i32>} : memref<64x128xf32, #tpu.memory_space<vmem>>, vector<8x128xf32>,
    %c0_155 = arith.constant 0 : index
    %c0_156 = arith.constant 0 : index
    %286 = vector.load %arg13[%c0_155, %c0_156] : memref<64x128xf32, #tpu.memory_space<vmem>>, vector<64x128xf32>
    %c0_157 = arith.constant 0 : index
    %c0_158 = arith.constant 0 : index
    %287 = vector.load %arg6[%c0_157, %c0_158] : memref<128x512xf32, #tpu.memory_space<vmem>>, vector<128x512xf32>
    %cst_159 = arith.constant dense<0.000000e+00> : vector<64x512xf32>
    %288 = tpu.matmul %286, %287, %cst_159 {dimension_numbers = #tpu.dot_dimension_numbers<[1], [0], [0], [1], [0, 0, 1, 1], [], []>} : vector<64x128xf32>, vector<128x512xf32>, vector<64x512xf32> -> vector<64x512xf32>
    %c0_160 = arith.constant 0 : index
    %c0_161 = arith.constant 0 : index
    %289 = vector.load %arg8[%c0_160, %c0_161] : memref<1x512xf32, #tpu.memory_space<vmem>>, vector<1x512xf32>
    %290 = vector.broadcast %289 : vector<1x512xf32> to vector<64x512xf32>
    %291 = arith.addf %288, %290 : vector<64x512xf32>
    %c0_162 = arith.constant 0 : index
    %c0_163 = arith.constant 0 : index
    %292 = vector.load %arg12[%c0_162, %c0_163] : memref<64x512xf32, #tpu.memory_space<vmem>>, vector<64x512xf32>
    tpu.vector_store %arg12[%c0_162, %c0_163], %291 {strides = array<i32>} : memref<64x512xf32, #tpu.memory_space<vmem>>, vector<64x512xf32>,
    %cst_164 = arith.constant 0.000000e+00 : f32
    %293 = vector.broadcast %cst_164 : f32 to vector<8x128xf32>
    %c0_165 = arith.constant 0 : index
    %c0_166 = arith.constant 0 : index
    %294 = vector.load %arg14[%c0_165, %c0_166] : memref<8x128xf32, #tpu.memory_space<vmem>>, vector<8x128xf32>
    tpu.vector_store %arg14[%c0_165, %c0_166], %293 {strides = array<i32>} : memref<8x128xf32, #tpu.memory_space<vmem>>, vector<8x128xf32>,
    %cst_167 = arith.constant 0.000000e+00 : f32
    %295 = vector.broadcast %cst_167 : f32 to vector<8x128xf32>
    %c0_168 = arith.constant 0 : index
    %c0_169 = arith.constant 0 : index
    %296 = vector.load %arg15[%c0_168, %c0_169] : memref<8x128xf32, #tpu.memory_space<vmem>>, vector<8x128xf32>
    tpu.vector_store %arg15[%c0_168, %c0_169], %295 {strides = array<i32>} : memref<8x128xf32, #tpu.memory_space<vmem>>, vector<8x128xf32>,
    %c0_170 = arith.constant 0 : index
    %c0_171 = arith.constant 0 : index
    %297 = vector.load %arg12[%c0_170, %c0_171] : memref<64x512xf32, #tpu.memory_space<vmem>>, vector<8x512xf32>
    %c0_172 = arith.constant 0 : index
    %c0_173 = arith.constant 0 : index
    %298 = vector.load %arg14[%c0_172, %c0_173] : memref<8x128xf32, #tpu.memory_space<vmem>>, vector<8x128xf32>
    %c0_174 = arith.constant 0 : index
    %c0_175 = arith.constant 0 : index
    %299 = vector.load %arg7[%c0_174, %c0_175] : memref<128x512xf32, #tpu.memory_space<vmem>>, vector<128x512xf32>
    %cst_176 = arith.constant dense<0.000000e+00> : vector<8x512xf32>
    %300 = tpu.matmul %298, %299, %cst_176 {dimension_numbers = #tpu.dot_dimension_numbers<[1], [0], [0], [1], [0, 0, 1, 1], [], []>} : vector<8x128xf32>, vector<128x512xf32>, vector<8x512xf32> -> vector<8x512xf32>
    %301 = arith.addf %297, %300 : vector<8x512xf32>
    %302 = vector.extract_strided_slice %301 {offsets = [0, 0], sizes = [8, 128], strides = [1, 1]} : vector<8x512xf32> to vector<8x128xf32>
    %303 = arith.negf %302 : vector<8x128xf32>
    %304 = math.exp %303 : vector<8x128xf32>
    %cst_177 = arith.constant 1.000000e+00 : f32
    %305 = vector.broadcast %cst_177 : f32 to vector<8x128xf32>
    %306 = arith.addf %305, %304 : vector<8x128xf32>
    %307 = arith.divf %305, %306 : vector<8x128xf32>
    %308 = vector.extract_strided_slice %301 {offsets = [0, 128], sizes = [8, 128], strides = [1, 1]} : vector<8x512xf32> to vector<8x128xf32>
    %309 = arith.negf %308 : vector<8x128xf32>
    %310 = math.exp %309 : vector<8x128xf32>
    %cst_178 = arith.constant 1.000000e+00 : f32
    %311 = vector.broadcast %cst_178 : f32 to vector<8x128xf32>
    %312 = arith.addf %311, %310 : vector<8x128xf32>
    %313 = arith.divf %311, %312 : vector<8x128xf32>
    %314 = vector.extract_strided_slice %301 {offsets = [0, 256], sizes = [8, 128], strides = [1, 1]} : vector<8x512xf32> to vector<8x128xf32>
    %315 = math.tanh %314 : vector<8x128xf32>
    %316 = vector.extract_strided_slice %301 {offsets = [0, 384], sizes = [8, 128], strides = [1, 1]} : vector<8x512xf32> to vector<8x128xf32>
    %317 = arith.negf %316 : vector<8x128xf32>
    %318 = math.exp %317 : vector<8x128xf32>
    %cst_179 = arith.constant 1.000000e+00 : f32
    %319 = vector.broadcast %cst_179 : f32 to vector<8x128xf32>
    %320 = arith.addf %319, %318 : vector<8x128xf32>
    %321 = arith.divf %319, %320 : vector<8x128xf32>
    %c0_180 = arith.constant 0 : index
    %c0_181 = arith.constant 0 : index
    %322 = vector.load %arg15[%c0_180, %c0_181] : memref<8x128xf32, #tpu.memory_space<vmem>>, vector<8x128xf32>
    %323 = arith.mulf %313, %322 : vector<8x128xf32>
    %324 = arith.mulf %307, %315 : vector<8x128xf32>
    %325 = arith.addf %323, %324 : vector<8x128xf32>
    %326 = math.tanh %325 : vector<8x128xf32>
    %327 = arith.mulf %321, %326 : vector<8x128xf32>
    %c0_182 = arith.constant 0 : index
    %c0_183 = arith.constant 0 : index
    %328 = vector.load %arg15[%c0_182, %c0_183] : memref<8x128xf32, #tpu.memory_space<vmem>>, vector<8x128xf32>
    tpu.vector_store %arg15[%c0_182, %c0_183], %325 {strides = array<i32>} : memref<8x128xf32, #tpu.memory_space<vmem>>, vector<8x128xf32>,
    %c0_184 = arith.constant 0 : index
    %c0_185 = arith.constant 0 : index
    %329 = vector.load %arg14[%c0_184, %c0_185] : memref<8x128xf32, #tpu.memory_space<vmem>>, vector<8x128xf32>
    tpu.vector_store %arg14[%c0_184, %c0_185], %327 {strides = array<i32>} : memref<8x128xf32, #tpu.memory_space<vmem>>, vector<8x128xf32>,
    %c0_i32 = arith.constant 0 : i32
    %330 = vector.broadcast %c0_i32 : i32 to vector<8x1xi32>
    %331 = arith.cmpi eq, %0, %330 : vector<8x1xi32>
    %c0_186 = arith.constant 0 : index
    %c0_187 = arith.constant 0 : index
    %332 = vector.load %arg16[%c0_186, %c0_187] : memref<8x128xf32, #tpu.memory_space<vmem>>, vector<8x128xf32>
    %333 = vector.shape_cast %331 : vector<8x1xi1> to vector<8x1xi1>
    %334 = vector.broadcast %333 : vector<8x1xi1> to vector<8x128xi1>
    %335 = arith.select %334, %327, %332 : vector<8x128xi1>, vector<8x128xf32>
    %c0_188 = arith.constant 0 : index
    %c0_189 = arith.constant 0 : index
    %336 = vector.load %arg16[%c0_188, %c0_189] : memref<8x128xf32, #tpu.memory_space<vmem>>, vector<8x128xf32>
    tpu.vector_store %arg16[%c0_188, %c0_189], %335 {strides = array<i32>} : memref<8x128xf32, #tpu.memory_space<vmem>>, vector<8x128xf32>,
    %c8_190 = arith.constant 8 : index
    %c0_191 = arith.constant 0 : index
    %337 = vector.load %arg12[%c8_190, %c0_191] : memref<64x512xf32, #tpu.memory_space<vmem>>, vector<8x512xf32>
    %c0_192 = arith.constant 0 : index
    %c0_193 = arith.constant 0 : index
    %338 = vector.load %arg14[%c0_192, %c0_193] : memref<8x128xf32, #tpu.memory_space<vmem>>, vector<8x128xf32>
    %c0_194 = arith.constant 0 : index
    %c0_195 = arith.constant 0 : index
    %339 = vector.load %arg7[%c0_194, %c0_195] : memref<128x512xf32, #tpu.memory_space<vmem>>, vector<128x512xf32>
    %cst_196 = arith.constant dense<0.000000e+00> : vector<8x512xf32>
    %340 = tpu.matmul %338, %339, %cst_196 {dimension_numbers = #tpu.dot_dimension_numbers<[1], [0], [0], [1], [0, 0, 1, 1], [], []>} : vector<8x128xf32>, vector<128x512xf32>, vector<8x512xf32> -> vector<8x512xf32>
    %341 = arith.addf %337, %340 : vector<8x512xf32>
    %342 = vector.extract_strided_slice %341 {offsets = [0, 0], sizes = [8, 128], strides = [1, 1]} : vector<8x512xf32> to vector<8x128xf32>
    %343 = arith.negf %342 : vector<8x128xf32>
    %344 = math.exp %343 : vector<8x128xf32>
    %cst_197 = arith.constant 1.000000e+00 : f32
    %345 = vector.broadcast %cst_197 : f32 to vector<8x128xf32>
    %346 = arith.addf %345, %344 : vector<8x128xf32>
    %347 = arith.divf %345, %346 : vector<8x128xf32>
    %348 = vector.extract_strided_slice %341 {offsets = [0, 128], sizes = [8, 128], strides = [1, 1]} : vector<8x512xf32> to vector<8x128xf32>
    %349 = arith.negf %348 : vector<8x128xf32>
    %350 = math.exp %349 : vector<8x128xf32>
    %cst_198 = arith.constant 1.000000e+00 : f32
    %351 = vector.broadcast %cst_198 : f32 to vector<8x128xf32>
    %352 = arith.addf %351, %350 : vector<8x128xf32>
    %353 = arith.divf %351, %352 : vector<8x128xf32>
    %354 = vector.extract_strided_slice %341 {offsets = [0, 256], sizes = [8, 128], strides = [1, 1]} : vector<8x512xf32> to vector<8x128xf32>
    %355 = math.tanh %354 : vector<8x128xf32>
    %356 = vector.extract_strided_slice %341 {offsets = [0, 384], sizes = [8, 128], strides = [1, 1]} : vector<8x512xf32> to vector<8x128xf32>
    %357 = arith.negf %356 : vector<8x128xf32>
    %358 = math.exp %357 : vector<8x128xf32>
    %cst_199 = arith.constant 1.000000e+00 : f32
    %359 = vector.broadcast %cst_199 : f32 to vector<8x128xf32>
    %360 = arith.addf %359, %358 : vector<8x128xf32>
    %361 = arith.divf %359, %360 : vector<8x128xf32>
    %c0_200 = arith.constant 0 : index
    %c0_201 = arith.constant 0 : index
    %362 = vector.load %arg15[%c0_200, %c0_201] : memref<8x128xf32, #tpu.memory_space<vmem>>, vector<8x128xf32>
    %363 = arith.mulf %353, %362 : vector<8x128xf32>
    %364 = arith.mulf %347, %355 : vector<8x128xf32>
    %365 = arith.addf %363, %364 : vector<8x128xf32>
    %366 = math.tanh %365 : vector<8x128xf32>
    %367 = arith.mulf %361, %366 : vector<8x128xf32>
    %c0_202 = arith.constant 0 : index
    %c0_203 = arith.constant 0 : index
    %368 = vector.load %arg15[%c0_202, %c0_203] : memref<8x128xf32, #tpu.memory_space<vmem>>, vector<8x128xf32>
    tpu.vector_store %arg15[%c0_202, %c0_203], %365 {strides = array<i32>} : memref<8x128xf32, #tpu.memory_space<vmem>>, vector<8x128xf32>,
    %c0_204 = arith.constant 0 : index
    %c0_205 = arith.constant 0 : index
    %369 = vector.load %arg14[%c0_204, %c0_205] : memref<8x128xf32, #tpu.memory_space<vmem>>, vector<8x128xf32>
    tpu.vector_store %arg14[%c0_204, %c0_205], %367 {strides = array<i32>} : memref<8x128xf32, #tpu.memory_space<vmem>>, vector<8x128xf32>,
    %c1_i32 = arith.constant 1 : i32
    %370 = vector.broadcast %c1_i32 : i32 to vector<8x1xi32>
    %371 = arith.cmpi eq, %0, %370 : vector<8x1xi32>
    %c0_206 = arith.constant 0 : index
    %c0_207 = arith.constant 0 : index
    %372 = vector.load %arg16[%c0_206, %c0_207] : memref<8x128xf32, #tpu.memory_space<vmem>>, vector<8x128xf32>
    %373 = vector.shape_cast %371 : vector<8x1xi1> to vector<8x1xi1>
    %374 = vector.broadcast %373 : vector<8x1xi1> to vector<8x128xi1>
    %375 = arith.select %374, %367, %372 : vector<8x128xi1>, vector<8x128xf32>
    %c0_208 = arith.constant 0 : index
    %c0_209 = arith.constant 0 : index
    %376 = vector.load %arg16[%c0_208, %c0_209] : memref<8x128xf32, #tpu.memory_space<vmem>>, vector<8x128xf32>
    tpu.vector_store %arg16[%c0_208, %c0_209], %375 {strides = array<i32>} : memref<8x128xf32, #tpu.memory_space<vmem>>, vector<8x128xf32>,
    %c16_210 = arith.constant 16 : index
    %c0_211 = arith.constant 0 : index
    %377 = vector.load %arg12[%c16_210, %c0_211] : memref<64x512xf32, #tpu.memory_space<vmem>>, vector<8x512xf32>
    %c0_212 = arith.constant 0 : index
    %c0_213 = arith.constant 0 : index
    %378 = vector.load %arg14[%c0_212, %c0_213] : memref<8x128xf32, #tpu.memory_space<vmem>>, vector<8x128xf32>
    %c0_214 = arith.constant 0 : index
    %c0_215 = arith.constant 0 : index
    %379 = vector.load %arg7[%c0_214, %c0_215] : memref<128x512xf32, #tpu.memory_space<vmem>>, vector<128x512xf32>
    %cst_216 = arith.constant dense<0.000000e+00> : vector<8x512xf32>
    %380 = tpu.matmul %378, %379, %cst_216 {dimension_numbers = #tpu.dot_dimension_numbers<[1], [0], [0], [1], [0, 0, 1, 1], [], []>} : vector<8x128xf32>, vector<128x512xf32>, vector<8x512xf32> -> vector<8x512xf32>
    %381 = arith.addf %377, %380 : vector<8x512xf32>
    %382 = vector.extract_strided_slice %381 {offsets = [0, 0], sizes = [8, 128], strides = [1, 1]} : vector<8x512xf32> to vector<8x128xf32>
    %383 = arith.negf %382 : vector<8x128xf32>
    %384 = math.exp %383 : vector<8x128xf32>
    %cst_217 = arith.constant 1.000000e+00 : f32
    %385 = vector.broadcast %cst_217 : f32 to vector<8x128xf32>
    %386 = arith.addf %385, %384 : vector<8x128xf32>
    %387 = arith.divf %385, %386 : vector<8x128xf32>
    %388 = vector.extract_strided_slice %381 {offsets = [0, 128], sizes = [8, 128], strides = [1, 1]} : vector<8x512xf32> to vector<8x128xf32>
    %389 = arith.negf %388 : vector<8x128xf32>
    %390 = math.exp %389 : vector<8x128xf32>
    %cst_218 = arith.constant 1.000000e+00 : f32
    %391 = vector.broadcast %cst_218 : f32 to vector<8x128xf32>
    %392 = arith.addf %391, %390 : vector<8x128xf32>
    %393 = arith.divf %391, %392 : vector<8x128xf32>
    %394 = vector.extract_strided_slice %381 {offsets = [0, 256], sizes = [8, 128], strides = [1, 1]} : vector<8x512xf32> to vector<8x128xf32>
    %395 = math.tanh %394 : vector<8x128xf32>
    %396 = vector.extract_strided_slice %381 {offsets = [0, 384], sizes = [8, 128], strides = [1, 1]} : vector<8x512xf32> to vector<8x128xf32>
    %397 = arith.negf %396 : vector<8x128xf32>
    %398 = math.exp %397 : vector<8x128xf32>
    %cst_219 = arith.constant 1.000000e+00 : f32
    %399 = vector.broadcast %cst_219 : f32 to vector<8x128xf32>
    %400 = arith.addf %399, %398 : vector<8x128xf32>
    %401 = arith.divf %399, %400 : vector<8x128xf32>
    %c0_220 = arith.constant 0 : index
    %c0_221 = arith.constant 0 : index
    %402 = vector.load %arg15[%c0_220, %c0_221] : memref<8x128xf32, #tpu.memory_space<vmem>>, vector<8x128xf32>
    %403 = arith.mulf %393, %402 : vector<8x128xf32>
    %404 = arith.mulf %387, %395 : vector<8x128xf32>
    %405 = arith.addf %403, %404 : vector<8x128xf32>
    %406 = math.tanh %405 : vector<8x128xf32>
    %407 = arith.mulf %401, %406 : vector<8x128xf32>
    %c0_222 = arith.constant 0 : index
    %c0_223 = arith.constant 0 : index
    %408 = vector.load %arg15[%c0_222, %c0_223] : memref<8x128xf32, #tpu.memory_space<vmem>>, vector<8x128xf32>
    tpu.vector_store %arg15[%c0_222, %c0_223], %405 {strides = array<i32>} : memref<8x128xf32, #tpu.memory_space<vmem>>, vector<8x128xf32>,
    %c0_224 = arith.constant 0 : index
    %c0_225 = arith.constant 0 : index
    %409 = vector.load %arg14[%c0_224, %c0_225] : memref<8x128xf32, #tpu.memory_space<vmem>>, vector<8x128xf32>
    tpu.vector_store %arg14[%c0_224, %c0_225], %407 {strides = array<i32>} : memref<8x128xf32, #tpu.memory_space<vmem>>, vector<8x128xf32>,
    %c2_i32 = arith.constant 2 : i32
    %410 = vector.broadcast %c2_i32 : i32 to vector<8x1xi32>
    %411 = arith.cmpi eq, %0, %410 : vector<8x1xi32>
    %c0_226 = arith.constant 0 : index
    %c0_227 = arith.constant 0 : index
    %412 = vector.load %arg16[%c0_226, %c0_227] : memref<8x128xf32, #tpu.memory_space<vmem>>, vector<8x128xf32>
    %413 = vector.shape_cast %411 : vector<8x1xi1> to vector<8x1xi1>
    %414 = vector.broadcast %413 : vector<8x1xi1> to vector<8x128xi1>
    %415 = arith.select %414, %407, %412 : vector<8x128xi1>, vector<8x128xf32>
    %c0_228 = arith.constant 0 : index
    %c0_229 = arith.constant 0 : index
    %416 = vector.load %arg16[%c0_228, %c0_229] : memref<8x128xf32, #tpu.memory_space<vmem>>, vector<8x128xf32>
    tpu.vector_store %arg16[%c0_228, %c0_229], %415 {strides = array<i32>} : memref<8x128xf32, #tpu.memory_space<vmem>>, vector<8x128xf32>,
    %c24_230 = arith.constant 24 : index
    %c0_231 = arith.constant 0 : index
    %417 = vector.load %arg12[%c24_230, %c0_231] : memref<64x512xf32, #tpu.memory_space<vmem>>, vector<8x512xf32>
    %c0_232 = arith.constant 0 : index
    %c0_233 = arith.constant 0 : index
    %418 = vector.load %arg14[%c0_232, %c0_233] : memref<8x128xf32, #tpu.memory_space<vmem>>, vector<8x128xf32>
    %c0_234 = arith.constant 0 : index
    %c0_235 = arith.constant 0 : index
    %419 = vector.load %arg7[%c0_234, %c0_235] : memref<128x512xf32, #tpu.memory_space<vmem>>, vector<128x512xf32>
    %cst_236 = arith.constant dense<0.000000e+00> : vector<8x512xf32>
    %420 = tpu.matmul %418, %419, %cst_236 {dimension_numbers = #tpu.dot_dimension_numbers<[1], [0], [0], [1], [0, 0, 1, 1], [], []>} : vector<8x128xf32>, vector<128x512xf32>, vector<8x512xf32> -> vector<8x512xf32>
    %421 = arith.addf %417, %420 : vector<8x512xf32>
    %422 = vector.extract_strided_slice %421 {offsets = [0, 0], sizes = [8, 128], strides = [1, 1]} : vector<8x512xf32> to vector<8x128xf32>
    %423 = arith.negf %422 : vector<8x128xf32>
    %424 = math.exp %423 : vector<8x128xf32>
    %cst_237 = arith.constant 1.000000e+00 : f32
    %425 = vector.broadcast %cst_237 : f32 to vector<8x128xf32>
    %426 = arith.addf %425, %424 : vector<8x128xf32>
    %427 = arith.divf %425, %426 : vector<8x128xf32>
    %428 = vector.extract_strided_slice %421 {offsets = [0, 128], sizes = [8, 128], strides = [1, 1]} : vector<8x512xf32> to vector<8x128xf32>
    %429 = arith.negf %428 : vector<8x128xf32>
    %430 = math.exp %429 : vector<8x128xf32>
    %cst_238 = arith.constant 1.000000e+00 : f32
    %431 = vector.broadcast %cst_238 : f32 to vector<8x128xf32>
    %432 = arith.addf %431, %430 : vector<8x128xf32>
    %433 = arith.divf %431, %432 : vector<8x128xf32>
    %434 = vector.extract_strided_slice %421 {offsets = [0, 256], sizes = [8, 128], strides = [1, 1]} : vector<8x512xf32> to vector<8x128xf32>
    %435 = math.tanh %434 : vector<8x128xf32>
    %436 = vector.extract_strided_slice %421 {offsets = [0, 384], sizes = [8, 128], strides = [1, 1]} : vector<8x512xf32> to vector<8x128xf32>
    %437 = arith.negf %436 : vector<8x128xf32>
    %438 = math.exp %437 : vector<8x128xf32>
    %cst_239 = arith.constant 1.000000e+00 : f32
    %439 = vector.broadcast %cst_239 : f32 to vector<8x128xf32>
    %440 = arith.addf %439, %438 : vector<8x128xf32>
    %441 = arith.divf %439, %440 : vector<8x128xf32>
    %c0_240 = arith.constant 0 : index
    %c0_241 = arith.constant 0 : index
    %442 = vector.load %arg15[%c0_240, %c0_241] : memref<8x128xf32, #tpu.memory_space<vmem>>, vector<8x128xf32>
    %443 = arith.mulf %433, %442 : vector<8x128xf32>
    %444 = arith.mulf %427, %435 : vector<8x128xf32>
    %445 = arith.addf %443, %444 : vector<8x128xf32>
    %446 = math.tanh %445 : vector<8x128xf32>
    %447 = arith.mulf %441, %446 : vector<8x128xf32>
    %c0_242 = arith.constant 0 : index
    %c0_243 = arith.constant 0 : index
    %448 = vector.load %arg15[%c0_242, %c0_243] : memref<8x128xf32, #tpu.memory_space<vmem>>, vector<8x128xf32>
    tpu.vector_store %arg15[%c0_242, %c0_243], %445 {strides = array<i32>} : memref<8x128xf32, #tpu.memory_space<vmem>>, vector<8x128xf32>,
    %c0_244 = arith.constant 0 : index
    %c0_245 = arith.constant 0 : index
    %449 = vector.load %arg14[%c0_244, %c0_245] : memref<8x128xf32, #tpu.memory_space<vmem>>, vector<8x128xf32>
    tpu.vector_store %arg14[%c0_244, %c0_245], %447 {strides = array<i32>} : memref<8x128xf32, #tpu.memory_space<vmem>>, vector<8x128xf32>,
    %c3_i32 = arith.constant 3 : i32
    %450 = vector.broadcast %c3_i32 : i32 to vector<8x1xi32>
    %451 = arith.cmpi eq, %0, %450 : vector<8x1xi32>
    %c0_246 = arith.constant 0 : index
    %c0_247 = arith.constant 0 : index
    %452 = vector.load %arg16[%c0_246, %c0_247] : memref<8x128xf32, #tpu.memory_space<vmem>>, vector<8x128xf32>
    %453 = vector.shape_cast %451 : vector<8x1xi1> to vector<8x1xi1>
    %454 = vector.broadcast %453 : vector<8x1xi1> to vector<8x128xi1>
    %455 = arith.select %454, %447, %452 : vector<8x128xi1>, vector<8x128xf32>
    %c0_248 = arith.constant 0 : index
    %c0_249 = arith.constant 0 : index
    %456 = vector.load %arg16[%c0_248, %c0_249] : memref<8x128xf32, #tpu.memory_space<vmem>>, vector<8x128xf32>
    tpu.vector_store %arg16[%c0_248, %c0_249], %455 {strides = array<i32>} : memref<8x128xf32, #tpu.memory_space<vmem>>, vector<8x128xf32>,
    %c32_250 = arith.constant 32 : index
    %c0_251 = arith.constant 0 : index
    %457 = vector.load %arg12[%c32_250, %c0_251] : memref<64x512xf32, #tpu.memory_space<vmem>>, vector<8x512xf32>
    %c0_252 = arith.constant 0 : index
    %c0_253 = arith.constant 0 : index
    %458 = vector.load %arg14[%c0_252, %c0_253] : memref<8x128xf32, #tpu.memory_space<vmem>>, vector<8x128xf32>
    %c0_254 = arith.constant 0 : index
    %c0_255 = arith.constant 0 : index
    %459 = vector.load %arg7[%c0_254, %c0_255] : memref<128x512xf32, #tpu.memory_space<vmem>>, vector<128x512xf32>
    %cst_256 = arith.constant dense<0.000000e+00> : vector<8x512xf32>
    %460 = tpu.matmul %458, %459, %cst_256 {dimension_numbers = #tpu.dot_dimension_numbers<[1], [0], [0], [1], [0, 0, 1, 1], [], []>} : vector<8x128xf32>, vector<128x512xf32>, vector<8x512xf32> -> vector<8x512xf32>
    %461 = arith.addf %457, %460 : vector<8x512xf32>
    %462 = vector.extract_strided_slice %461 {offsets = [0, 0], sizes = [8, 128], strides = [1, 1]} : vector<8x512xf32> to vector<8x128xf32>
    %463 = arith.negf %462 : vector<8x128xf32>
    %464 = math.exp %463 : vector<8x128xf32>
    %cst_257 = arith.constant 1.000000e+00 : f32
    %465 = vector.broadcast %cst_257 : f32 to vector<8x128xf32>
    %466 = arith.addf %465, %464 : vector<8x128xf32>
    %467 = arith.divf %465, %466 : vector<8x128xf32>
    %468 = vector.extract_strided_slice %461 {offsets = [0, 128], sizes = [8, 128], strides = [1, 1]} : vector<8x512xf32> to vector<8x128xf32>
    %469 = arith.negf %468 : vector<8x128xf32>
    %470 = math.exp %469 : vector<8x128xf32>
    %cst_258 = arith.constant 1.000000e+00 : f32
    %471 = vector.broadcast %cst_258 : f32 to vector<8x128xf32>
    %472 = arith.addf %471, %470 : vector<8x128xf32>
    %473 = arith.divf %471, %472 : vector<8x128xf32>
    %474 = vector.extract_strided_slice %461 {offsets = [0, 256], sizes = [8, 128], strides = [1, 1]} : vector<8x512xf32> to vector<8x128xf32>
    %475 = math.tanh %474 : vector<8x128xf32>
    %476 = vector.extract_strided_slice %461 {offsets = [0, 384], sizes = [8, 128], strides = [1, 1]} : vector<8x512xf32> to vector<8x128xf32>
    %477 = arith.negf %476 : vector<8x128xf32>
    %478 = math.exp %477 : vector<8x128xf32>
    %cst_259 = arith.constant 1.000000e+00 : f32
    %479 = vector.broadcast %cst_259 : f32 to vector<8x128xf32>
    %480 = arith.addf %479, %478 : vector<8x128xf32>
    %481 = arith.divf %479, %480 : vector<8x128xf32>
    %c0_260 = arith.constant 0 : index
    %c0_261 = arith.constant 0 : index
    %482 = vector.load %arg15[%c0_260, %c0_261] : memref<8x128xf32, #tpu.memory_space<vmem>>, vector<8x128xf32>
    %483 = arith.mulf %473, %482 : vector<8x128xf32>
    %484 = arith.mulf %467, %475 : vector<8x128xf32>
    %485 = arith.addf %483, %484 : vector<8x128xf32>
    %486 = math.tanh %485 : vector<8x128xf32>
    %487 = arith.mulf %481, %486 : vector<8x128xf32>
    %c0_262 = arith.constant 0 : index
    %c0_263 = arith.constant 0 : index
    %488 = vector.load %arg15[%c0_262, %c0_263] : memref<8x128xf32, #tpu.memory_space<vmem>>, vector<8x128xf32>
    tpu.vector_store %arg15[%c0_262, %c0_263], %485 {strides = array<i32>} : memref<8x128xf32, #tpu.memory_space<vmem>>, vector<8x128xf32>,
    %c0_264 = arith.constant 0 : index
    %c0_265 = arith.constant 0 : index
    %489 = vector.load %arg14[%c0_264, %c0_265] : memref<8x128xf32, #tpu.memory_space<vmem>>, vector<8x128xf32>
    tpu.vector_store %arg14[%c0_264, %c0_265], %487 {strides = array<i32>} : memref<8x128xf32, #tpu.memory_space<vmem>>, vector<8x128xf32>,
    %c4_i32 = arith.constant 4 : i32
    %490 = vector.broadcast %c4_i32 : i32 to vector<8x1xi32>
    %491 = arith.cmpi eq, %0, %490 : vector<8x1xi32>
    %c0_266 = arith.constant 0 : index
    %c0_267 = arith.constant 0 : index
    %492 = vector.load %arg16[%c0_266, %c0_267] : memref<8x128xf32, #tpu.memory_space<vmem>>, vector<8x128xf32>
    %493 = vector.shape_cast %491 : vector<8x1xi1> to vector<8x1xi1>
    %494 = vector.broadcast %493 : vector<8x1xi1> to vector<8x128xi1>
    %495 = arith.select %494, %487, %492 : vector<8x128xi1>, vector<8x128xf32>
    %c0_268 = arith.constant 0 : index
    %c0_269 = arith.constant 0 : index
    %496 = vector.load %arg16[%c0_268, %c0_269] : memref<8x128xf32, #tpu.memory_space<vmem>>, vector<8x128xf32>
    tpu.vector_store %arg16[%c0_268, %c0_269], %495 {strides = array<i32>} : memref<8x128xf32, #tpu.memory_space<vmem>>, vector<8x128xf32>,
    %c40_270 = arith.constant 40 : index
    %c0_271 = arith.constant 0 : index
    %497 = vector.load %arg12[%c40_270, %c0_271] : memref<64x512xf32, #tpu.memory_space<vmem>>, vector<8x512xf32>
    %c0_272 = arith.constant 0 : index
    %c0_273 = arith.constant 0 : index
    %498 = vector.load %arg14[%c0_272, %c0_273] : memref<8x128xf32, #tpu.memory_space<vmem>>, vector<8x128xf32>
    %c0_274 = arith.constant 0 : index
    %c0_275 = arith.constant 0 : index
    %499 = vector.load %arg7[%c0_274, %c0_275] : memref<128x512xf32, #tpu.memory_space<vmem>>, vector<128x512xf32>
    %cst_276 = arith.constant dense<0.000000e+00> : vector<8x512xf32>
    %500 = tpu.matmul %498, %499, %cst_276 {dimension_numbers = #tpu.dot_dimension_numbers<[1], [0], [0], [1], [0, 0, 1, 1], [], []>} : vector<8x128xf32>, vector<128x512xf32>, vector<8x512xf32> -> vector<8x512xf32>
    %501 = arith.addf %497, %500 : vector<8x512xf32>
    %502 = vector.extract_strided_slice %501 {offsets = [0, 0], sizes = [8, 128], strides = [1, 1]} : vector<8x512xf32> to vector<8x128xf32>
    %503 = arith.negf %502 : vector<8x128xf32>
    %504 = math.exp %503 : vector<8x128xf32>
    %cst_277 = arith.constant 1.000000e+00 : f32
    %505 = vector.broadcast %cst_277 : f32 to vector<8x128xf32>
    %506 = arith.addf %505, %504 : vector<8x128xf32>
    %507 = arith.divf %505, %506 : vector<8x128xf32>
    %508 = vector.extract_strided_slice %501 {offsets = [0, 128], sizes = [8, 128], strides = [1, 1]} : vector<8x512xf32> to vector<8x128xf32>
    %509 = arith.negf %508 : vector<8x128xf32>
    %510 = math.exp %509 : vector<8x128xf32>
    %cst_278 = arith.constant 1.000000e+00 : f32
    %511 = vector.broadcast %cst_278 : f32 to vector<8x128xf32>
    %512 = arith.addf %511, %510 : vector<8x128xf32>
    %513 = arith.divf %511, %512 : vector<8x128xf32>
    %514 = vector.extract_strided_slice %501 {offsets = [0, 256], sizes = [8, 128], strides = [1, 1]} : vector<8x512xf32> to vector<8x128xf32>
    %515 = math.tanh %514 : vector<8x128xf32>
    %516 = vector.extract_strided_slice %501 {offsets = [0, 384], sizes = [8, 128], strides = [1, 1]} : vector<8x512xf32> to vector<8x128xf32>
    %517 = arith.negf %516 : vector<8x128xf32>
    %518 = math.exp %517 : vector<8x128xf32>
    %cst_279 = arith.constant 1.000000e+00 : f32
    %519 = vector.broadcast %cst_279 : f32 to vector<8x128xf32>
    %520 = arith.addf %519, %518 : vector<8x128xf32>
    %521 = arith.divf %519, %520 : vector<8x128xf32>
    %c0_280 = arith.constant 0 : index
    %c0_281 = arith.constant 0 : index
    %522 = vector.load %arg15[%c0_280, %c0_281] : memref<8x128xf32, #tpu.memory_space<vmem>>, vector<8x128xf32>
    %523 = arith.mulf %513, %522 : vector<8x128xf32>
    %524 = arith.mulf %507, %515 : vector<8x128xf32>
    %525 = arith.addf %523, %524 : vector<8x128xf32>
    %526 = math.tanh %525 : vector<8x128xf32>
    %527 = arith.mulf %521, %526 : vector<8x128xf32>
    %c0_282 = arith.constant 0 : index
    %c0_283 = arith.constant 0 : index
    %528 = vector.load %arg15[%c0_282, %c0_283] : memref<8x128xf32, #tpu.memory_space<vmem>>, vector<8x128xf32>
    tpu.vector_store %arg15[%c0_282, %c0_283], %525 {strides = array<i32>} : memref<8x128xf32, #tpu.memory_space<vmem>>, vector<8x128xf32>,
    %c0_284 = arith.constant 0 : index
    %c0_285 = arith.constant 0 : index
    %529 = vector.load %arg14[%c0_284, %c0_285] : memref<8x128xf32, #tpu.memory_space<vmem>>, vector<8x128xf32>
    tpu.vector_store %arg14[%c0_284, %c0_285], %527 {strides = array<i32>} : memref<8x128xf32, #tpu.memory_space<vmem>>, vector<8x128xf32>,
    %c5_i32 = arith.constant 5 : i32
    %530 = vector.broadcast %c5_i32 : i32 to vector<8x1xi32>
    %531 = arith.cmpi eq, %0, %530 : vector<8x1xi32>
    %c0_286 = arith.constant 0 : index
    %c0_287 = arith.constant 0 : index
    %532 = vector.load %arg16[%c0_286, %c0_287] : memref<8x128xf32, #tpu.memory_space<vmem>>, vector<8x128xf32>
    %533 = vector.shape_cast %531 : vector<8x1xi1> to vector<8x1xi1>
    %534 = vector.broadcast %533 : vector<8x1xi1> to vector<8x128xi1>
    %535 = arith.select %534, %527, %532 : vector<8x128xi1>, vector<8x128xf32>
    %c0_288 = arith.constant 0 : index
    %c0_289 = arith.constant 0 : index
    %536 = vector.load %arg16[%c0_288, %c0_289] : memref<8x128xf32, #tpu.memory_space<vmem>>, vector<8x128xf32>
    tpu.vector_store %arg16[%c0_288, %c0_289], %535 {strides = array<i32>} : memref<8x128xf32, #tpu.memory_space<vmem>>, vector<8x128xf32>,
    %c48_290 = arith.constant 48 : index
    %c0_291 = arith.constant 0 : index
    %537 = vector.load %arg12[%c48_290, %c0_291] : memref<64x512xf32, #tpu.memory_space<vmem>>, vector<8x512xf32>
    %c0_292 = arith.constant 0 : index
    %c0_293 = arith.constant 0 : index
    %538 = vector.load %arg14[%c0_292, %c0_293] : memref<8x128xf32, #tpu.memory_space<vmem>>, vector<8x128xf32>
    %c0_294 = arith.constant 0 : index
    %c0_295 = arith.constant 0 : index
    %539 = vector.load %arg7[%c0_294, %c0_295] : memref<128x512xf32, #tpu.memory_space<vmem>>, vector<128x512xf32>
    %cst_296 = arith.constant dense<0.000000e+00> : vector<8x512xf32>
    %540 = tpu.matmul %538, %539, %cst_296 {dimension_numbers = #tpu.dot_dimension_numbers<[1], [0], [0], [1], [0, 0, 1, 1], [], []>} : vector<8x128xf32>, vector<128x512xf32>, vector<8x512xf32> -> vector<8x512xf32>
    %541 = arith.addf %537, %540 : vector<8x512xf32>
    %542 = vector.extract_strided_slice %541 {offsets = [0, 0], sizes = [8, 128], strides = [1, 1]} : vector<8x512xf32> to vector<8x128xf32>
    %543 = arith.negf %542 : vector<8x128xf32>
    %544 = math.exp %543 : vector<8x128xf32>
    %cst_297 = arith.constant 1.000000e+00 : f32
    %545 = vector.broadcast %cst_297 : f32 to vector<8x128xf32>
    %546 = arith.addf %545, %544 : vector<8x128xf32>
    %547 = arith.divf %545, %546 : vector<8x128xf32>
    %548 = vector.extract_strided_slice %541 {offsets = [0, 128], sizes = [8, 128], strides = [1, 1]} : vector<8x512xf32> to vector<8x128xf32>
    %549 = arith.negf %548 : vector<8x128xf32>
    %550 = math.exp %549 : vector<8x128xf32>
    %cst_298 = arith.constant 1.000000e+00 : f32
    %551 = vector.broadcast %cst_298 : f32 to vector<8x128xf32>
    %552 = arith.addf %551, %550 : vector<8x128xf32>
    %553 = arith.divf %551, %552 : vector<8x128xf32>
    %554 = vector.extract_strided_slice %541 {offsets = [0, 256], sizes = [8, 128], strides = [1, 1]} : vector<8x512xf32> to vector<8x128xf32>
    %555 = math.tanh %554 : vector<8x128xf32>
    %556 = vector.extract_strided_slice %541 {offsets = [0, 384], sizes = [8, 128], strides = [1, 1]} : vector<8x512xf32> to vector<8x128xf32>
    %557 = arith.negf %556 : vector<8x128xf32>
    %558 = math.exp %557 : vector<8x128xf32>
    %cst_299 = arith.constant 1.000000e+00 : f32
    %559 = vector.broadcast %cst_299 : f32 to vector<8x128xf32>
    %560 = arith.addf %559, %558 : vector<8x128xf32>
    %561 = arith.divf %559, %560 : vector<8x128xf32>
    %c0_300 = arith.constant 0 : index
    %c0_301 = arith.constant 0 : index
    %562 = vector.load %arg15[%c0_300, %c0_301] : memref<8x128xf32, #tpu.memory_space<vmem>>, vector<8x128xf32>
    %563 = arith.mulf %553, %562 : vector<8x128xf32>
    %564 = arith.mulf %547, %555 : vector<8x128xf32>
    %565 = arith.addf %563, %564 : vector<8x128xf32>
    %566 = math.tanh %565 : vector<8x128xf32>
    %567 = arith.mulf %561, %566 : vector<8x128xf32>
    %c0_302 = arith.constant 0 : index
    %c0_303 = arith.constant 0 : index
    %568 = vector.load %arg15[%c0_302, %c0_303] : memref<8x128xf32, #tpu.memory_space<vmem>>, vector<8x128xf32>
    tpu.vector_store %arg15[%c0_302, %c0_303], %565 {strides = array<i32>} : memref<8x128xf32, #tpu.memory_space<vmem>>, vector<8x128xf32>,
    %c0_304 = arith.constant 0 : index
    %c0_305 = arith.constant 0 : index
    %569 = vector.load %arg14[%c0_304, %c0_305] : memref<8x128xf32, #tpu.memory_space<vmem>>, vector<8x128xf32>
    tpu.vector_store %arg14[%c0_304, %c0_305], %567 {strides = array<i32>} : memref<8x128xf32, #tpu.memory_space<vmem>>, vector<8x128xf32>,
    %c6_i32 = arith.constant 6 : i32
    %570 = vector.broadcast %c6_i32 : i32 to vector<8x1xi32>
    %571 = arith.cmpi eq, %0, %570 : vector<8x1xi32>
    %c0_306 = arith.constant 0 : index
    %c0_307 = arith.constant 0 : index
    %572 = vector.load %arg16[%c0_306, %c0_307] : memref<8x128xf32, #tpu.memory_space<vmem>>, vector<8x128xf32>
    %573 = vector.shape_cast %571 : vector<8x1xi1> to vector<8x1xi1>
    %574 = vector.broadcast %573 : vector<8x1xi1> to vector<8x128xi1>
    %575 = arith.select %574, %567, %572 : vector<8x128xi1>, vector<8x128xf32>
    %c0_308 = arith.constant 0 : index
    %c0_309 = arith.constant 0 : index
    %576 = vector.load %arg16[%c0_308, %c0_309] : memref<8x128xf32, #tpu.memory_space<vmem>>, vector<8x128xf32>
    tpu.vector_store %arg16[%c0_308, %c0_309], %575 {strides = array<i32>} : memref<8x128xf32, #tpu.memory_space<vmem>>, vector<8x128xf32>,
    %c56_310 = arith.constant 56 : index
    %c0_311 = arith.constant 0 : index
    %577 = vector.load %arg12[%c56_310, %c0_311] : memref<64x512xf32, #tpu.memory_space<vmem>>, vector<8x512xf32>
    %c0_312 = arith.constant 0 : index
    %c0_313 = arith.constant 0 : index
    %578 = vector.load %arg14[%c0_312, %c0_313] : memref<8x128xf32, #tpu.memory_space<vmem>>, vector<8x128xf32>
    %c0_314 = arith.constant 0 : index
    %c0_315 = arith.constant 0 : index
    %579 = vector.load %arg7[%c0_314, %c0_315] : memref<128x512xf32, #tpu.memory_space<vmem>>, vector<128x512xf32>
    %cst_316 = arith.constant dense<0.000000e+00> : vector<8x512xf32>
    %580 = tpu.matmul %578, %579, %cst_316 {dimension_numbers = #tpu.dot_dimension_numbers<[1], [0], [0], [1], [0, 0, 1, 1], [], []>} : vector<8x128xf32>, vector<128x512xf32>, vector<8x512xf32> -> vector<8x512xf32>
    %581 = arith.addf %577, %580 : vector<8x512xf32>
    %582 = vector.extract_strided_slice %581 {offsets = [0, 0], sizes = [8, 128], strides = [1, 1]} : vector<8x512xf32> to vector<8x128xf32>
    %583 = arith.negf %582 : vector<8x128xf32>
    %584 = math.exp %583 : vector<8x128xf32>
    %cst_317 = arith.constant 1.000000e+00 : f32
    %585 = vector.broadcast %cst_317 : f32 to vector<8x128xf32>
    %586 = arith.addf %585, %584 : vector<8x128xf32>
    %587 = arith.divf %585, %586 : vector<8x128xf32>
    %588 = vector.extract_strided_slice %581 {offsets = [0, 128], sizes = [8, 128], strides = [1, 1]} : vector<8x512xf32> to vector<8x128xf32>
    %589 = arith.negf %588 : vector<8x128xf32>
    %590 = math.exp %589 : vector<8x128xf32>
    %cst_318 = arith.constant 1.000000e+00 : f32
    %591 = vector.broadcast %cst_318 : f32 to vector<8x128xf32>
    %592 = arith.addf %591, %590 : vector<8x128xf32>
    %593 = arith.divf %591, %592 : vector<8x128xf32>
    %594 = vector.extract_strided_slice %581 {offsets = [0, 256], sizes = [8, 128], strides = [1, 1]} : vector<8x512xf32> to vector<8x128xf32>
    %595 = math.tanh %594 : vector<8x128xf32>
    %596 = vector.extract_strided_slice %581 {offsets = [0, 384], sizes = [8, 128], strides = [1, 1]} : vector<8x512xf32> to vector<8x128xf32>
    %597 = arith.negf %596 : vector<8x128xf32>
    %598 = math.exp %597 : vector<8x128xf32>
    %cst_319 = arith.constant 1.000000e+00 : f32
    %599 = vector.broadcast %cst_319 : f32 to vector<8x128xf32>
    %600 = arith.addf %599, %598 : vector<8x128xf32>
    %601 = arith.divf %599, %600 : vector<8x128xf32>
    %c0_320 = arith.constant 0 : index
    %c0_321 = arith.constant 0 : index
    %602 = vector.load %arg15[%c0_320, %c0_321] : memref<8x128xf32, #tpu.memory_space<vmem>>, vector<8x128xf32>
    %603 = arith.mulf %593, %602 : vector<8x128xf32>
    %604 = arith.mulf %587, %595 : vector<8x128xf32>
    %605 = arith.addf %603, %604 : vector<8x128xf32>
    %606 = math.tanh %605 : vector<8x128xf32>
    %607 = arith.mulf %601, %606 : vector<8x128xf32>
    %c0_322 = arith.constant 0 : index
    %c0_323 = arith.constant 0 : index
    %608 = vector.load %arg15[%c0_322, %c0_323] : memref<8x128xf32, #tpu.memory_space<vmem>>, vector<8x128xf32>
    tpu.vector_store %arg15[%c0_322, %c0_323], %605 {strides = array<i32>} : memref<8x128xf32, #tpu.memory_space<vmem>>, vector<8x128xf32>,
    %c0_324 = arith.constant 0 : index
    %c0_325 = arith.constant 0 : index
    %609 = vector.load %arg14[%c0_324, %c0_325] : memref<8x128xf32, #tpu.memory_space<vmem>>, vector<8x128xf32>
    tpu.vector_store %arg14[%c0_324, %c0_325], %607 {strides = array<i32>} : memref<8x128xf32, #tpu.memory_space<vmem>>, vector<8x128xf32>,
    %c7_i32 = arith.constant 7 : i32
    %610 = vector.broadcast %c7_i32 : i32 to vector<8x1xi32>
    %611 = arith.cmpi eq, %0, %610 : vector<8x1xi32>
    %c0_326 = arith.constant 0 : index
    %c0_327 = arith.constant 0 : index
    %612 = vector.load %arg16[%c0_326, %c0_327] : memref<8x128xf32, #tpu.memory_space<vmem>>, vector<8x128xf32>
    %613 = vector.shape_cast %611 : vector<8x1xi1> to vector<8x1xi1>
    %614 = vector.broadcast %613 : vector<8x1xi1> to vector<8x128xi1>
    %615 = arith.select %614, %607, %612 : vector<8x128xi1>, vector<8x128xf32>
    %c0_328 = arith.constant 0 : index
    %c0_329 = arith.constant 0 : index
    %616 = vector.load %arg16[%c0_328, %c0_329] : memref<8x128xf32, #tpu.memory_space<vmem>>, vector<8x128xf32>
    tpu.vector_store %arg16[%c0_328, %c0_329], %615 {strides = array<i32>} : memref<8x128xf32, #tpu.memory_space<vmem>>, vector<8x128xf32>,
    %c0_330 = arith.constant 0 : index
    %c0_331 = arith.constant 0 : index
    %617 = vector.load %arg16[%c0_330, %c0_331] : memref<8x128xf32, #tpu.memory_space<vmem>>, vector<8x128xf32>
    %c0_332 = arith.constant 0 : index
    %c0_333 = arith.constant 0 : index
    %618 = vector.load %arg9[%c0_332, %c0_333] : memref<128x16xf32, #tpu.memory_space<vmem>>, vector<128x16xf32>
    %cst_334 = arith.constant dense<0.000000e+00> : vector<8x16xf32>
    %619 = tpu.matmul %617, %618, %cst_334 {dimension_numbers = #tpu.dot_dimension_numbers<[1], [0], [0], [1], [0, 0, 1, 1], [], []>} : vector<8x128xf32>, vector<128x16xf32>, vector<8x16xf32> -> vector<8x16xf32>
    %c0_335 = arith.constant 0 : index
    %c0_336 = arith.constant 0 : index
    %620 = vector.load %arg10[%c0_335, %c0_336] : memref<1x16xf32, #tpu.memory_space<vmem>>, vector<1x16xf32>
    %621 = vector.broadcast %620 : vector<1x16xf32> to vector<8x16xf32>
    %622 = arith.addf %619, %621 : vector<8x16xf32>
    %c0_337 = arith.constant 0 : index
    %c0_338 = arith.constant 0 : index
    %623 = vector.load %arg11[%c0_337, %c0_338] : memref<8x16xf32, #tpu.memory_space<vmem>>, vector<8x16xf32>
    tpu.vector_store %arg11[%c0_337, %c0_338], %622 {strides = array<i32>} : memref<8x16xf32, #tpu.memory_space<vmem>>, vector<8x16xf32>,
    return
  }
  func.func @transform_0(%arg0: i32) -> (i32, i32) {
    %c0_i32 = arith.constant 0 : i32
    %c0_i32_0 = arith.constant 0 : i32
    %c0_i32_1 = arith.constant 0 : i32
    return %c0_i32, %c0_i32_0 : i32, i32
  }
  func.func @transform_1(%arg0: i32) -> (i32, i32) {
    %c0_i32 = arith.constant 0 : i32
    %c0_i32_0 = arith.constant 0 : i32
    %c0_i32_1 = arith.constant 0 : i32
    return %c0_i32, %c0_i32_0 : i32, i32
  }
  func.func @transform_2(%arg0: i32) -> (i32, i32) {
    %c0_i32 = arith.constant 0 : i32
    %c0_i32_0 = arith.constant 0 : i32
    %c0_i32_1 = arith.constant 0 : i32
    return %c0_i32, %c0_i32_0 : i32, i32
  }
  func.func @transform_3(%arg0: i32) -> (i32, i32) {
    %c0_i32 = arith.constant 0 : i32
    %c0_i32_0 = arith.constant 0 : i32
    %c0_i32_1 = arith.constant 0 : i32
    return %c0_i32, %c0_i32_0 : i32, i32
  }
  func.func @transform_4(%arg0: i32) -> (i32, i32) {
    %c0_i32 = arith.constant 0 : i32
    %c0_i32_0 = arith.constant 0 : i32
    %c0_i32_1 = arith.constant 0 : i32
    return %c0_i32, %c0_i32_0 : i32, i32
  }
  func.func @transform_5(%arg0: i32) -> (i32, i32) {
    %c0_i32 = arith.constant 0 : i32
    %c0_i32_0 = arith.constant 0 : i32
    %c0_i32_1 = arith.constant 0 : i32
    return %c0_i32, %c0_i32_0 : i32, i32
  }
  func.func @transform_6(%arg0: i32) -> (i32, i32) {
    %c0_i32 = arith.constant 0 : i32
    %c0_i32_0 = arith.constant 0 : i32
    %c0_i32_1 = arith.constant 0 : i32
    return %c0_i32, %c0_i32_0 : i32, i32
  }
  func.func @transform_7(%arg0: i32) -> (i32, i32) {
    %c0_i32 = arith.constant 0 : i32
    %c0_i32_0 = arith.constant 0 : i32
    %c0_i32_1 = arith.constant 0 : i32
    return %c0_i32, %c0_i32_0 : i32, i32
  }
  func.func @transform_8(%arg0: i32) -> (i32, i32) {
    %c0_i32 = arith.constant 0 : i32
    %c0_i32_0 = arith.constant 0 : i32
    %c0_i32_1 = arith.constant 0 : i32
    return %c0_i32, %c0_i32_0 : i32, i32
  }
  func.func @transform_9(%arg0: i32) -> (i32, i32) {
    %c0_i32 = arith.constant 0 : i32
    %c0_i32_0 = arith.constant 0 : i32
    %c0_i32_1 = arith.constant 0 : i32
    return %c0_i32, %c0_i32_0 : i32, i32
  }
  func.func @transform_10(%arg0: i32) -> (i32, i32) {
    %c0_i32 = arith.constant 0 : i32
    %c0_i32_0 = arith.constant 0 : i32
    %c0_i32_1 = arith.constant 0 : i32
    return %c0_i32, %c0_i32_0 : i32, i32
  }
}

</mosaic_0001>

<bundles_post_ra>
// kernel: lstm_model_forward.1
= control target key start
LH: loop header
LB: loop body
LE: loop exit
PB: predicated region body
PF: predicated region fallthrough
CT: control target
= control target key end

     0   :  { %15 = vsyncpa [#allocation8], 0  ;;  %s8101_s0 = inlined_call_operand.vmem [shape: s32[8,1], index: 0, kind: input, shape index: {}]   ;;  %s8102_s1 = inlined_call_operand.vmem [shape: f32[64,128], index: 1, kind: input, shape index: {}]   ;;  %s8103_s2 = inlined_call_operand.vmem [shape: f32[128,512], index: 2, kind: input, shape index: {}]   ;;  %s8104_s3 = inlined_call_operand.hbm [shape: f32[128,512], index: 3, kind: input, shape index: {}]   ;;  %s8105_s4 = inlined_call_operand.vmem [shape: f32[1,512], index: 4, kind: input, shape index: {}]   ;;  %s8106_s5 = inlined_call_operand.hbm [shape: f32[128,512], index: 5, kind: input, shape index: {}]   ;;  %s8107_s6 = inlined_call_operand.hbm [shape: f32[128,512], index: 6, kind: input, shape index: {}]   ;;  %s8108_s7 = inlined_call_operand.vmem [shape: f32[1,512], index: 7, kind: input, shape index: {}]   ;;  %s8109_s8 = inlined_call_operand.vmem [shape: f32[128,16], index: 8, kind: input, shape index: {}]   ;;  %s8110_s9 = inlined_call_operand.vmem [shape: f32[1,16], index: 9, kind: input, shape index: {}]   ;;  %s8111_s10 = inlined_call_operand.hbm [shape: f32[8,16], index: 10, kind: output, shape index: {}]  }
   0x1   :  { %16 = vsyncpa [#allocation11], 0 }
   0x2   :  { %17 = vsyncpa [#allocation9], 0  ;;  %s6619_s13 = smov [#allocation10]   ;;  %s6620_s15 = smov [#allocation7]  }
   0x3   :  { %s43_s14 = sshll.u32 %s6619_s13, 4  ;;  %s29_s16 = sshll.u32 %s6620_s15, 4  ;;  %s44_s14 = int_to_ptr.vmem [resolvable:$true] %s43_s14  ;;  %s6684_s16 = int_to_ptr.vmem [resolvable:$true] %s29_s16 }
   0x4   :  { %s6525_s19 = scalar_lea.hbm %s8106_s5, 8192 }
   0x5   :  { %p6526_p0 = scmp.ne.s32.totalorder %s8106_s5, %s6525_s19  ;;  %p6529_p1 = scmp.lt.u32.totalorder %s6525_s19, %s8106_s5 }
   0x7   :  { %p6531_p2 = pnand %p6529_p1, %p6526_p0 }
   0x9   :  { %6534 = shalt.err (!%p6531_p2)
}
   0xa   :  { %s6535_s24 = scalar_lea.vmem %s44_s14, 8192  ;;  %p6540_p4 = scmp.lt.s32.totalorder %s44_s14, %s44_s14 }
   0xb   :  { %p6536_p3 = scmp.ne.s32.totalorder %s44_s14, %s6535_s24  ;;  %p6541_p5 = scmp.lt.s32.totalorder %s6535_s24, %s6535_s24 }
   0xd   :  { %p6542_p6 = por %p6541_p5, %p6540_p4 }
   0xf   :  { %p6543_p7 = pnand %p6542_p6, %p6536_p3 }
  0x11   :  { %6546 = shalt.err (!%p6543_p7)
}
  0x12   :  { %s6621_s25 = smov 512   ;;  %s6622_s26 = smov 32  }
  0x13   :  { %49 = dma.hbm_to_vmem [thread:$0]  %s8106_s5, 8192, %s44_s14, [#allocation11], %s6621_s25, %s6621_s25, %s6622_s26  }
  0x14   :  { %s6547_s11 = scalar_lea.hbm %s8104_s3, 8192 }
  0x15   :  { %p6548_p8 = scmp.ne.s32.totalorder %s8104_s3, %s6547_s11  ;;  %p6551_p9 = scmp.lt.u32.totalorder %s6547_s11, %s8104_s3 }
  0x17   :  { %p6553_p10 = pnand %p6551_p9, %p6548_p8 }
  0x19   :  { %6556 = shalt.err (!%p6553_p10)
}
  0x1a   :  { %s6557_s18 = scalar_lea.vmem %s6684_s16, 8192  ;;  %p6562_p12 = scmp.lt.s32.totalorder %s6684_s16, %s6684_s16 }
  0x1b   :  { %p6558_p11 = scmp.ne.s32.totalorder %s6684_s16, %s6557_s18  ;;  %p6563_p13 = scmp.lt.s32.totalorder %s6557_s18, %s6557_s18 }
  0x1d   :  { %p6564_p0 = por %p6563_p13, %p6562_p12 }
  0x1f   :  { %p6565_p1 = pnand %p6564_p0, %p6558_p11 }
  0x21   :  { %6568 = shalt.err (!%p6565_p1)
}
  0x22   :  { %35 = dma.hbm_to_vmem [thread:$0]  %s8104_s3, 8192, %s6684_s16, [#allocation8], %s6621_s25, %s6621_s25, %s6622_s26  }
  0x23   :  { %s6623_s19 = smov [#allocation12]   ;;  %s6569_s23 = scalar_lea.hbm %s8107_s6, 8192 }
  0x24   :  { %s55_s20 = sshll.u32 %s6623_s19, 4  ;;  %p6570_p2 = scmp.ne.s32.totalorder %s8107_s6, %s6569_s23  ;;  %s56_s20 = int_to_ptr.vmem [resolvable:$true] %s55_s20 }
  0x25   :  { %p6573_p3 = scmp.lt.u32.totalorder %s6569_s23, %s8107_s6 }
  0x27   :  { %p6575_p4 = pnand %p6573_p3, %p6570_p2 }
  0x29   :  { %6578 = shalt.err (!%p6575_p4)
}
  0x2a   :  { %s6579_s30 = scalar_lea.vmem %s56_s20, 8192  ;;  %p6584_p6 = scmp.lt.s32.totalorder %s56_s20, %s56_s20 }
  0x2b   :  { %p6580_p5 = scmp.ne.s32.totalorder %s56_s20, %s6579_s30  ;;  %p6585_p7 = scmp.lt.s32.totalorder %s6579_s30, %s6579_s30 }
  0x2d   :  { %p6586_p8 = por %p6585_p7, %p6584_p6 }
  0x2f   :  { %p6587_p9 = pnand %p6586_p8, %p6580_p5 }
  0x31   :  { %6590 = shalt.err (!%p6587_p9)
}
  0x32   :  { %61 = dma.hbm_to_vmem [thread:$0]  %s8107_s6, 8192, %s56_s20, [#allocation11], %s6621_s25, %s6621_s25, %s6622_s26  }
  0x33   :  { %6613 = dma.done.wait [#allocation8], 8192  }
  0x34   :  { %6614 = vsyncadd [#allocation8], 4294959104 }
  0x35   :  { %6615 = dma.done.wait [#allocation11], 16384  }
  0x36   :  { %6616 = vsyncadd [#allocation11], 4294950912  ;;  %v6624_v0 = vmov 0.0   ;;  %v88_v1 = vld [vmem:[%s8103_s2 + $0x8] sm:$0xff]  ;;  %v90_v3 = vld [vmem:[%s8103_s2 + $0x18] sm:$0xff]  ;;  %vm6627_vm15 = vmmov 0  }
  0x37   :  { %237 = vmatprep.mubr.f32.mxu0 %v6624_v0  ;;  %350 = vmatprep.mubr.f32.mxu1 %v6624_v0  ;;  %v92_v2 = vld [vmem:[%s8103_s2 + $0x28] sm:$0xff]  ;;  %v94_v5 = vld [vmem:[%s8103_s2 + $0x38] sm:$0xff]  ;;  %v87_v6 = vld [vmem:[%s8103_s2] sm:$0xff]  ;;  %s6628_s21 = smov [#allocation13]  }
  0x38   :  { %v4952_v4 = vpack.c.bf16 %v92_v2, %v88_v1  ;;  %v91_v7 = vld [vmem:[%s8103_s2 + $0x20] sm:$0xff]  ;;  %v4984_v8 = vpack.c.bf16 %v94_v5, %v90_v3  ;;  %v89_v10 = vld [vmem:[%s8103_s2 + $0x10] sm:$0xff]  ;;  %v96_v12 = vld [vmem:[%s8103_s2 + $0x48] sm:$0xff]  ;;  %s4841_s22 = sshll.u32 %s6628_s21, 4  ;;  %s4842_s22 = int_to_ptr.vmem [resolvable:$true] %s4841_s22 }
  0x39   :  { %v4954_v9 = vpack.c.bf16 %v91_v7, %v87_v6  ;;  %v93_v11 = vld [vmem:[%s8103_s2 + $0x30] sm:$0xff]  ;;  %v100_v14 = vld [vmem:[%s8103_s2 + $0x68] sm:$0xff]  ;;  %v98_v15 = vld [vmem:[%s8103_s2 + $0x58] sm:$0xff]  ;;  %s6591_s23 = scalar_lea.vmem %s4842_s22, 128  ;;  %p6596_p11 = scmp.lt.s32.totalorder %s4842_s22, %s4842_s22 }
  0x3a   :  { %4953 = vmatprep.subr.bf16.mxu0 %v4952_v4  ;;  %v4986_v13 = vpack.c.bf16 %v93_v11, %v89_v10  ;;  %v102_v16 = vld [vmem:[%s8103_s2 + $0x78] sm:$0xff]  ;;  %4985 = vmatprep.subr.bf16.mxu1 %v4984_v8  ;;  %v4956_v17 = vpack.c.bf16 %v100_v14, %v96_v12  ;;  %v95_v19 = vld [vmem:[%s8103_s2 + $0x40] sm:$0xff]  ;;  %v97_v21 = vld [vmem:[%s8103_s2 + $0x50] sm:$0xff]  ;;  %p6592_p10 = scmp.ne.s32.totalorder %s4842_s22, %s6591_s23  ;;  %p6597_p12 = scmp.lt.s32.totalorder %s6591_s23, %s6591_s23 }
  0x3b   :  { %4955 = vmatpush1.bf16.msra.mxu0 %v4954_v9  ;;  %v4988_v18 = vpack.c.bf16 %v102_v16, %v98_v15  ;;  %v99_v20 = vld [vmem:[%s8103_s2 + $0x60] sm:$0xff]  ;;  %v101_v23 = vld [vmem:[%s8103_s2 + $0x70] sm:$0xff]  ;;  %v104_v24 = vld [vmem:[%s8103_s2 + $0x88] sm:$0xff] }
  0x3c   :  { %4987 = vmatpush1.bf16.msra.mxu1 %v4986_v13  ;;  %v4958_v22 = vpack.c.bf16 %v99_v20, %v95_v19  ;;  %v108_v25 = vld [vmem:[%s8103_s2 + $0xa8] sm:$0xff]  ;;  %4957 = vmatprep.subr.bf16.mxu0 %v4956_v17  ;;  %v4990_v26 = vpack.c.bf16 %v101_v23, %v97_v21  ;;  %v106_v28 = vld [vmem:[%s8103_s2 + $0x98] sm:$0xff]  ;;  %v103_v30 = vld [vmem:[%s8103_s2 + $0x80] sm:$0xff]  ;;  %p6598_p13 = por %p6597_p12, %p6596_p11 }
  0x3d   :  { %4989 = vmatprep.subr.bf16.mxu1 %v4988_v18  ;;  %v4960_v27 = vpack.c.bf16 %v108_v25, %v104_v24  ;;  %v110_v29 = vld [vmem:[%s8103_s2 + $0xb8] sm:$0xff]  ;;  %v107_v32 = vld [vmem:[%s8103_s2 + $0xa0] sm:$0xff]  ;;  %v105_v33 = vld [vmem:[%s8103_s2 + $0x90] sm:$0xff] }
  0x3e   :  { %v4992_v31 = vpack.c.bf16 %v110_v29, %v106_v28  ;;  %v109_v34 = vld [vmem:[%s8103_s2 + $0xb0] sm:$0xff]  ;;  %v4962_v35 = vpack.c.bf16 %v107_v32, %v103_v30  ;;  %v112_v36 = vld [vmem:[%s8103_s2 + $0xc8] sm:$0xff]  ;;  %v114_v38 = vld [vmem:[%s8103_s2 + $0xd8] sm:$0xff]  ;;  %p6599_p0 = pnand %p6598_p13, %p6592_p10 }
  0x3f   :  { %4959 = vmatpush1.bf16.msra.mxu0 %v4958_v22  ;;  %v116_v37 = vld [vmem:[%s8103_s2 + $0xe8] sm:$0xff]  ;;  %v4994_v39 = vpack.c.bf16 %v109_v34, %v105_v33  ;;  %v118_v41 = vld [vmem:[%s8103_s2 + $0xf8] sm:$0xff]  ;;  %v111_v42 = vld [vmem:[%s8103_s2 + $0xc0] sm:$0xff] }
  0x40   :  { %4991 = vmatpush1.bf16.msra.mxu1 %v4990_v26  ;;  %4961 = vmatprep.subr.bf16.mxu0 %v4960_v27  ;;  %v4964_v40 = vpack.c.bf16 %v116_v37, %v112_v36  ;;  %v115_v43 = vld [vmem:[%s8103_s2 + $0xe0] sm:$0xff]  ;;  %v4996_v44 = vpack.c.bf16 %v118_v41, %v114_v38  ;;  %v113_v45 = vld [vmem:[%s8103_s2 + $0xd0] sm:$0xff]  ;;  %v120_v47 = vld [vmem:[%s8103_s2 + $0x108] sm:$0xff] }
  0x41   :  { %4993 = vmatprep.subr.bf16.mxu1 %v4992_v31  ;;  %v117_v46 = vld [vmem:[%s8103_s2 + $0xf0] sm:$0xff]  ;;  %v124_v48 = vld [vmem:[%s8103_s2 + $0x128] sm:$0xff]  ;;  %v122_v49 = vld [vmem:[%s8103_s2 + $0x118] sm:$0xff]  ;;  %v4966_v51 = vpack.c.bf16 %v115_v43, %v111_v42 }
  0x42   :  { %v126_v50 = vld [vmem:[%s8103_s2 + $0x138] sm:$0xff]  ;;  %v4998_v52 = vpack.c.bf16 %v117_v46, %v113_v45  ;;  %v4968_v53 = vpack.c.bf16 %v124_v48, %v120_v47  ;;  %v119_v54 = vld [vmem:[%s8103_s2 + $0x100] sm:$0xff]  ;;  %v121_v56 = vld [vmem:[%s8103_s2 + $0x110] sm:$0xff] }
  0x43   :  { %4963 = vmatpush1.bf16.msra.mxu0 %v4962_v35  ;;  %v123_v55 = vld [vmem:[%s8103_s2 + $0x120] sm:$0xff]  ;;  %v5000_v57 = vpack.c.bf16 %v126_v50, %v122_v49  ;;  %v125_v58 = vld [vmem:[%s8103_s2 + $0x130] sm:$0xff]  ;;  %v128_v59 = vld [vmem:[%s8103_s2 + $0x148] sm:$0xff] }
  0x44   :  { %4995 = vmatpush1.bf16.msra.mxu1 %v4994_v39  ;;  %4965 = vmatprep.subr.bf16.mxu0 %v4964_v40  ;;  %v132_v60 = vld [vmem:[%s8103_s2 + $0x168] sm:$0xff]  ;;  %v130_v61 = vld [vmem:[%s8103_s2 + $0x158] sm:$0xff]  ;;  %v4970_v63 = vpack.c.bf16 %v123_v55, %v119_v54  ;;  %v5002_v1 = vpack.c.bf16 %v125_v58, %v121_v56  ;;  %v127_v3 = vld [vmem:[%s8103_s2 + $0x140] sm:$0xff] }
  0x45   :  { %4997 = vmatprep.subr.bf16.mxu1 %v4996_v44  ;;  %v134_v62 = vld [vmem:[%s8103_s2 + $0x178] sm:$0xff]  ;;  %v4972_v2 = vpack.c.bf16 %v132_v60, %v128_v59  ;;  %v131_v4 = vld [vmem:[%s8103_s2 + $0x160] sm:$0xff]  ;;  %v129_v5 = vld [vmem:[%s8103_s2 + $0x150] sm:$0xff] }
  0x46   :  { %v5004_v6 = vpack.c.bf16 %v134_v62, %v130_v61  ;;  %v133_v7 = vld [vmem:[%s8103_s2 + $0x170] sm:$0xff]  ;;  %v136_v8 = vld [vmem:[%s8103_s2 + $0x188] sm:$0xff]  ;;  %v138_v10 = vld [vmem:[%s8103_s2 + $0x198] sm:$0xff]  ;;  %v4974_v12 = vpack.c.bf16 %v131_v4, %v127_v3 }
  0x47   :  { %4967 = vmatpush1.bf16.msra.mxu0 %v4966_v51  ;;  %v140_v9 = vld [vmem:[%s8103_s2 + $0x1a8] sm:$0xff]  ;;  %v142_v11 = vld [vmem:[%s8103_s2 + $0x1b8] sm:$0xff]  ;;  %v5006_v13 = vpack.c.bf16 %v133_v7, %v129_v5  ;;  %v135_v15 = vld [vmem:[%s8103_s2 + $0x180] sm:$0xff] }
  0x48   :  { %4999 = vmatpush1.bf16.msra.mxu1 %v4998_v52  ;;  %4969 = vmatprep.subr.bf16.mxu0 %v4968_v53  ;;  %v4976_v14 = vpack.c.bf16 %v140_v9, %v136_v8  ;;  %v139_v16 = vld [vmem:[%s8103_s2 + $0x1a0] sm:$0xff]  ;;  %v137_v17 = vld [vmem:[%s8103_s2 + $0x190] sm:$0xff]  ;;  %v5008_v18 = vpack.c.bf16 %v142_v11, %v138_v10  ;;  %v144_v20 = vld [vmem:[%s8103_s2 + $0x1c8] sm:$0xff] }
  0x49   :  { %5001 = vmatprep.subr.bf16.mxu1 %v5000_v57  ;;  %v141_v19 = vld [vmem:[%s8103_s2 + $0x1b0] sm:$0xff]  ;;  %v148_v21 = vld [vmem:[%s8103_s2 + $0x1e8] sm:$0xff]  ;;  %v146_v22 = vld [vmem:[%s8103_s2 + $0x1d8] sm:$0xff]  ;;  %v4978_v24 = vpack.c.bf16 %v139_v16, %v135_v15 }
  0x4a   :  { %v150_v23 = vld [vmem:[%s8103_s2 + $0x1f8] sm:$0xff]  ;;  %v5010_v25 = vpack.c.bf16 %v141_v19, %v137_v17  ;;  %v4980_v26 = vpack.c.bf16 %v148_v21, %v144_v20  ;;  %v143_v27 = vld [vmem:[%s8103_s2 + $0x1c0] sm:$0xff]  ;;  %v145_v29 = vld [vmem:[%s8103_s2 + $0x1d0] sm:$0xff] }
  0x4b   :  { %4971 = vmatpush1.bf16.msra.mxu0 %v4970_v63  ;;  %v147_v28 = vld [vmem:[%s8103_s2 + $0x1e0] sm:$0xff]  ;;  %v5012_v30 = vpack.c.bf16 %v150_v23, %v146_v22  ;;  %v149_v31 = vld [vmem:[%s8103_s2 + $0x1f0] sm:$0xff]  ;;  %v439_v32 = vld [vmem:[#allocation7 + $0x8] sm:$0xff] }
  0x4c   :  { %5003 = vmatpush1.bf16.msra.mxu1 %v5002_v1  ;;  %4973 = vmatprep.subr.bf16.mxu0 %v4972_v2  ;;  %v443_v33 = vld [vmem:[#allocation7 + $0x28] sm:$0xff]  ;;  %v441_v34 = vld [vmem:[#allocation7 + $0x18] sm:$0xff]  ;;  %v4982_v36 = vpack.c.bf16 %v147_v28, %v143_v27  ;;  %v5014_v37 = vpack.c.bf16 %v149_v31, %v145_v29  ;;  %v438_v39 = vld [vmem:[#allocation7] sm:$0xff] }
  0x4d   :  { %5005 = vmatprep.subr.bf16.mxu1 %v5004_v6  ;;  %v445_v35 = vld [vmem:[#allocation7 + $0x38] sm:$0xff]  ;;  %v6930_v38 = vpack.c.bf16 %v443_v33, %v439_v32  ;;  %v442_v40 = vld [vmem:[#allocation7 + $0x20] sm:$0xff]  ;;  %v440_v42 = vld [vmem:[#allocation7 + $0x10] sm:$0xff] }
  0x4e   :  { %v6932_v41 = vpack.c.bf16 %v445_v35, %v441_v34  ;;  %v444_v43 = vld [vmem:[#allocation7 + $0x30] sm:$0xff]  ;;  %v447_v44 = vld [vmem:[#allocation7 + $0x48] sm:$0xff]  ;;  %v79_v46 = vld [vmem:[%s8102_s1] sm:$0xff]  ;;  %v6937_v47 = vpack.c.bf16 %v442_v40, %v438_v39 }
  0x4f   :  { %4975 = vmatpush1.bf16.msra.mxu0 %v4974_v12  ;;  %v451_v45 = vld [vmem:[#allocation7 + $0x68] sm:$0xff]  ;;  %v449_v48 = vld [vmem:[#allocation7 + $0x58] sm:$0xff]  ;;  %v6940_v50 = vpack.c.bf16 %v444_v43, %v440_v42  ;;  %v446_v51 = vld [vmem:[#allocation7 + $0x40] sm:$0xff] }
  0x50   :  { %5007 = vmatpush1.bf16.msra.mxu1 %v5006_v13  ;;  %4977 = vmatprep.subr.bf16.mxu0 %v4976_v14  ;;  %v453_v49 = vld [vmem:[#allocation7 + $0x78] sm:$0xff]  ;;  %v450_v52 = vld [vmem:[#allocation7 + $0x60] sm:$0xff]  ;;  %v6943_v53 = vpack.c.bf16 %v451_v45, %v447_v44  ;;  %v448_v54 = vld [vmem:[#allocation7 + $0x50] sm:$0xff] }
  0x51   :  { %5009 = vmatprep.subr.bf16.mxu1 %v5008_v18  ;;  %v452_v55 = vld [vmem:[#allocation7 + $0x70] sm:$0xff]  ;;  %v6945_v56 = vpack.c.bf16 %v453_v49, %v449_v48  ;;  %v455_v57 = vld [vmem:[#allocation7 + $0x88] sm:$0xff]  ;;  %v6951_v60 = vpack.c.bf16 %v450_v52, %v446_v51  ;;  %v457_v61 = vld [vmem:[#allocation7 + $0x98] sm:$0xff] }
  0x52   :  { %v459_v58 = vld [vmem:[#allocation7 + $0xa8] sm:$0xff]  ;;  %v461_v62 = vld [vmem:[#allocation7 + $0xb8] sm:$0xff]  ;;  %v6955_v63 = vpack.c.bf16 %v452_v55, %v448_v54  ;;  %v454_v1 = vld [vmem:[#allocation7 + $0x80] sm:$0xff] }
  0x53   :  { %4979 = vmatpush1.bf16.msra.mxu0 %v4978_v24  ;;  %v80_v59 = vld [vmem:[%s8102_s1 + $0x8] sm:$0xff]  ;;  %v458_v2 = vld [vmem:[#allocation7 + $0xa0] sm:$0xff]  ;;  %v6959_v3 = vpack.c.bf16 %v459_v58, %v455_v57  ;;  %v456_v4 = vld [vmem:[#allocation7 + $0x90] sm:$0xff]  ;;  %v6962_v6 = vpack.c.bf16 %v461_v62, %v457_v61 }
  0x54   :  { %5011 = vmatpush1.bf16.msra.mxu1 %v5010_v25  ;;  %4981 = vmatprep.subr.bf16.mxu0 %v4980_v26  ;;  %v460_v5 = vld [vmem:[#allocation7 + $0xb0] sm:$0xff]  ;;  %v463_v7 = vld [vmem:[#allocation7 + $0xc8] sm:$0xff]  ;;  %v6968_v10 = vpack.c.bf16 %v458_v2, %v454_v1  ;;  %v465_v11 = vld [vmem:[#allocation7 + $0xd8] sm:$0xff] }
  0x55   :  { %5013 = vmatprep.subr.bf16.mxu1 %v5012_v30  ;;  %v467_v8 = vld [vmem:[#allocation7 + $0xe8] sm:$0xff]  ;;  %v81_v9 = vld [vmem:[%s8102_s1 + $0x10] sm:$0xff]  ;;  %v469_v12 = vld [vmem:[#allocation7 + $0xf8] sm:$0xff]  ;;  %v6972_v13 = vpack.c.bf16 %v460_v5, %v456_v4 }
  0x56   :  { %v462_v14 = vld [vmem:[#allocation7 + $0xc0] sm:$0xff]  ;;  %v6976_v16 = vpack.c.bf16 %v467_v8, %v463_v7  ;;  %v464_v17 = vld [vmem:[#allocation7 + $0xd0] sm:$0xff]  ;;  %v6979_v19 = vpack.c.bf16 %v469_v12, %v465_v11  ;;  %v471_v20 = vld [vmem:[#allocation7 + $0x108] sm:$0xff] }
  0x57   :  { %4983 = vmatpush1.bf16.msra.mxu0 %v4982_v36  ;;  %v466_v15 = vld [vmem:[#allocation7 + $0xe0] sm:$0xff]  ;;  %v468_v18 = vld [vmem:[#allocation7 + $0xf0] sm:$0xff]  ;;  %v475_v21 = vld [vmem:[#allocation7 + $0x128] sm:$0xff] }
  0x58   :  { %5015 = vmatpush1.bf16.msra.mxu1 %v5014_v37  ;;  %5017 = vmatprep.subr.bf16.mxu0 %v6930_v38  ;;  %v82_v22 = vld [vmem:[%s8102_s1 + $0x18] sm:$0xff]  ;;  %v6985_v23 = vpack.c.bf16 %v466_v15, %v462_v14  ;;  %v6989_v26 = vpack.c.bf16 %v468_v18, %v464_v17  ;;  %v470_v27 = vld [vmem:[#allocation7 + $0x100] sm:$0xff]  ;;  %v6993_v29 = vpack.c.bf16 %v475_v21, %v471_v20  ;;  %v472_v30 = vld [vmem:[#allocation7 + $0x110] sm:$0xff] }
  0x59   :  { %5049 = vmatprep.subr.bf16.mxu1 %v6932_v41  ;;  %v473_v24 = vld [vmem:[#allocation7 + $0x118] sm:$0xff]  ;;  %v474_v28 = vld [vmem:[#allocation7 + $0x120] sm:$0xff]  ;;  %v476_v31 = vld [vmem:[#allocation7 + $0x130] sm:$0xff] }
  0x5a   :  { %238 = vmatmul.mubr.f32.vlgmr.msra.gmra.mrb[0].mxu0 %v79_v46  ;;  %v477_v25 = vld [vmem:[#allocation7 + $0x138] sm:$0xff]  ;;  %v479_v33 = vld [vmem:[#allocation7 + $0x148] sm:$0xff]  ;;  %v83_v35 = vld [vmem:[%s8102_s1 + $0x20] sm:$0xff]  ;;  %v7002_v36 = vpack.c.bf16 %v474_v28, %v470_v27  ;;  %v7006_v40 = vpack.c.bf16 %v476_v31, %v472_v30  ;;  %v153_v28 = vlaneseq }
  0x5b   :  { %351 = vmatmul.mubr.f32.vlgmr.msra.gmra.mrb[0].mxu1 %v79_v46  ;;  %5019 = vmatpush1.bf16.msra.mxu0 %v6937_v47  ;;  %v6996_v32 = vpack.c.bf16 %v477_v25, %v473_v24  ;;  %v483_v34 = vld [vmem:[#allocation7 + $0x168] sm:$0xff]  ;;  %v481_v37 = vld [vmem:[#allocation7 + $0x158] sm:$0xff]  ;;  %v478_v42 = vld [vmem:[#allocation7 + $0x140] sm:$0xff] }
  0x5c   :  { %5051 = vmatpush1.bf16.msra.mxu1 %v6940_v50  ;;  %243 = vmatprep.mubr.f32.mxu0 %v6624_v0  ;;  %v485_v39 = vld [vmem:[#allocation7 + $0x178] sm:$0xff]  ;;  %v482_v43 = vld [vmem:[#allocation7 + $0x160] sm:$0xff]  ;;  %v7010_v44 = vpack.c.bf16 %v483_v34, %v479_v33  ;;  %v480_v45 = vld [vmem:[#allocation7 + $0x150] sm:$0xff]  ;;  %v7104_v30 = vshrl.u32 %v153_v28, 7 }
  0x5d   :  { %356 = vmatprep.mubr.f32.mxu1 %v6624_v0  ;;  %5021 = vmatprep.subr.bf16.mxu0 %v6943_v53  ;;  %v484_v46 = vld [vmem:[#allocation7 + $0x170] sm:$0xff]  ;;  %v7013_v48 = vpack.c.bf16 %v485_v39, %v481_v37  ;;  %v487_v49 = vld [vmem:[#allocation7 + $0x188] sm:$0xff]  ;;  %v7019_v54 = vpack.c.bf16 %v482_v43, %v478_v42  ;;  %v489_v55 = vld [vmem:[#allocation7 + $0x198] sm:$0xff] }
  0x5e   :  { %244 = vmatmul.mubr.f32.gmra.mrb[2].mxu0 %v80_v59  ;;  %5053 = vmatprep.subr.bf16.mxu1 %v6945_v56  ;;  %v491_v51 = vld [vmem:[#allocation7 + $0x1a8] sm:$0xff]  ;;  %v493_v57 = vld [vmem:[#allocation7 + $0x1b8] sm:$0xff]  ;;  %v7023_v58 = vpack.c.bf16 %v484_v46, %v480_v45  ;;  %v490_v61 = vld [vmem:[#allocation7 + $0x1a0] sm:$0xff]  ;;  %v155_v31 = vsub.s32 0, %v7104_v30  ;;  %v159_v34 = vsub.s32 1, %v7104_v30  ;;  %v167_v37 = vsub.s32 3, %v7104_v30 }
  0x5f   :  { %357 = vmatmul.mubr.f32.gmra.mrb[2].mxu1 %v80_v59  ;;  %5023 = vmatpush1.bf16.msra.mxu0 %v6951_v60  ;;  %v84_v52 = vld [vmem:[%s8102_s1 + $0x28] sm:$0xff]  ;;  %v486_v59 = vld [vmem:[#allocation7 + $0x180] sm:$0xff]  ;;  %v7027_v62 = vpack.c.bf16 %v491_v51, %v487_v49  ;;  %v488_v1 = vld [vmem:[#allocation7 + $0x190] sm:$0xff]  ;;  %v7030_v4 = vpack.c.bf16 %v493_v57, %v489_v55  ;;  %v163_v55 = vsub.s32 2, %v7104_v30 }
  0x60   :  { %5055 = vmatpush1.bf16.msra.mxu1 %v6955_v63  ;;  %249 = vmatprep.mubr.f32.mxu0 %v6624_v0  ;;  %v492_v2 = vld [vmem:[#allocation7 + $0x1b0] sm:$0xff]  ;;  %v495_v5 = vld [vmem:[#allocation7 + $0x1c8] sm:$0xff]  ;;  %v497_v11 = vld [vmem:[#allocation7 + $0x1d8] sm:$0xff] }
  0x61   :  { %362 = vmatprep.mubr.f32.mxu1 %v6624_v0  ;;  %5025 = vmatprep.subr.bf16.mxu0 %v6959_v3  ;;  %v499_v7 = vld [vmem:[#allocation7 + $0x1e8] sm:$0xff]  ;;  %v85_v8 = vld [vmem:[%s8102_s1 + $0x30] sm:$0xff]  ;;  %v501_v12 = vld [vmem:[#allocation7 + $0x1f8] sm:$0xff]  ;;  %v7040_v14 = vpack.c.bf16 %v492_v2, %v488_v1 }
  0x62   :  { %250 = vmatmul.mubr.f32.gmra.mrb[4].mxu0 %v81_v9  ;;  %5057 = vmatprep.subr.bf16.mxu1 %v6962_v6  ;;  %v494_v15 = vld [vmem:[#allocation7 + $0x1c0] sm:$0xff]  ;;  %v7044_v18 = vpack.c.bf16 %v499_v7, %v495_v5  ;;  %v496_v20 = vld [vmem:[#allocation7 + $0x1d0] sm:$0xff]  ;;  %v86_v24 = vld [vmem:[%s8102_s1 + $0x38] sm:$0xff] }
  0x63   :  { %363 = vmatmul.mubr.f32.gmra.mrb[4].mxu1 %v81_v9  ;;  %5027 = vmatpush1.bf16.msra.mxu0 %v6968_v10  ;;  %v7036_v9 = vpack.c.bf16 %v490_v61, %v486_v59  ;;  %v498_v17 = vld [vmem:[#allocation7 + $0x1e0] sm:$0xff]  ;;  %v500_v21 = vld [vmem:[#allocation7 + $0x1f0] sm:$0xff] }
  0x64   :  { %5059 = vmatpush1.bf16.msra.mxu1 %v6972_v13  ;;  %255 = vmatprep.mubr.f32.mxu0 %v6624_v0  ;;  %v7053_v25 = vpack.c.bf16 %v498_v17, %v494_v15  ;;  %v7057_v27 = vpack.c.bf16 %v500_v21, %v496_v20  ;;  %v151_v33 = vld [vmem:[%s8105_s4] sm:$0xf] }
  0x65   :  { %368 = vmatprep.mubr.f32.mxu1 %v6624_v0  ;;  %5029 = vmatprep.subr.bf16.mxu0 %v6976_v16  ;;  %v7130_v59 = vrot.slane %v151_v33, %v163_v55 }
  0x66   :  { %256 = vmatmul.mubr.f32.gmra.mrb[6].mxu0 %v82_v22  ;;  %5061 = vmatprep.subr.bf16.mxu1 %v6979_v19 }
  0x67   :  { %369 = vmatmul.mubr.f32.gmra.mrb[6].mxu1 %v82_v22  ;;  %5031 = vmatpush1.bf16.msra.mxu0 %v6985_v23  ;;  %v7047_v22 = vpack.c.bf16 %v501_v12, %v497_v11 }
  0x68   :  { %5063 = vmatpush1.bf16.msra.mxu1 %v6989_v26  ;;  %261 = vmatprep.mubr.f32.mxu0 %v6624_v0 }
  0x69   :  { %374 = vmatprep.mubr.f32.mxu1 %v6624_v0  ;;  %5033 = vmatprep.subr.bf16.mxu0 %v6993_v29 }
  0x6a   :  { %262 = vmatmul.mubr.f32.gmra.mrb[8].mxu0 %v83_v35  ;;  %5065 = vmatprep.subr.bf16.mxu1 %v6996_v32 }
  0x6b   :  { %375 = vmatmul.mubr.f32.gmra.mrb[8].mxu1 %v83_v35  ;;  %5035 = vmatpush1.bf16.msra.mxu0 %v7002_v36  ;;  %v7113_v35 = vrot.slane %v151_v33, %v155_v31 }
  0x6c   :  { %5067 = vmatpush1.bf16.msra.mxu1 %v7006_v40  ;;  %267 = vmatprep.mubr.f32.mxu0 %v6624_v0 }
  0x6d   :  { %380 = vmatprep.mubr.f32.mxu1 %v6624_v0  ;;  %5037 = vmatprep.subr.bf16.mxu0 %v7010_v44 }
  0x6e   :  { %268 = vmatmul.mubr.f32.gmra.mrb[10].mxu0 %v84_v52  ;;  %5069 = vmatprep.subr.bf16.mxu1 %v7013_v48 }
  0x6f   :  { %381 = vmatmul.mubr.f32.gmra.mrb[10].mxu1 %v84_v52  ;;  %5039 = vmatpush1.bf16.msra.mxu0 %v7019_v54  ;;  %v7124_v52 = vrot.slane %v151_v33, %v167_v37 }
  0x70   :  { %5071 = vmatpush1.bf16.msra.mxu1 %v7023_v58  ;;  %273 = vmatprep.mubr.f32.mxu0 %v6624_v0 }
  0x71   :  { %386 = vmatprep.mubr.f32.mxu1 %v6624_v0  ;;  %5041 = vmatprep.subr.bf16.mxu0 %v7027_v62 }
  0x72   :  { %274 = vmatmul.mubr.f32.gmra.mrb[12].mxu0 %v85_v8  ;;  %5073 = vmatprep.subr.bf16.mxu1 %v7030_v4 }
  0x73   :  { %387 = vmatmul.mubr.f32.gmra.mrb[12].mxu1 %v85_v8  ;;  %5043 = vmatpush1.bf16.msra.mxu0 %v7036_v9 }
  0x74   :  { %5075 = vmatpush1.bf16.msra.mxu1 %v7040_v14  ;;  %279 = vmatprep.mubr.f32.mxu0 %v6624_v0 }
  0x75   :  { %392 = vmatprep.mubr.f32.mxu1 %v6624_v0  ;;  %5045 = vmatprep.subr.bf16.mxu0 %v7044_v18 }
  0x76   :  { %280 = vmatmul.mubr.f32.gmra.mrb[14].mxu0 %v86_v24  ;;  %5077 = vmatprep.subr.bf16.mxu1 %v7047_v22 }
  0x77   :  { %393 = vmatmul.mubr.f32.gmra.mrb[14].mxu1 %v86_v24  ;;  %5047 = vmatpush1.bf16.msra.mxu0 %v7053_v25 }
  0x78   :  { %5079 = vmatpush1.bf16.msra.mxu1 %v7057_v27  ;;  %566 = vmatprep.mubr.f32.mxu0 %v6624_v0 }
  0x79   :  { %637 = vmatprep.mubr.f32.mxu1 %v6624_v0  ;;  %5081 = vmatprep.subr.bf16.mxu0 %v6930_v38 }
  0x7a   :  { %567 = vmatmul.mubr.f32.vlgmr.msra.gmra.mrb[0].mxu0 %v6624_v0  ;;  %5113 = vmatprep.subr.bf16.mxu1 %v6932_v41 }
  0x7b   :  { %638 = vmatmul.mubr.f32.vlgmr.msra.gmra.mrb[0].mxu1 %v6624_v0  ;;  %5083 = vmatpush1.bf16.msra.mxu0 %v6937_v47 }
  0x7c   :  { %5115 = vmatpush1.bf16.msra.mxu1 %v6940_v50  ;;  %5085 = vmatprep.subr.bf16.mxu0 %v6943_v53 }
  0x7d   :  { %5117 = vmatprep.subr.bf16.mxu1 %v6945_v56  ;;  %809 = vmatprep.mubr.f32.mxu0 %v6624_v0 }
  0x7e   :  { %880 = vmatprep.mubr.f32.mxu1 %v6624_v0 }
  0x7f   :  { %5087 = vmatpush1.bf16.msra.mxu0 %v6951_v60 }
  0x80   :  { %5119 = vmatpush1.bf16.msra.mxu1 %v6955_v63  ;;  %5089 = vmatprep.subr.bf16.mxu0 %v6959_v3 }
  0x81   :  { %5121 = vmatprep.subr.bf16.mxu1 %v6962_v6 }
  0x83   :  { %5091 = vmatpush1.bf16.msra.mxu0 %v6968_v10 }
  0x84   :  { %5123 = vmatpush1.bf16.msra.mxu1 %v6972_v13  ;;  %5093 = vmatprep.subr.bf16.mxu0 %v6976_v16 }
  0x85   :  { %5125 = vmatprep.subr.bf16.mxu1 %v6979_v19 }
  0x87   :  { %5095 = vmatpush1.bf16.msra.mxu0 %v6985_v23 }
  0x88   :  { %5127 = vmatpush1.bf16.msra.mxu1 %v6989_v26  ;;  %5097 = vmatprep.subr.bf16.mxu0 %v6993_v29 }
  0x89   :  { %5129 = vmatprep.subr.bf16.mxu1 %v6996_v32 }
  0x8b   :  { %5099 = vmatpush1.bf16.msra.mxu0 %v7002_v36 }
  0x8c   :  { %5131 = vmatpush1.bf16.msra.mxu1 %v7006_v40  ;;  %5101 = vmatprep.subr.bf16.mxu0 %v7010_v44 }
  0x8d   :  { %5133 = vmatprep.subr.bf16.mxu1 %v7013_v48 }
  0x8f   :  { %5103 = vmatpush1.bf16.msra.mxu0 %v7019_v54 }
  0x90   :  { %5135 = vmatpush1.bf16.msra.mxu1 %v7023_v58  ;;  %5105 = vmatprep.subr.bf16.mxu0 %v7027_v62 }
  0x91   :  { %5137 = vmatprep.subr.bf16.mxu1 %v7030_v4 }
  0x93   :  { %5107 = vmatpush1.bf16.msra.mxu0 %v7036_v9 }
  0x94   :  { %5139 = vmatpush1.bf16.msra.mxu1 %v7040_v14  ;;  %5109 = vmatprep.subr.bf16.mxu0 %v7044_v18 }
  0x95   :  { %5141 = vmatprep.subr.bf16.mxu1 %v7047_v22 }
  0x97   :  { %5111 = vmatpush1.bf16.msra.mxu0 %v7053_v25 }
  0x98   :  { %5143 = vmatpush1.bf16.msra.mxu1 %v7057_v27  ;;  %5145 = vmatprep.subr.bf16.mxu0 %v6930_v38  ;;  %v7117_v38 = vrot.slane %v151_v33, %v159_v34 }
  0x99   :  { %5177 = vmatprep.subr.bf16.mxu1 %v6932_v41 }
 0x14d   :  { %v568_v41 = vpop.f32.mrb[0].mxu0 }
 0x14e   :  { %v6128_v39 = vadd.f32 %v568_v41, %v7113_v35  ;;  %v639_v42 = vpop.f32.mrb[0].mxu1  ;;  %v570_v43 = vpop.f32.mrb[1].mxu0 }
 0x14f   :  { %v6129_v45 = vadd.f32 %v570_v43, %v7117_v38  ;;  %v641_v46 = vpop.f32.mrb[1].mxu1  ;;  %v6144_v1 = vadd.f32 %v639_v42, %v7130_v59 }
 0x150   :  { %v4851_v49 = vmul.f32 -1.442695, %v6128_v39  ;;  %v6145_v57 = vadd.f32 %v641_v46, %v7124_v52 }
 0x151   :  { %v4852_v51 = vmul.f32 -1.442695, %v6129_v45 }
 0x152   :  { %6268 = vpow2.f32 %v4851_v49  ;;  %v4853_v61 = vmul.f32 -1.442695, %v6145_v57 }
 0x153   :  { %6270 = vpow2.f32 %v4852_v51 }
 0x154   :  { %6272 = vpow2.f32 %v4853_v61 }
 0x155   :  { %6274 = vtanh.f32 %v6144_v1 }
 0x15c   :  { %v6269_v2 = vpop.eup %6268 }
 0x15d   :  { %v6271_v5 = vpop.eup %6270  ;;  %v651_v7 = vadd.f32 1.0, %v6269_v2 }
 0x15e   :  { %v657_v8 = vadd.f32 1.0, %v6271_v5  ;;  %v6273_v11 = vpop.eup %6272 }
 0x15f   :  { %6276 = vrcp.f32 %v651_v7  ;;  %v6275_v12 = vpop.eup %6274  ;;  %v664_v21 = vadd.f32 1.0, %v6273_v11 }
 0x160   :  { %6278 = vrcp.f32 %v657_v8 }
 0x161   :  { %6280 = vrcp.f32 %v664_v21 }
 0x169   :  { %v6277_v15 = vpop.eup %6276 }
 0x16a   :  { %v6279_v17 = vpop.eup %6278  ;;  %v669_v20 = vmul.f32 %v6277_v15, %v6275_v12 }
 0x16b   :  { %v668_v24 = vmul.f32 0.0, %v6279_v17  ;;  %v6281_v33 = vpop.eup %6280 }
 0x16d   :  { %v7133_v28 = vadd.f32 %v669_v20, %v668_v24 }
 0x16f   :  { %6282 = vtanh.f32 %v7133_v28 }
 0x179   :  { %v6283_v41 = vpop.eup %6282 }
 0x17a   :  { %v7136_v39 = vmul.f32 %v6283_v41, %v6281_v33  ;;  %v1168_v33 = vld [vmem:[#allocation7 + $0x8] sm:$0xff] }
 0x17b   :  { %v1172_v41 = vld [vmem:[#allocation7 + $0x28] sm:$0xff] }
 0x17c   :  { %810 = vmatmul.mubr.f32.vlgmr.msra.gmra.mrb[2].mxu0 %v7136_v39  ;;  %881 = vmatmul.mubr.f32.vlgmr.msra.gmra.mrb[2].mxu1 %v7136_v39 }
 0x17d   :  { %5147 = vmatpush1.bf16.msra.mxu0 %v6937_v47  ;;  %5179 = vmatpush1.bf16.msra.mxu1 %v6940_v50 }
 0x17e   :  { %5149 = vmatprep.subr.bf16.mxu0 %v6943_v53  ;;  %5181 = vmatprep.subr.bf16.mxu1 %v6945_v56 }
 0x17f   :  { %1052 = vmatprep.mubr.f32.mxu0 %v6624_v0  ;;  %1123 = vmatprep.mubr.f32.mxu1 %v6624_v0 }
 0x181   :  { %5151 = vmatpush1.bf16.msra.mxu0 %v6951_v60  ;;  %5183 = vmatpush1.bf16.msra.mxu1 %v6955_v63 }
 0x182   :  { %5153 = vmatprep.subr.bf16.mxu0 %v6959_v3  ;;  %5185 = vmatprep.subr.bf16.mxu1 %v6962_v6 }
 0x185   :  { %5155 = vmatpush1.bf16.msra.mxu0 %v6968_v10  ;;  %5187 = vmatpush1.bf16.msra.mxu1 %v6972_v13 }
 0x186   :  { %5157 = vmatprep.subr.bf16.mxu0 %v6976_v16  ;;  %5189 = vmatprep.subr.bf16.mxu1 %v6979_v19 }
 0x189   :  { %5159 = vmatpush1.bf16.msra.mxu0 %v6985_v23  ;;  %5191 = vmatpush1.bf16.msra.mxu1 %v6989_v26 }
 0x18a   :  { %5161 = vmatprep.subr.bf16.mxu0 %v6993_v29  ;;  %5193 = vmatprep.subr.bf16.mxu1 %v6996_v32 }
 0x18d   :  { %5163 = vmatpush1.bf16.msra.mxu0 %v7002_v36  ;;  %5195 = vmatpush1.bf16.msra.mxu1 %v7006_v40 }
 0x18e   :  { %5165 = vmatprep.subr.bf16.mxu0 %v7010_v44  ;;  %5197 = vmatprep.subr.bf16.mxu1 %v7013_v48 }
 0x191   :  { %5167 = vmatpush1.bf16.msra.mxu0 %v7019_v54  ;;  %5199 = vmatpush1.bf16.msra.mxu1 %v7023_v58 }
 0x192   :  { %5169 = vmatprep.subr.bf16.mxu0 %v7027_v62  ;;  %5201 = vmatprep.subr.bf16.mxu1 %v7030_v4 }
 0x195   :  { %5171 = vmatpush1.bf16.msra.mxu0 %v7036_v9  ;;  %5203 = vmatpush1.bf16.msra.mxu1 %v7040_v14 }
 0x196   :  { %5173 = vmatprep.subr.bf16.mxu0 %v7044_v18  ;;  %5205 = vmatprep.subr.bf16.mxu1 %v7047_v22 }
 0x199   :  { %5175 = vmatpush1.bf16.msra.mxu0 %v7053_v25  ;;  %5207 = vmatpush1.bf16.msra.mxu1 %v7057_v27 }
 0x24f   :  { %v811_v47 = vpop.f32.mrb[2].mxu0  ;;  %v882_v50 = vpop.f32.mrb[2].mxu1 }
 0x250   :  { %v6130_v53 = vadd.f32 %v811_v47, %v7113_v35  ;;  %v813_v56 = vpop.f32.mrb[3].mxu0  ;;  %v884_v60 = vpop.f32.mrb[3].mxu1  ;;  %v6146_v49 = vadd.f32 %v882_v50, %v7130_v59  ;;  %v7186_v47 = vpack.c.bf16 %v1172_v41, %v1168_v33  ;;  %v1174_v50 = vld [vmem:[#allocation7 + $0x38] sm:$0xff] }
 0x251   :  { %v6131_v63 = vadd.f32 %v813_v56, %v7117_v38  ;;  %v6147_v45 = vadd.f32 %v884_v60, %v7124_v52  ;;  %v1171_v56 = vld [vmem:[#allocation7 + $0x20] sm:$0xff]  ;;  %v1429_v33 = vld [vmem:[#allocation7 + $0x98] sm:$0xff] }
 0x252   :  { %v4854_v42 = vmul.f32 -1.442695, %v6130_v53  ;;  %v1167_v53 = vld [vmem:[#allocation7] sm:$0xff]  ;;  %5209 = vmatprep.subr.bf16.mxu0 %v7186_v47 }
 0x253   :  { %v4855_v43 = vmul.f32 -1.442695, %v6131_v63  ;;  %v4856_v46 = vmul.f32 -1.442695, %v6147_v45  ;;  %v7190_v63 = vpack.c.bf16 %v1171_v56, %v1167_v53  ;;  %v1430_v53 = vld [vmem:[#allocation7 + $0xa0] sm:$0xff] }
 0x254   :  { %6284 = vpow2.f32 %v4854_v42  ;;  %v1169_v42 = vld [vmem:[#allocation7 + $0x10] sm:$0xff] }
 0x255   :  { %6286 = vpow2.f32 %v4855_v43  ;;  %v1173_v43 = vld [vmem:[#allocation7 + $0x30] sm:$0xff] }
 0x256   :  { %6288 = vpow2.f32 %v4856_v46  ;;  %v7193_v45 = vpack.c.bf16 %v1173_v43, %v1169_v42  ;;  %v1176_v46 = vld [vmem:[#allocation7 + $0x48] sm:$0xff]  ;;  %v1428_v43 = vld [vmem:[#allocation7 + $0x90] sm:$0xff] }
 0x257   :  { %6290 = vtanh.f32 %v6146_v49  ;;  %v1180_v49 = vld [vmem:[#allocation7 + $0x68] sm:$0xff] }
 0x25e   :  { %v6285_v51 = vpop.eup %6284 }
 0x25f   :  { %v6287_v57 = vpop.eup %6286  ;;  %v894_v61 = vadd.f32 1.0, %v6285_v51  ;;  %v1178_v51 = vld [vmem:[#allocation7 + $0x58] sm:$0xff] }
 0x260   :  { %v900_v1 = vadd.f32 1.0, %v6287_v57  ;;  %v6289_v2 = vpop.eup %6288  ;;  %v7198_v57 = vpack.c.bf16 %v1180_v49, %v1176_v46  ;;  %v1432_v46 = vld [vmem:[#allocation7 + $0xb0] sm:$0xff] }
 0x261   :  { %6292 = vrcp.f32 %v894_v61  ;;  %v6291_v5 = vpop.eup %6290  ;;  %v907_v12 = vadd.f32 1.0, %v6289_v2  ;;  %v1182_v61 = vld [vmem:[#allocation7 + $0x78] sm:$0xff]  ;;  %v1179_v2 = vld [vmem:[#allocation7 + $0x60] sm:$0xff]  ;;  %v7263_v49 = vpack.c.bf16 %v1432_v46, %v1428_v43  ;;  %v1463_v46 = vld [vmem:[#allocation7 + $0x1a8] sm:$0xff] }
 0x262   :  { %6294 = vrcp.f32 %v900_v1  ;;  %v1175_v1 = vld [vmem:[#allocation7 + $0x40] sm:$0xff] }
 0x263   :  { %6296 = vrcp.f32 %v907_v12 }
 0x26b   :  { %v6293_v7 = vpop.eup %6292 }
 0x26c   :  { %v6295_v8 = vpop.eup %6294  ;;  %v912_v11 = vmul.f32 %v6293_v7, %v6291_v5  ;;  %v7200_v5 = vpack.c.bf16 %v1182_v61, %v1178_v51  ;;  %v7202_v7 = vpack.c.bf16 %v1179_v2, %v1175_v1  ;;  %v1435_v51 = vld [vmem:[#allocation7 + $0xc8] sm:$0xff]  ;;  %v1437_v1 = vld [vmem:[#allocation7 + $0xd8] sm:$0xff] }
 0x26d   :  { %v911_v15 = vmul.f32 %v6295_v8, %v7133_v28  ;;  %v6297_v20 = vpop.eup %6296  ;;  %v1170_v28 = vld [vmem:[#allocation7 + $0x18] sm:$0xff]  ;;  %v1177_v8 = vld [vmem:[#allocation7 + $0x50] sm:$0xff]  ;;  %v1439_v61 = vld [vmem:[#allocation7 + $0xe8] sm:$0xff] }
 0x26e   :  { %v7188_v60 = vpack.c.bf16 %v1174_v50, %v1170_v28  ;;  %v1433_v28 = vld [vmem:[#allocation7 + $0xb8] sm:$0xff]  ;;  %v1426_v50 = vld [vmem:[#allocation7 + $0x80] sm:$0xff]  ;;  %v7268_v2 = vpack.c.bf16 %v1439_v61, %v1435_v51 }
 0x26f   :  { %v7177_v17 = vadd.f32 %v912_v11, %v911_v15  ;;  %v1181_v11 = vld [vmem:[#allocation7 + $0x70] sm:$0xff]  ;;  %v7258_v56 = vpack.c.bf16 %v1433_v28, %v1429_v33  ;;  %v7260_v42 = vpack.c.bf16 %v1430_v53, %v1426_v50  ;;  %v1459_v53 = vld [vmem:[#allocation7 + $0x188] sm:$0xff]  ;;  %v1461_v51 = vld [vmem:[#allocation7 + $0x198] sm:$0xff] }
 0x270   :  { %5241 = vmatprep.subr.bf16.mxu1 %v7188_v60  ;;  %v7205_v12 = vpack.c.bf16 %v1181_v11, %v1177_v8  ;;  %v1441_v8 = vld [vmem:[#allocation7 + $0xf8] sm:$0xff]  ;;  %v1434_v11 = vld [vmem:[#allocation7 + $0xc0] sm:$0xff]  ;;  %v1452_v28 = vld [vmem:[#allocation7 + $0x150] sm:$0xff] }
 0x271   :  { %6298 = vtanh.f32 %v7177_v17  ;;  %v1456_v50 = vld [vmem:[#allocation7 + $0x170] sm:$0xff]  ;;  %v1465_v61 = vld [vmem:[#allocation7 + $0x1b8] sm:$0xff] }
 0x272   :  { %v7299_v43 = vpack.c.bf16 %v1456_v50, %v1452_v28 }
 0x27b   :  { %v6299_v21 = vpop.eup %6298 }
 0x27c   :  { %v7180_v24 = vmul.f32 %v6299_v21, %v6297_v20  ;;  %v1431_v21 = vld [vmem:[#allocation7 + $0xa8] sm:$0xff] }
 0x27e   :  { %1053 = vmatmul.mubr.f32.vlgmr.msra.gmra.mrb[4].mxu0 %v7180_v24  ;;  %1124 = vmatmul.mubr.f32.vlgmr.msra.gmra.mrb[4].mxu1 %v7180_v24 }
 0x27f   :  { %1295 = vmatprep.mubr.f32.mxu0 %v6624_v0  ;;  %1366 = vmatprep.mubr.f32.mxu1 %v6624_v0 }
 0x280   :  { %5211 = vmatpush1.bf16.msra.mxu0 %v7190_v63  ;;  %5243 = vmatpush1.bf16.msra.mxu1 %v7193_v45 }
 0x281   :  { %5213 = vmatprep.subr.bf16.mxu0 %v7198_v57  ;;  %5245 = vmatprep.subr.bf16.mxu1 %v7200_v5 }
 0x284   :  { %5215 = vmatpush1.bf16.msra.mxu0 %v7202_v7  ;;  %5247 = vmatpush1.bf16.msra.mxu1 %v7205_v12 }
 0x285   :  { %5217 = vmatprep.subr.bf16.mxu0 %v6959_v3  ;;  %5249 = vmatprep.subr.bf16.mxu1 %v6962_v6 }
 0x288   :  { %5219 = vmatpush1.bf16.msra.mxu0 %v6968_v10  ;;  %5251 = vmatpush1.bf16.msra.mxu1 %v6972_v13 }
 0x289   :  { %5221 = vmatprep.subr.bf16.mxu0 %v6976_v16  ;;  %5253 = vmatprep.subr.bf16.mxu1 %v6979_v19 }
 0x28c   :  { %5223 = vmatpush1.bf16.msra.mxu0 %v6985_v23  ;;  %5255 = vmatpush1.bf16.msra.mxu1 %v6989_v26 }
 0x28d   :  { %5225 = vmatprep.subr.bf16.mxu0 %v6993_v29  ;;  %5257 = vmatprep.subr.bf16.mxu1 %v6996_v32 }
 0x290   :  { %5227 = vmatpush1.bf16.msra.mxu0 %v7002_v36  ;;  %5259 = vmatpush1.bf16.msra.mxu1 %v7006_v40 }
 0x291   :  { %5229 = vmatprep.subr.bf16.mxu0 %v7010_v44  ;;  %5261 = vmatprep.subr.bf16.mxu1 %v7013_v48 }
 0x294   :  { %5231 = vmatpush1.bf16.msra.mxu0 %v7019_v54  ;;  %5263 = vmatpush1.bf16.msra.mxu1 %v7023_v58 }
 0x295   :  { %5233 = vmatprep.subr.bf16.mxu0 %v7027_v62  ;;  %5265 = vmatprep.subr.bf16.mxu1 %v7030_v4 }
 0x298   :  { %5235 = vmatpush1.bf16.msra.mxu0 %v7036_v9  ;;  %5267 = vmatpush1.bf16.msra.mxu1 %v7040_v14 }
 0x299   :  { %5237 = vmatprep.subr.bf16.mxu0 %v7044_v18  ;;  %5269 = vmatprep.subr.bf16.mxu1 %v7047_v22 }
 0x29c   :  { %5239 = vmatpush1.bf16.msra.mxu0 %v7053_v25  ;;  %5271 = vmatpush1.bf16.msra.mxu1 %v7057_v27 }
 0x29d   :  { %5273 = vmatprep.subr.bf16.mxu0 %v7186_v47  ;;  %5305 = vmatprep.subr.bf16.mxu1 %v7188_v60 }
 0x351   :  { %v1054_v3 = vpop.f32.mrb[4].mxu0  ;;  %v1125_v6 = vpop.f32.mrb[4].mxu1 }
 0x352   :  { %v6132_v10 = vadd.f32 %v1054_v3, %v7113_v35  ;;  %v1056_v13 = vpop.f32.mrb[5].mxu0  ;;  %v1127_v16 = vpop.f32.mrb[5].mxu1  ;;  %v6148_v36 = vadd.f32 %v1125_v6, %v7130_v59  ;;  %v1438_v3 = vld [vmem:[#allocation7 + $0xe0] sm:$0xff]  ;;  %v7270_v6 = vpack.c.bf16 %v1441_v8, %v1437_v1  ;;  %v7302_v1 = vpack.c.bf16 %v1463_v46, %v1459_v53 }
 0x353   :  { %v6133_v19 = vadd.f32 %v1056_v13, %v7117_v38  ;;  %v6149_v29 = vadd.f32 %v1127_v16, %v7124_v52  ;;  %v1436_v13 = vld [vmem:[#allocation7 + $0xd0] sm:$0xff]  ;;  %v7304_v8 = vpack.c.bf16 %v1465_v61, %v1461_v51 }
 0x354   :  { %v4857_v23 = vmul.f32 -1.442695, %v6132_v10  ;;  %v7272_v10 = vpack.c.bf16 %v1438_v3, %v1434_v11  ;;  %v1440_v16 = vld [vmem:[#allocation7 + $0xf0] sm:$0xff]  ;;  %v1458_v11 = vld [vmem:[#allocation7 + $0x180] sm:$0xff] }
 0x355   :  { %v4858_v26 = vmul.f32 -1.442695, %v6133_v19  ;;  %v4859_v32 = vmul.f32 -1.442695, %v6149_v29  ;;  %v7275_v19 = vpack.c.bf16 %v1440_v16, %v1436_v13  ;;  %v1445_v29 = vld [vmem:[#allocation7 + $0x118] sm:$0xff]  ;;  %v1462_v3 = vld [vmem:[#allocation7 + $0x1a0] sm:$0xff] }
 0x356   :  { %6300 = vpow2.f32 %v4857_v23  ;;  %v1443_v23 = vld [vmem:[#allocation7 + $0x108] sm:$0xff]  ;;  %v1460_v13 = vld [vmem:[#allocation7 + $0x190] sm:$0xff]  ;;  %v7307_v16 = vpack.c.bf16 %v1462_v3, %v1458_v11 }
 0x357   :  { %6302 = vpow2.f32 %v4858_v26  ;;  %v1447_v26 = vld [vmem:[#allocation7 + $0x128] sm:$0xff] }
 0x358   :  { %6304 = vpow2.f32 %v4859_v32  ;;  %v7280_v32 = vpack.c.bf16 %v1447_v26, %v1443_v23  ;;  %v1464_v23 = vld [vmem:[#allocation7 + $0x1b0] sm:$0xff]  ;;  %v1467_v26 = vld [vmem:[#allocation7 + $0x1c8] sm:$0xff] }
 0x359   :  { %6306 = vtanh.f32 %v6148_v36  ;;  %v1449_v36 = vld [vmem:[#allocation7 + $0x138] sm:$0xff] }
 0x360   :  { %v6301_v40 = vpop.eup %6300 }
 0x361   :  { %v6303_v44 = vpop.eup %6302  ;;  %v1137_v48 = vadd.f32 1.0, %v6301_v40  ;;  %v1442_v40 = vld [vmem:[#allocation7 + $0x100] sm:$0xff] }
 0x362   :  { %v1143_v54 = vadd.f32 1.0, %v6303_v44  ;;  %v6305_v58 = vpop.eup %6304  ;;  %v1446_v44 = vld [vmem:[#allocation7 + $0x120] sm:$0xff] }
 0x363   :  { %6308 = vrcp.f32 %v1137_v48  ;;  %v6307_v62 = vpop.eup %6306  ;;  %v1150_v18 = vadd.f32 1.0, %v6305_v58  ;;  %v7282_v48 = vpack.c.bf16 %v1449_v36, %v1445_v29  ;;  %v1444_v58 = vld [vmem:[#allocation7 + $0x110] sm:$0xff]  ;;  %v1471_v29 = vld [vmem:[#allocation7 + $0x1e8] sm:$0xff]  ;;  %v7311_v36 = vpack.c.bf16 %v1464_v23, %v1460_v13 }
 0x364   :  { %6310 = vrcp.f32 %v1143_v54  ;;  %v7284_v54 = vpack.c.bf16 %v1446_v44, %v1442_v40  ;;  %v7313_v40 = vpack.c.bf16 %v1471_v29, %v1467_v26  ;;  %v1469_v44 = vld [vmem:[#allocation7 + $0x1d8] sm:$0xff] }
 0x365   :  { %6312 = vrcp.f32 %v1150_v18  ;;  %v1453_v18 = vld [vmem:[#allocation7 + $0x158] sm:$0xff] }
 0x36d   :  { %v6309_v4 = vpop.eup %6308 }
 0x36e   :  { %v6311_v9 = vpop.eup %6310  ;;  %v1155_v14 = vmul.f32 %v6309_v4, %v6307_v62  ;;  %v1448_v62 = vld [vmem:[#allocation7 + $0x130] sm:$0xff] }
 0x36f   :  { %v1154_v22 = vmul.f32 %v6311_v9, %v7177_v17  ;;  %v6313_v27 = vpop.eup %6312  ;;  %v1427_v17 = vld [vmem:[#allocation7 + $0x88] sm:$0xff]  ;;  %v7287_v4 = vpack.c.bf16 %v1448_v62, %v1444_v58  ;;  %v1473_v58 = vld [vmem:[#allocation7 + $0x1f8] sm:$0xff]  ;;  %v1466_v62 = vld [vmem:[#allocation7 + $0x1c0] sm:$0xff] }
 0x370   :  { %v7256_v41 = vpack.c.bf16 %v1431_v21, %v1427_v17  ;;  %v1451_v9 = vld [vmem:[#allocation7 + $0x148] sm:$0xff]  ;;  %v1454_v17 = vld [vmem:[#allocation7 + $0x160] sm:$0xff] }
 0x371   :  { %v7241_v25 = vadd.f32 %v1155_v14, %v1154_v22  ;;  %v1455_v14 = vld [vmem:[#allocation7 + $0x168] sm:$0xff] }
 0x372   :  { %v7291_v22 = vpack.c.bf16 %v1455_v14, %v1451_v9  ;;  %v7316_v9 = vpack.c.bf16 %v1473_v58, %v1469_v44  ;;  %v1470_v14 = vld [vmem:[#allocation7 + $0x1e0] sm:$0xff] }
 0x373   :  { %6314 = vtanh.f32 %v7241_v25 }
 0x37d   :  { %v6315_v15 = vpop.eup %6314 }
 0x37e   :  { %v7244_v20 = vmul.f32 %v6315_v15, %v6313_v27  ;;  %v1457_v27 = vld [vmem:[#allocation7 + $0x178] sm:$0xff]  ;;  %v1450_v15 = vld [vmem:[#allocation7 + $0x140] sm:$0xff] }
 0x37f   :  { %v7294_v21 = vpack.c.bf16 %v1457_v27, %v1453_v18  ;;  %v7296_v33 = vpack.c.bf16 %v1454_v17, %v1450_v15  ;;  %v1468_v18 = vld [vmem:[#allocation7 + $0x1d0] sm:$0xff]  ;;  %v7319_v15 = vpack.c.bf16 %v1470_v14, %v1466_v62 }
 0x380   :  { %1296 = vmatmul.mubr.f32.vlgmr.msra.gmra.mrb[6].mxu0 %v7244_v20  ;;  %1367 = vmatmul.mubr.f32.vlgmr.msra.gmra.mrb[6].mxu1 %v7244_v20  ;;  %v1472_v27 = vld [vmem:[#allocation7 + $0x1f0] sm:$0xff] }
 0x381   :  { %5275 = vmatpush1.bf16.msra.mxu0 %v7190_v63  ;;  %5307 = vmatpush1.bf16.msra.mxu1 %v7193_v45  ;;  %v7323_v17 = vpack.c.bf16 %v1472_v27, %v1468_v18 }
 0x382   :  { %5277 = vmatprep.subr.bf16.mxu0 %v7198_v57  ;;  %5309 = vmatprep.subr.bf16.mxu1 %v7200_v5 }
 0x383   :  { %1538 = vmatprep.mubr.f32.mxu0 %v6624_v0  ;;  %1609 = vmatprep.mubr.f32.mxu1 %v6624_v0 }
 0x385   :  { %5279 = vmatpush1.bf16.msra.mxu0 %v7202_v7  ;;  %5311 = vmatpush1.bf16.msra.mxu1 %v7205_v12 }
 0x386   :  { %5281 = vmatprep.subr.bf16.mxu0 %v7256_v41  ;;  %5313 = vmatprep.subr.bf16.mxu1 %v7258_v56 }
 0x389   :  { %5283 = vmatpush1.bf16.msra.mxu0 %v7260_v42  ;;  %5315 = vmatpush1.bf16.msra.mxu1 %v7263_v49 }
 0x38a   :  { %5285 = vmatprep.subr.bf16.mxu0 %v7268_v2  ;;  %5317 = vmatprep.subr.bf16.mxu1 %v7270_v6 }
 0x38d   :  { %5287 = vmatpush1.bf16.msra.mxu0 %v7272_v10  ;;  %5319 = vmatpush1.bf16.msra.mxu1 %v7275_v19 }
 0x38e   :  { %5289 = vmatprep.subr.bf16.mxu0 %v7280_v32  ;;  %5321 = vmatprep.subr.bf16.mxu1 %v7282_v48 }
 0x391   :  { %5291 = vmatpush1.bf16.msra.mxu0 %v7284_v54  ;;  %5323 = vmatpush1.bf16.msra.mxu1 %v7287_v4 }
 0x392   :  { %5293 = vmatprep.subr.bf16.mxu0 %v7291_v22  ;;  %5325 = vmatprep.subr.bf16.mxu1 %v7294_v21 }
 0x395   :  { %5295 = vmatpush1.bf16.msra.mxu0 %v7296_v33  ;;  %5327 = vmatpush1.bf16.msra.mxu1 %v7299_v43 }
 0x396   :  { %5297 = vmatprep.subr.bf16.mxu0 %v7302_v1  ;;  %5329 = vmatprep.subr.bf16.mxu1 %v7304_v8 }
 0x399   :  { %5299 = vmatpush1.bf16.msra.mxu0 %v7307_v16  ;;  %5331 = vmatpush1.bf16.msra.mxu1 %v7311_v36 }
 0x39a   :  { %5301 = vmatprep.subr.bf16.mxu0 %v7313_v40  ;;  %5333 = vmatprep.subr.bf16.mxu1 %v7316_v9 }
 0x39d   :  { %5303 = vmatpush1.bf16.msra.mxu0 %v7319_v15  ;;  %5335 = vmatpush1.bf16.msra.mxu1 %v7323_v17 }
 0x39e   :  { %5337 = vmatprep.subr.bf16.mxu0 %v7186_v47  ;;  %5369 = vmatprep.subr.bf16.mxu1 %v7188_v60 }
 0x453   :  { %v1297_v28 = vpop.f32.mrb[6].mxu0  ;;  %v1368_v50 = vpop.f32.mrb[6].mxu1 }
 0x454   :  { %v6134_v53 = vadd.f32 %v1297_v28, %v7113_v35  ;;  %v1299_v46 = vpop.f32.mrb[7].mxu0  ;;  %v1370_v51 = vpop.f32.mrb[7].mxu1  ;;  %v6150_v26 = vadd.f32 %v1368_v50, %v7130_v59 }
 0x455   :  { %v6135_v61 = vadd.f32 %v1299_v46, %v7117_v38  ;;  %v6151_v13 = vadd.f32 %v1370_v51, %v7124_v52 }
 0x456   :  { %v4860_v11 = vmul.f32 -1.442695, %v6134_v53 }
 0x457   :  { %v4861_v3 = vmul.f32 -1.442695, %v6135_v61  ;;  %v4862_v23 = vmul.f32 -1.442695, %v6151_v13 }
 0x458   :  { %6316 = vpow2.f32 %v4860_v11 }
 0x459   :  { %6318 = vpow2.f32 %v4861_v3 }
 0x45a   :  { %6320 = vpow2.f32 %v4862_v23 }
 0x45b   :  { %6322 = vtanh.f32 %v6150_v26 }
 0x462   :  { %v6317_v29 = vpop.eup %6316 }
 0x463   :  { %v6319_v44 = vpop.eup %6318  ;;  %v1380_v58 = vadd.f32 1.0, %v6317_v29 }
 0x464   :  { %v1386_v62 = vadd.f32 1.0, %v6319_v44  ;;  %v6321_v14 = vpop.eup %6320 }
 0x465   :  { %6324 = vrcp.f32 %v1380_v58  ;;  %v6323_v18 = vpop.eup %6322  ;;  %v1393_v46 = vadd.f32 1.0, %v6321_v14 }
 0x466   :  { %6326 = vrcp.f32 %v1386_v62 }
 0x467   :  { %6328 = vrcp.f32 %v1393_v46 }
 0x46f   :  { %v6325_v27 = vpop.eup %6324 }
 0x470   :  { %v6327_v28 = vpop.eup %6326  ;;  %v1398_v53 = vmul.f32 %v6325_v27, %v6323_v18 }
 0x471   :  { %v1397_v61 = vmul.f32 %v6327_v28, %v7241_v25  ;;  %v6329_v50 = vpop.eup %6328 }
 0x473   :  { %v7335_v51 = vadd.f32 %v1398_v53, %v1397_v61 }
 0x475   :  { %6330 = vtanh.f32 %v7335_v51 }
 0x47f   :  { %v6331_v11 = vpop.eup %6330 }
 0x480   :  { %v7338_v3 = vmul.f32 %v6331_v11, %v6329_v50 }
 0x482   :  { %1539 = vmatmul.mubr.f32.vlgmr.msra.gmra.mrb[8].mxu0 %v7338_v3  ;;  %1610 = vmatmul.mubr.f32.vlgmr.msra.gmra.mrb[8].mxu1 %v7338_v3 }
 0x483   :  { %5339 = vmatpush1.bf16.msra.mxu0 %v7190_v63  ;;  %5371 = vmatpush1.bf16.msra.mxu1 %v7193_v45 }
 0x484   :  { %5341 = vmatprep.subr.bf16.mxu0 %v7198_v57  ;;  %5373 = vmatprep.subr.bf16.mxu1 %v7200_v5 }
 0x485   :  { %1781 = vmatprep.mubr.f32.mxu0 %v6624_v0  ;;  %1852 = vmatprep.mubr.f32.mxu1 %v6624_v0 }
 0x487   :  { %5343 = vmatpush1.bf16.msra.mxu0 %v7202_v7  ;;  %5375 = vmatpush1.bf16.msra.mxu1 %v7205_v12 }
 0x488   :  { %5345 = vmatprep.subr.bf16.mxu0 %v7256_v41  ;;  %5377 = vmatprep.subr.bf16.mxu1 %v7258_v56 }
 0x48b   :  { %5347 = vmatpush1.bf16.msra.mxu0 %v7260_v42  ;;  %5379 = vmatpush1.bf16.msra.mxu1 %v7263_v49 }
 0x48c   :  { %5349 = vmatprep.subr.bf16.mxu0 %v7268_v2  ;;  %5381 = vmatprep.subr.bf16.mxu1 %v7270_v6 }
 0x48f   :  { %5351 = vmatpush1.bf16.msra.mxu0 %v7272_v10  ;;  %5383 = vmatpush1.bf16.msra.mxu1 %v7275_v19 }
 0x490   :  { %5353 = vmatprep.subr.bf16.mxu0 %v7280_v32  ;;  %5385 = vmatprep.subr.bf16.mxu1 %v7282_v48 }
 0x493   :  { %5355 = vmatpush1.bf16.msra.mxu0 %v7284_v54  ;;  %5387 = vmatpush1.bf16.msra.mxu1 %v7287_v4 }
 0x494   :  { %5357 = vmatprep.subr.bf16.mxu0 %v7291_v22  ;;  %5389 = vmatprep.subr.bf16.mxu1 %v7294_v21 }
 0x497   :  { %5359 = vmatpush1.bf16.msra.mxu0 %v7296_v33  ;;  %5391 = vmatpush1.bf16.msra.mxu1 %v7299_v43 }
 0x498   :  { %5361 = vmatprep.subr.bf16.mxu0 %v7302_v1  ;;  %5393 = vmatprep.subr.bf16.mxu1 %v7304_v8 }
 0x49b   :  { %5363 = vmatpush1.bf16.msra.mxu0 %v7307_v16  ;;  %5395 = vmatpush1.bf16.msra.mxu1 %v7311_v36 }
 0x49c   :  { %5365 = vmatprep.subr.bf16.mxu0 %v7313_v40  ;;  %5397 = vmatprep.subr.bf16.mxu1 %v7316_v9 }
 0x49f   :  { %5367 = vmatpush1.bf16.msra.mxu0 %v7319_v15  ;;  %5399 = vmatpush1.bf16.msra.mxu1 %v7323_v17 }
 0x4a0   :  { %5401 = vmatprep.subr.bf16.mxu0 %v7186_v47  ;;  %5433 = vmatprep.subr.bf16.mxu1 %v7188_v60 }
 0x555   :  { %v1540_v25 = vpop.f32.mrb[8].mxu0  ;;  %v1611_v13 = vpop.f32.mrb[8].mxu1 }
 0x556   :  { %v6136_v23 = vadd.f32 %v1540_v25, %v7113_v35  ;;  %v1542_v26 = vpop.f32.mrb[9].mxu0  ;;  %v1613_v29 = vpop.f32.mrb[9].mxu1  ;;  %v6152_v27 = vadd.f32 %v1611_v13, %v7130_v59 }
 0x557   :  { %v6137_v44 = vadd.f32 %v1542_v26, %v7117_v38  ;;  %v6153_v14 = vadd.f32 %v1613_v29, %v7124_v52 }
 0x558   :  { %v4863_v58 = vmul.f32 -1.442695, %v6136_v23 }
 0x559   :  { %v4864_v62 = vmul.f32 -1.442695, %v6137_v44  ;;  %v4865_v18 = vmul.f32 -1.442695, %v6153_v14 }
 0x55a   :  { %6332 = vpow2.f32 %v4863_v58 }
 0x55b   :  { %6334 = vpow2.f32 %v4864_v62 }
 0x55c   :  { %6336 = vpow2.f32 %v4865_v18 }
 0x55d   :  { %6338 = vtanh.f32 %v6152_v27 }
 0x564   :  { %v6333_v47 = vpop.eup %6332 }
 0x565   :  { %v6335_v28 = vpop.eup %6334  ;;  %v1623_v60 = vadd.f32 1.0, %v6333_v47 }
 0x566   :  { %v1629_v53 = vadd.f32 1.0, %v6335_v28  ;;  %v6337_v46 = vpop.eup %6336 }
 0x567   :  { %6340 = vrcp.f32 %v1623_v60  ;;  %v6339_v61 = vpop.eup %6338  ;;  %v1636_v23 = vadd.f32 1.0, %v6337_v46 }
 0x568   :  { %6342 = vrcp.f32 %v1629_v53 }
 0x569   :  { %6344 = vrcp.f32 %v1636_v23 }
 0x571   :  { %v6341_v50 = vpop.eup %6340 }
 0x572   :  { %v6343_v11 = vpop.eup %6342  ;;  %v1641_v25 = vmul.f32 %v6341_v50, %v6339_v61 }
 0x573   :  { %v1640_v26 = vmul.f32 %v6343_v11, %v7335_v51  ;;  %v6345_v13 = vpop.eup %6344 }
 0x575   :  { %v7381_v29 = vadd.f32 %v1641_v25, %v1640_v26 }
 0x577   :  { %6346 = vtanh.f32 %v7381_v29 }
 0x581   :  { %v6347_v44 = vpop.eup %6346 }
 0x582   :  { %v7384_v58 = vmul.f32 %v6347_v44, %v6345_v13 }
 0x584   :  { %1782 = vmatmul.mubr.f32.vlgmr.msra.gmra.mrb[10].mxu0 %v7384_v58  ;;  %1853 = vmatmul.mubr.f32.vlgmr.msra.gmra.mrb[10].mxu1 %v7384_v58 }
 0x585   :  { %5403 = vmatpush1.bf16.msra.mxu0 %v7190_v63  ;;  %5435 = vmatpush1.bf16.msra.mxu1 %v7193_v45 }
 0x586   :  { %5405 = vmatprep.subr.bf16.mxu0 %v7198_v57  ;;  %5437 = vmatprep.subr.bf16.mxu1 %v7200_v5 }
 0x587   :  { %2024 = vmatprep.mubr.f32.mxu0 %v6624_v0  ;;  %2095 = vmatprep.mubr.f32.mxu1 %v6624_v0 }
 0x589   :  { %5407 = vmatpush1.bf16.msra.mxu0 %v7202_v7  ;;  %5439 = vmatpush1.bf16.msra.mxu1 %v7205_v12 }
 0x58a   :  { %5409 = vmatprep.subr.bf16.mxu0 %v7256_v41  ;;  %5441 = vmatprep.subr.bf16.mxu1 %v7258_v56 }
 0x58d   :  { %5411 = vmatpush1.bf16.msra.mxu0 %v7260_v42  ;;  %5443 = vmatpush1.bf16.msra.mxu1 %v7263_v49 }
 0x58e   :  { %5413 = vmatprep.subr.bf16.mxu0 %v7268_v2  ;;  %5445 = vmatprep.subr.bf16.mxu1 %v7270_v6 }
 0x591   :  { %5415 = vmatpush1.bf16.msra.mxu0 %v7272_v10  ;;  %5447 = vmatpush1.bf16.msra.mxu1 %v7275_v19 }
 0x592   :  { %5417 = vmatprep.subr.bf16.mxu0 %v7280_v32  ;;  %5449 = vmatprep.subr.bf16.mxu1 %v7282_v48 }
 0x595   :  { %5419 = vmatpush1.bf16.msra.mxu0 %v7284_v54  ;;  %5451 = vmatpush1.bf16.msra.mxu1 %v7287_v4 }
 0x596   :  { %5421 = vmatprep.subr.bf16.mxu0 %v7291_v22  ;;  %5453 = vmatprep.subr.bf16.mxu1 %v7294_v21 }
 0x599   :  { %5423 = vmatpush1.bf16.msra.mxu0 %v7296_v33  ;;  %5455 = vmatpush1.bf16.msra.mxu1 %v7299_v43 }
 0x59a   :  { %5425 = vmatprep.subr.bf16.mxu0 %v7302_v1  ;;  %5457 = vmatprep.subr.bf16.mxu1 %v7304_v8 }
 0x59d   :  { %5427 = vmatpush1.bf16.msra.mxu0 %v7307_v16  ;;  %5459 = vmatpush1.bf16.msra.mxu1 %v7311_v36 }
 0x59e   :  { %5429 = vmatprep.subr.bf16.mxu0 %v7313_v40  ;;  %5461 = vmatprep.subr.bf16.mxu1 %v7316_v9 }
 0x5a1   :  { %5431 = vmatpush1.bf16.msra.mxu0 %v7319_v15  ;;  %5463 = vmatpush1.bf16.msra.mxu1 %v7323_v17 }
 0x657   :  { %v1783_v63 = vpop.f32.mrb[10].mxu0  ;;  %v1854_v45 = vpop.f32.mrb[10].mxu1 }
 0x658   :  { %v6138_v57 = vadd.f32 %v1783_v63, %v7113_v35  ;;  %v1785_v5 = vpop.f32.mrb[11].mxu0  ;;  %v1856_v7 = vpop.f32.mrb[11].mxu1  ;;  %v6154_v27 = vadd.f32 %v1854_v45, %v7130_v59 }
 0x659   :  { %v6139_v12 = vadd.f32 %v1785_v5, %v7117_v38  ;;  %v6155_v14 = vadd.f32 %v1856_v7, %v7124_v52  ;;  %v2144_v5 = vld [vmem:[#allocation7 + $0x28] sm:$0xff] }
 0x65a   :  { %v4866_v51 = vmul.f32 -1.442695, %v6138_v57  ;;  %v2140_v57 = vld [vmem:[#allocation7 + $0x8] sm:$0xff] }
 0x65b   :  { %v4867_v62 = vmul.f32 -1.442695, %v6139_v12  ;;  %v4868_v18 = vmul.f32 -1.442695, %v6155_v14  ;;  %v5464_v7 = vpack.c.bf16 %v2144_v5, %v2140_v57  ;;  %v2146_v12 = vld [vmem:[#allocation7 + $0x38] sm:$0xff] }
 0x65c   :  { %6348 = vpow2.f32 %v4866_v51  ;;  %v2139_v51 = vld [vmem:[#allocation7] sm:$0xff] }
 0x65d   :  { %6350 = vpow2.f32 %v4867_v62  ;;  %v2143_v62 = vld [vmem:[#allocation7 + $0x20] sm:$0xff]  ;;  %5465 = vmatprep.subr.bf16.mxu0 %v5464_v7 }
 0x65e   :  { %6352 = vpow2.f32 %v4868_v18  ;;  %v5466_v18 = vpack.c.bf16 %v2143_v62, %v2139_v51  ;;  %v2385_v62 = vld [vmem:[#allocation10] sm:$0xff] }
 0x65f   :  { %6354 = vtanh.f32 %v6154_v27  ;;  %v2141_v27 = vld [vmem:[#allocation7 + $0x10] sm:$0xff] }
 0x666   :  { %v6349_v47 = vpop.eup %6348 }
 0x667   :  { %v6351_v28 = vpop.eup %6350  ;;  %v1866_v60 = vadd.f32 1.0, %v6349_v47  ;;  %v2145_v47 = vld [vmem:[#allocation7 + $0x30] sm:$0xff] }
 0x668   :  { %v1872_v53 = vadd.f32 1.0, %v6351_v28  ;;  %v6353_v46 = vpop.eup %6352  ;;  %v5498_v28 = vpack.c.bf16 %v2145_v47, %v2141_v27  ;;  %v2391_v27 = vld [vmem:[#allocation10 + $0x30] sm:$0xff]  ;;  %v2394_v47 = vld [vmem:[#allocation10 + $0x48] sm:$0xff] }
 0x669   :  { %6356 = vrcp.f32 %v1866_v60  ;;  %v6355_v61 = vpop.eup %6354  ;;  %v1879_v23 = vadd.f32 1.0, %v6353_v46  ;;  %v2148_v60 = vld [vmem:[#allocation7 + $0x48] sm:$0xff]  ;;  %v2150_v46 = vld [vmem:[#allocation7 + $0x58] sm:$0xff] }
 0x66a   :  { %6358 = vrcp.f32 %v1872_v53  ;;  %v2152_v53 = vld [vmem:[#allocation7 + $0x68] sm:$0xff] }
 0x66b   :  { %6360 = vrcp.f32 %v1879_v23 }
 0x673   :  { %v6357_v50 = vpop.eup %6356 }
 0x674   :  { %v6359_v11 = vpop.eup %6358  ;;  %v1884_v25 = vmul.f32 %v6357_v50, %v6355_v61  ;;  %v5468_v61 = vpack.c.bf16 %v2152_v53, %v2148_v60  ;;  %v2154_v50 = vld [vmem:[#allocation7 + $0x78] sm:$0xff] }
 0x675   :  { %v1883_v26 = vmul.f32 %v6359_v11, %v7381_v29  ;;  %v6361_v44 = vpop.eup %6360  ;;  %v2142_v29 = vld [vmem:[#allocation7 + $0x18] sm:$0xff]  ;;  %v2147_v11 = vld [vmem:[#allocation7 + $0x40] sm:$0xff]  ;;  %v5500_v23 = vpack.c.bf16 %v2154_v50, %v2150_v46 }
 0x676   :  { %v5496_v14 = vpack.c.bf16 %v2146_v12, %v2142_v29  ;;  %v2396_v60 = vld [vmem:[#allocation10 + $0x58] sm:$0xff] }
 0x677   :  { %v7425_v13 = vadd.f32 %v1884_v25, %v1883_v26  ;;  %v2151_v25 = vld [vmem:[#allocation7 + $0x60] sm:$0xff]  ;;  %v2400_v53 = vld [vmem:[#allocation10 + $0x78] sm:$0xff] }
 0x678   :  { %5497 = vmatprep.subr.bf16.mxu1 %v5496_v14  ;;  %v5470_v26 = vpack.c.bf16 %v2151_v25, %v2147_v11  ;;  %v2389_v14 = vld [vmem:[#allocation10 + $0x20] sm:$0xff] }
 0x679   :  { %6362 = vtanh.f32 %v7425_v13  ;;  %v5530_v50 = vpack.c.bf16 %v2389_v14, %v2385_v62  ;;  %v2393_v25 = vld [vmem:[#allocation10 + $0x40] sm:$0xff] }
 0x683   :  { %v6363_v63 = vpop.eup %6362 }
 0x684   :  { %v7428_v45 = vmul.f32 %v6363_v63, %v6361_v44  ;;  %v2149_v44 = vld [vmem:[#allocation7 + $0x50] sm:$0xff] }
 0x685   :  { %v2153_v63 = vld [vmem:[#allocation7 + $0x70] sm:$0xff] }
 0x686   :  { %2025 = vmatmul.mubr.f32.vlgmr.msra.gmra.mrb[12].mxu0 %v7428_v45  ;;  %2096 = vmatmul.mubr.f32.vlgmr.msra.gmra.mrb[12].mxu1 %v7428_v45  ;;  %v5502_v57 = vpack.c.bf16 %v2153_v63, %v2149_v44  ;;  %v5564_v44 = vpack.c.bf16 %v2400_v53, %v2396_v60  ;;  %v2395_v63 = vld [vmem:[#allocation10 + $0x50] sm:$0xff] }
 0x687   :  { %2267 = vmatprep.mubr.f32.mxu0 %v6624_v0  ;;  %2338 = vmatprep.mubr.f32.mxu1 %v6624_v0  ;;  %v2419_v60 = vld [vmem:[#allocation10 + $0x110] sm:$0xff] }
 0x688   :  { %5467 = vmatpush1.bf16.msra.mxu0 %v5466_v18  ;;  %5499 = vmatpush1.bf16.msra.mxu1 %v5498_v28  ;;  %v2387_v18 = vld [vmem:[#allocation10 + $0x10] sm:$0xff]  ;;  %v2398_v28 = vld [vmem:[#allocation10 + $0x68] sm:$0xff] }
 0x689   :  { %5469 = vmatprep.subr.bf16.mxu0 %v5468_v61  ;;  %5501 = vmatprep.subr.bf16.mxu1 %v5500_v23  ;;  %v5562_v11 = vpack.c.bf16 %v2391_v27, %v2387_v18  ;;  %v2397_v23 = vld [vmem:[#allocation10 + $0x60] sm:$0xff]  ;;  %v2423_v53 = vld [vmem:[#allocation10 + $0x130] sm:$0xff] }
 0x68a   :  { %v2417_v18 = vld [vmem:[#allocation10 + $0x100] sm:$0xff] }
 0x68b   :  { %v2421_v27 = vld [vmem:[#allocation10 + $0x120] sm:$0xff] }
 0x68c   :  { %5471 = vmatpush1.bf16.msra.mxu0 %v5470_v26  ;;  %5503 = vmatpush1.bf16.msra.mxu1 %v5502_v57  ;;  %v5532_v26 = vpack.c.bf16 %v2398_v28, %v2394_v47  ;;  %v2399_v57 = vld [vmem:[#allocation10 + $0x70] sm:$0xff] }
 0x68d   :  { %5473 = vmatprep.subr.bf16.mxu0 %v7256_v41  ;;  %5505 = vmatprep.subr.bf16.mxu1 %v7258_v56  ;;  %v2386_v41 = vld [vmem:[#allocation10 + $0x8] sm:$0xff] }
 0x68e   :  { %v2390_v56 = vld [vmem:[#allocation10 + $0x28] sm:$0xff] }
 0x690   :  { %5475 = vmatpush1.bf16.msra.mxu0 %v7260_v42  ;;  %5507 = vmatpush1.bf16.msra.mxu1 %v7263_v49  ;;  %v2388_v42 = vld [vmem:[#allocation10 + $0x18] sm:$0xff] }
 0x691   :  { %5477 = vmatprep.subr.bf16.mxu0 %v7268_v2  ;;  %5509 = vmatprep.subr.bf16.mxu1 %v7270_v6  ;;  %v2392_v49 = vld [vmem:[#allocation10 + $0x38] sm:$0xff]  ;;  %v5528_v2 = vpack.c.bf16 %v2390_v56, %v2386_v41  ;;  %v2402_v41 = vld [vmem:[#allocation10 + $0x88] sm:$0xff] }
 0x692   :  { %v5560_v6 = vpack.c.bf16 %v2392_v49, %v2388_v42  ;;  %v2406_v56 = vld [vmem:[#allocation10 + $0xa8] sm:$0xff]  ;;  %v2404_v42 = vld [vmem:[#allocation10 + $0x98] sm:$0xff] }
 0x693   :  { %v2408_v49 = vld [vmem:[#allocation10 + $0xb8] sm:$0xff] }
 0x694   :  { %5479 = vmatpush1.bf16.msra.mxu0 %v7272_v10  ;;  %5511 = vmatpush1.bf16.msra.mxu1 %v7275_v19 }
 0x695   :  { %5481 = vmatprep.subr.bf16.mxu0 %v7280_v32  ;;  %5513 = vmatprep.subr.bf16.mxu1 %v7282_v48 }
 0x698   :  { %5483 = vmatpush1.bf16.msra.mxu0 %v7284_v54  ;;  %5515 = vmatpush1.bf16.msra.mxu1 %v7287_v4 }
 0x699   :  { %5485 = vmatprep.subr.bf16.mxu0 %v7291_v22  ;;  %5517 = vmatprep.subr.bf16.mxu1 %v7294_v21 }
 0x69c   :  { %5487 = vmatpush1.bf16.msra.mxu0 %v7296_v33  ;;  %5519 = vmatpush1.bf16.msra.mxu1 %v7299_v43 }
 0x69d   :  { %5489 = vmatprep.subr.bf16.mxu0 %v7302_v1  ;;  %5521 = vmatprep.subr.bf16.mxu1 %v7304_v8 }
 0x6a0   :  { %5491 = vmatpush1.bf16.msra.mxu0 %v7307_v16  ;;  %5523 = vmatpush1.bf16.msra.mxu1 %v7311_v36 }
 0x6a1   :  { %5493 = vmatprep.subr.bf16.mxu0 %v7313_v40  ;;  %5525 = vmatprep.subr.bf16.mxu1 %v7316_v9 }
 0x6a4   :  { %5495 = vmatpush1.bf16.msra.mxu0 %v7319_v15  ;;  %5527 = vmatpush1.bf16.msra.mxu1 %v7323_v17 }
 0x6a5   :  { %5529 = vmatprep.subr.bf16.mxu0 %v5528_v2  ;;  %5561 = vmatprep.subr.bf16.mxu1 %v5560_v6  ;;  %v5534_v2 = vpack.c.bf16 %v2397_v23, %v2393_v25  ;;  %v5566_v6 = vpack.c.bf16 %v2399_v57, %v2395_v63  ;;  %v5546_v25 = vpack.c.bf16 %v2421_v27, %v2417_v18  ;;  %v2738_v27 = vld [vmem:[#allocation12 + $0x10] sm:$0xff] }
 0x6a6   :  { %v5578_v23 = vpack.c.bf16 %v2423_v53, %v2419_v60  ;;  %v2749_v60 = vld [vmem:[#allocation12 + $0x68] sm:$0xff]  ;;  %v2747_v53 = vld [vmem:[#allocation12 + $0x58] sm:$0xff] }
 0x759   :  { %v2026_v10 = vpop.f32.mrb[12].mxu0  ;;  %v2097_v19 = vpop.f32.mrb[12].mxu1 }
 0x75a   :  { %v6140_v32 = vadd.f32 %v2026_v10, %v7113_v35  ;;  %v2028_v48 = vpop.f32.mrb[13].mxu0  ;;  %v2099_v54 = vpop.f32.mrb[13].mxu1  ;;  %v6156_v1 = vadd.f32 %v2097_v19, %v7130_v59  ;;  %v2401_v10 = vld [vmem:[#allocation10 + $0x80] sm:$0xff] }
 0x75b   :  { %v6141_v4 = vadd.f32 %v2028_v48, %v7117_v38  ;;  %v6157_v33 = vadd.f32 %v2099_v54, %v7124_v52  ;;  %v2405_v19 = vld [vmem:[#allocation10 + $0xa0] sm:$0xff]  ;;  %v5568_v48 = vpack.c.bf16 %v2408_v49, %v2404_v42  ;;  %v2403_v54 = vld [vmem:[#allocation10 + $0x90] sm:$0xff]  ;;  %v2434_v42 = vld [vmem:[#allocation10 + $0x188] sm:$0xff] }
 0x75c   :  { %v4869_v22 = vmul.f32 -1.442695, %v6140_v32  ;;  %v5536_v32 = vpack.c.bf16 %v2406_v56, %v2402_v41  ;;  %v2427_v41 = vld [vmem:[#allocation10 + $0x150] sm:$0xff]  ;;  %v2438_v49 = vld [vmem:[#allocation10 + $0x1a8] sm:$0xff] }
 0x75d   :  { %v4870_v21 = vmul.f32 -1.442695, %v6141_v4  ;;  %v4871_v43 = vmul.f32 -1.442695, %v6157_v33  ;;  %v2407_v4 = vld [vmem:[#allocation10 + $0xb0] sm:$0xff]  ;;  %v2412_v33 = vld [vmem:[#allocation10 + $0xd8] sm:$0xff] }
 0x75e   :  { %6364 = vpow2.f32 %v4869_v22  ;;  %v2410_v22 = vld [vmem:[#allocation10 + $0xc8] sm:$0xff]  ;;  %v2431_v56 = vld [vmem:[#allocation10 + $0x170] sm:$0xff] }
 0x75f   :  { %6366 = vpow2.f32 %v4870_v21  ;;  %v2414_v21 = vld [vmem:[#allocation10 + $0xe8] sm:$0xff] }
 0x760   :  { %6368 = vpow2.f32 %v4871_v43  ;;  %v2416_v43 = vld [vmem:[#allocation10 + $0xf8] sm:$0xff] }
 0x761   :  { %6370 = vtanh.f32 %v6156_v1  ;;  %v5538_v1 = vpack.c.bf16 %v2405_v19, %v2401_v10  ;;  %v5582_v19 = vpack.c.bf16 %v2431_v56, %v2427_v41  ;;  %v2757_v41 = vld [vmem:[#allocation12 + $0xa8] sm:$0xff]  ;;  %v2755_v56 = vld [vmem:[#allocation12 + $0x98] sm:$0xff] }
 0x768   :  { %v6365_v8 = vpop.eup %6364 }
 0x769   :  { %v6367_v16 = vpop.eup %6366  ;;  %v2109_v36 = vadd.f32 1.0, %v6365_v8  ;;  %v5570_v8 = vpack.c.bf16 %v2407_v4, %v2403_v54  ;;  %v5552_v54 = vpack.c.bf16 %v2438_v49, %v2434_v42  ;;  %v2759_v49 = vld [vmem:[#allocation12 + $0xb8] sm:$0xff] }
 0x76a   :  { %v2115_v40 = vadd.f32 1.0, %v6367_v16  ;;  %v6369_v9 = vpop.eup %6368  ;;  %v2409_v16 = vld [vmem:[#allocation10 + $0xc0] sm:$0xff] }
 0x76b   :  { %6372 = vrcp.f32 %v2109_v36  ;;  %v6371_v15 = vpop.eup %6370  ;;  %v2122_v7 = vadd.f32 1.0, %v6369_v9  ;;  %v2413_v36 = vld [vmem:[#allocation10 + $0xe0] sm:$0xff]  ;;  %v5572_v9 = vpack.c.bf16 %v2416_v43, %v2412_v33  ;;  %v2442_v33 = vld [vmem:[#allocation10 + $0x1c8] sm:$0xff] }
 0x76c   :  { %6374 = vrcp.f32 %v2115_v40  ;;  %v5540_v40 = vpack.c.bf16 %v2414_v21, %v2410_v22  ;;  %v5542_v62 = vpack.c.bf16 %v2413_v36, %v2409_v16  ;;  %v2435_v22 = vld [vmem:[#allocation10 + $0x190] sm:$0xff]  ;;  %v2446_v43 = vld [vmem:[#allocation10 + $0x1e8] sm:$0xff] }
 0x76d   :  { %6376 = vrcp.f32 %v2122_v7  ;;  %v2420_v7 = vld [vmem:[#allocation10 + $0x118] sm:$0xff]  ;;  %v2439_v21 = vld [vmem:[#allocation10 + $0x1b0] sm:$0xff] }
 0x76e   :  { %v5586_v36 = vpack.c.bf16 %v2439_v21, %v2435_v22  ;;  %v2765_v22 = vld [vmem:[#allocation12 + $0xe8] sm:$0xff]  ;;  %v2763_v21 = vld [vmem:[#allocation12 + $0xd8] sm:$0xff] }
 0x775   :  { %v6373_v17 = vpop.eup %6372 }
 0x776   :  { %v6375_v5 = vpop.eup %6374  ;;  %v2127_v29 = vmul.f32 %v6373_v17, %v6371_v15  ;;  %v2411_v15 = vld [vmem:[#allocation10 + $0xd0] sm:$0xff] }
 0x777   :  { %v2126_v12 = vmul.f32 %v6375_v5, %v7425_v13  ;;  %v6377_v46 = vpop.eup %6376  ;;  %v2415_v17 = vld [vmem:[#allocation10 + $0xf0] sm:$0xff]  ;;  %v2418_v5 = vld [vmem:[#allocation10 + $0x108] sm:$0xff] }
 0x778   :  { %v5574_v14 = vpack.c.bf16 %v2415_v17, %v2411_v15  ;;  %v2445_v17 = vld [vmem:[#allocation10 + $0x1e0] sm:$0xff] }
 0x779   :  { %v7463_v51 = vadd.f32 %v2127_v29, %v2126_v12  ;;  %v2422_v29 = vld [vmem:[#allocation10 + $0x128] sm:$0xff]  ;;  %v2424_v12 = vld [vmem:[#allocation10 + $0x138] sm:$0xff] }
 0x77a   :  { %v5544_v47 = vpack.c.bf16 %v2422_v29, %v2418_v5  ;;  %v5576_v28 = vpack.c.bf16 %v2424_v12, %v2420_v7  ;;  %v2443_v5 = vld [vmem:[#allocation10 + $0x1d0] sm:$0xff] }
 0x77b   :  { %6378 = vtanh.f32 %v7463_v51  ;;  %v2447_v29 = vld [vmem:[#allocation10 + $0x1f0] sm:$0xff] }
 0x77c   :  { %v5590_v12 = vpack.c.bf16 %v2447_v29, %v2443_v5  ;;  %v2773_v5 = vld [vmem:[#allocation12 + $0x128] sm:$0xff]  ;;  %v2771_v29 = vld [vmem:[#allocation12 + $0x118] sm:$0xff] }
 0x785   :  { %v6379_v61 = vpop.eup %6378 }
 0x786   :  { %v7466_v13 = vmul.f32 %v6379_v61, %v6377_v46  ;;  %v2426_v46 = vld [vmem:[#allocation10 + $0x148] sm:$0xff] }
 0x787   :  { %v2430_v61 = vld [vmem:[#allocation10 + $0x168] sm:$0xff] }
 0x788   :  { %2268 = vmatmul.mubr.f32.vlgmr.msra.gmra.mrb[14].mxu0 %v7466_v13  ;;  %2339 = vmatmul.mubr.f32.vlgmr.msra.gmra.mrb[14].mxu1 %v7466_v13  ;;  %v5548_v63 = vpack.c.bf16 %v2430_v61, %v2426_v46  ;;  %v2751_v61 = vld [vmem:[#allocation12 + $0x78] sm:$0xff] }
 0x789   :  { %5531 = vmatpush1.bf16.msra.mxu0 %v5530_v50  ;;  %5563 = vmatpush1.bf16.msra.mxu1 %v5562_v11  ;;  %v2428_v50 = vld [vmem:[#allocation10 + $0x158] sm:$0xff] }
 0x78a   :  { %5533 = vmatprep.subr.bf16.mxu0 %v5532_v26  ;;  %5565 = vmatprep.subr.bf16.mxu1 %v5564_v44  ;;  %v2432_v11 = vld [vmem:[#allocation10 + $0x178] sm:$0xff]  ;;  %v2425_v26 = vld [vmem:[#allocation10 + $0x140] sm:$0xff] }
 0x78b   :  { %2535 = vmatprep.mubr.f32.mxu0 %v6624_v0  ;;  %2648 = vmatprep.mubr.f32.mxu1 %v6624_v0  ;;  %v2429_v44 = vld [vmem:[#allocation10 + $0x160] sm:$0xff]  ;;  %v5580_v57 = vpack.c.bf16 %v2432_v11, %v2428_v50 }
 0x78c   :  { %v5550_v10 = vpack.c.bf16 %v2429_v44, %v2425_v26  ;;  %v2744_v50 = vld [vmem:[#allocation12 + $0x40] sm:$0xff]  ;;  %v2746_v26 = vld [vmem:[#allocation12 + $0x50] sm:$0xff] }
 0x78d   :  { %5535 = vmatpush1.bf16.msra.mxu0 %v5534_v2  ;;  %5567 = vmatpush1.bf16.msra.mxu1 %v5566_v6  ;;  %v2436_v2 = vld [vmem:[#allocation10 + $0x198] sm:$0xff]  ;;  %v2748_v11 = vld [vmem:[#allocation12 + $0x60] sm:$0xff]  ;;  %v2750_v44 = vld [vmem:[#allocation12 + $0x70] sm:$0xff] }
 0x78e   :  { %5537 = vmatprep.subr.bf16.mxu0 %v5536_v32  ;;  %5569 = vmatprep.subr.bf16.mxu1 %v5568_v48  ;;  %v2440_v6 = vld [vmem:[#allocation10 + $0x1b8] sm:$0xff]  ;;  %v2433_v32 = vld [vmem:[#allocation10 + $0x180] sm:$0xff] }
 0x78f   :  { %v2437_v48 = vld [vmem:[#allocation10 + $0x1a0] sm:$0xff]  ;;  %v5584_v4 = vpack.c.bf16 %v2440_v6, %v2436_v2 }
 0x790   :  { %v5554_v16 = vpack.c.bf16 %v2437_v48, %v2433_v32  ;;  %v2752_v2 = vld [vmem:[#allocation12 + $0x80] sm:$0xff]  ;;  %v2754_v32 = vld [vmem:[#allocation12 + $0x90] sm:$0xff] }
 0x791   :  { %5539 = vmatpush1.bf16.msra.mxu0 %v5538_v1  ;;  %5571 = vmatpush1.bf16.msra.mxu1 %v5570_v8  ;;  %v2444_v1 = vld [vmem:[#allocation10 + $0x1d8] sm:$0xff]  ;;  %v2756_v6 = vld [vmem:[#allocation12 + $0xa0] sm:$0xff]  ;;  %v2758_v48 = vld [vmem:[#allocation12 + $0xb0] sm:$0xff] }
 0x792   :  { %5541 = vmatprep.subr.bf16.mxu0 %v5540_v40  ;;  %5573 = vmatprep.subr.bf16.mxu1 %v5572_v9  ;;  %v2448_v8 = vld [vmem:[#allocation10 + $0x1f8] sm:$0xff]  ;;  %v2441_v40 = vld [vmem:[#allocation10 + $0x1c0] sm:$0xff]  ;;  %v5556_v9 = vpack.c.bf16 %v2446_v43, %v2442_v33 }
 0x793   :  { %v5588_v15 = vpack.c.bf16 %v2448_v8, %v2444_v1  ;;  %v5558_v7 = vpack.c.bf16 %v2445_v17, %v2441_v40  ;;  %v2767_v43 = vld [vmem:[#allocation12 + $0xf8] sm:$0xff]  ;;  %v2760_v1 = vld [vmem:[#allocation12 + $0xc0] sm:$0xff]  ;;  %v2762_v40 = vld [vmem:[#allocation12 + $0xd0] sm:$0xff] }
 0x794   :  { %v2764_v8 = vld [vmem:[#allocation12 + $0xe0] sm:$0xff] }
 0x795   :  { %5543 = vmatpush1.bf16.msra.mxu0 %v5542_v62  ;;  %5575 = vmatpush1.bf16.msra.mxu1 %v5574_v14  ;;  %v2736_v62 = vld [vmem:[#allocation12] sm:$0xff] }
 0x796   :  { %5545 = vmatprep.subr.bf16.mxu0 %v5544_v47  ;;  %5577 = vmatprep.subr.bf16.mxu1 %v5576_v28  ;;  %v2742_v47 = vld [vmem:[#allocation12 + $0x30] sm:$0xff]  ;;  %v2745_v28 = vld [vmem:[#allocation12 + $0x48] sm:$0xff] }
 0x797   :  { %v7512_v46 = vpack.c.bf16 %v2749_v60, %v2745_v28 }
 0x799   :  { %5547 = vmatpush1.bf16.msra.mxu0 %v5546_v25  ;;  %5579 = vmatpush1.bf16.msra.mxu1 %v5578_v23  ;;  %v7514_v25 = vpack.c.bf16 %v2751_v61, %v2747_v53  ;;  %v7516_v23 = vpack.c.bf16 %v2748_v11, %v2744_v50  ;;  %v2779_v53 = vld [vmem:[#allocation12 + $0x158] sm:$0xff]  ;;  %v2776_v50 = vld [vmem:[#allocation12 + $0x140] sm:$0xff] }
 0x79a   :  { %5549 = vmatprep.subr.bf16.mxu0 %v5548_v63  ;;  %5581 = vmatprep.subr.bf16.mxu1 %v5580_v57  ;;  %v7519_v63 = vpack.c.bf16 %v2750_v44, %v2746_v26  ;;  %v2753_v57 = vld [vmem:[#allocation12 + $0x88] sm:$0xff]  ;;  %v2783_v61 = vld [vmem:[#allocation12 + $0x178] sm:$0xff]  ;;  %v2780_v26 = vld [vmem:[#allocation12 + $0x160] sm:$0xff] }
 0x79b   :  { %v7524_v42 = vpack.c.bf16 %v2757_v41, %v2753_v57  ;;  %v7560_v11 = vpack.c.bf16 %v2783_v61, %v2779_v53  ;;  %v2778_v44 = vld [vmem:[#allocation12 + $0x150] sm:$0xff]  ;;  %v7563_v41 = vpack.c.bf16 %v2780_v26, %v2776_v50  ;;  %v7600_v61 = vld [vmem:[%s8101_s0] sm:$0xff]  ;;  %v6625_v50 = vmov 0  }
 0x79c   :  { %v2782_v57 = vld [vmem:[#allocation12 + $0x170] sm:$0xff]  ;;  %6266 = vset.pattern.permute.xlu0 %v6625_v50  ;;  %vm2973_vm0 = vcmp.eq.s32.totalorder %v7600_v61, 0  ;;  %6267 = vset.pattern.permute.xlu1 %v6625_v50  ;;  %vm3224_vm1 = vcmp.eq.s32.totalorder %v7600_v61, 1  ;;  %vm3475_vm2 = vcmp.eq.s32.totalorder %v7600_v61, 2  ;;  %vm3726_vm5 = vcmp.eq.s32.totalorder %v7600_v61, 3 }
 0x79d   :  { %5551 = vmatpush1.bf16.msra.mxu0 %v5550_v10  ;;  %5583 = vmatpush1.bf16.msra.mxu1 %v5582_v19  ;;  %v7526_v10 = vpack.c.bf16 %v2759_v49, %v2755_v56  ;;  %v7528_v19 = vpack.c.bf16 %v2756_v6, %v2752_v2  ;;  %v2785_v56 = vld [vmem:[#allocation12 + $0x188] sm:$0xff]  ;;  %v2787_v2 = vld [vmem:[#allocation12 + $0x198] sm:$0xff]  ;;  %v7567_v6 = vpack.c.bf16 %v2782_v57, %v2778_v44  ;;  %v2975_v26 = vsel %vm2973_vm0, 1, %v6625_v50 }
 0x79e   :  { %5553 = vmatprep.subr.bf16.mxu0 %v5552_v54  ;;  %5585 = vmatprep.subr.bf16.mxu1 %v5584_v4  ;;  %v7531_v54 = vpack.c.bf16 %v2758_v48, %v2754_v32  ;;  %v2761_v4 = vld [vmem:[#allocation12 + $0xc8] sm:$0xff]  ;;  %v2791_v48 = vld [vmem:[#allocation12 + $0x1b8] sm:$0xff]  ;;  %vm3977_vm7 = vcmp.eq.s32.totalorder %v7600_v61, 4  ;;  %vm4228_vm9 = vcmp.eq.s32.totalorder %v7600_v61, 5 }
 0x79f   :  { %v7536_v33 = vpack.c.bf16 %v2765_v22, %v2761_v4  ;;  %v2789_v49 = vld [vmem:[#allocation12 + $0x1a8] sm:$0xff]  ;;  %v2784_v4 = vld [vmem:[#allocation12 + $0x180] sm:$0xff]  ;;  %2977 = vperm.xlu0 %6266, %v2975_v26  }
 0x7a0   :  { %v7569_v32 = vpack.c.bf16 %v2789_v49, %v2785_v56  ;;  %v2788_v22 = vld [vmem:[#allocation12 + $0x1a0] sm:$0xff] }
 0x7a1   :  { %5555 = vmatpush1.bf16.msra.mxu0 %v5554_v16  ;;  %5587 = vmatpush1.bf16.msra.mxu1 %v5586_v36  ;;  %v7538_v16 = vpack.c.bf16 %v2767_v43, %v2763_v21  ;;  %v7540_v36 = vpack.c.bf16 %v2764_v8, %v2760_v1  ;;  %v7572_v21 = vpack.c.bf16 %v2791_v48, %v2787_v2  ;;  %v2786_v43 = vld [vmem:[#allocation12 + $0x190] sm:$0xff] }
 0x7a2   :  { %5557 = vmatprep.subr.bf16.mxu0 %v5556_v9  ;;  %5589 = vmatprep.subr.bf16.mxu1 %v5588_v15  ;;  %v2766_v9 = vld [vmem:[#allocation12 + $0xf0] sm:$0xff]  ;;  %v2769_v15 = vld [vmem:[#allocation12 + $0x108] sm:$0xff]  ;;  %v7575_v8 = vpack.c.bf16 %v2788_v22, %v2784_v4 }
 0x7a3   :  { %v7543_v17 = vpack.c.bf16 %v2766_v9, %v2762_v40  ;;  %v2790_v1 = vld [vmem:[#allocation12 + $0x1b0] sm:$0xff]  ;;  %v2793_v9 = vld [vmem:[#allocation12 + $0x1c8] sm:$0xff] }
 0x7a4   :  { %v7579_v40 = vpack.c.bf16 %v2790_v1, %v2786_v43 }
 0x7a5   :  { %5559 = vmatpush1.bf16.msra.mxu0 %v5558_v7  ;;  %5591 = vmatpush1.bf16.msra.mxu1 %v5590_v12  ;;  %v2775_v7 = vld [vmem:[#allocation12 + $0x138] sm:$0xff]  ;;  %v7547_v12 = vpack.c.bf16 %v2773_v5, %v2769_v15  ;;  %v2797_v15 = vld [vmem:[#allocation12 + $0x1e8] sm:$0xff] }
 0x7a6   :  { %v2795_v5 = vld [vmem:[#allocation12 + $0x1d8] sm:$0xff] }
 0x7a8   :  { %2536 = vmatmul.mubr.f32.vlgmr.msra.gmra.mrb[16].mxu0 %v7136_v39  ;;  %2649 = vmatmul.mubr.f32.vlgmr.msra.gmra.mrb[16].mxu1 %v7136_v39  ;;  %v2737_v39 = vld [vmem:[#allocation12 + $0x8] sm:$0xff] }
 0x7a9   :  { %2541 = vmatprep.mubr.f32.mxu0 %v6624_v0  ;;  %2654 = vmatprep.mubr.f32.mxu1 %v6624_v0 }
 0x7ac   :  { %2542 = vmatmul.mubr.f32.gmra.mrb[18].mxu0 %v7180_v24  ;;  %2655 = vmatmul.mubr.f32.gmra.mrb[18].mxu1 %v7180_v24  ;;  %v2741_v24 = vld [vmem:[#allocation12 + $0x28] sm:$0xff] }
 0x7ad   :  { %2547 = vmatprep.mubr.f32.mxu0 %v6624_v0  ;;  %2660 = vmatprep.mubr.f32.mxu1 %v6624_v0 }
 0x7b0   :  { %2548 = vmatmul.mubr.f32.gmra.mrb[20].mxu0 %v7244_v20  ;;  %2661 = vmatmul.mubr.f32.gmra.mrb[20].mxu1 %v7244_v20  ;;  %v2739_v20 = vld [vmem:[#allocation12 + $0x18] sm:$0xff] }
 0x7b1   :  { %2553 = vmatprep.mubr.f32.mxu0 %v6624_v0  ;;  %2666 = vmatprep.mubr.f32.mxu1 %v6624_v0 }
 0x7b4   :  { %2554 = vmatmul.mubr.f32.gmra.mrb[22].mxu0 %v7338_v3  ;;  %2667 = vmatmul.mubr.f32.gmra.mrb[22].mxu1 %v7338_v3  ;;  %v7500_v3 = vpack.c.bf16 %v2741_v24, %v2737_v39  ;;  %v7549_v39 = vpack.c.bf16 %v2775_v7, %v2771_v29  ;;  %v2768_v24 = vld [vmem:[#allocation12 + $0x100] sm:$0xff]  ;;  %v7584_v29 = vpack.c.bf16 %v2797_v15, %v2793_v9  ;;  %v2799_v7 = vld [vmem:[#allocation12 + $0x1f8] sm:$0xff] }
 0x7b5   :  { %2559 = vmatprep.mubr.f32.mxu0 %v6624_v0  ;;  %2672 = vmatprep.mubr.f32.mxu1 %v6624_v0 }
 0x7b6   :  { %5593 = vmatprep.subr.bf16.mxu0 %v7500_v3 }
 0x7b8   :  { %2560 = vmatmul.mubr.f32.gmra.mrb[24].mxu0 %v7384_v58  ;;  %2673 = vmatmul.mubr.f32.gmra.mrb[24].mxu1 %v7384_v58  ;;  %v2743_v58 = vld [vmem:[#allocation12 + $0x38] sm:$0xff] }
 0x7b9   :  { %2565 = vmatprep.mubr.f32.mxu0 %v6624_v0  ;;  %2678 = vmatprep.mubr.f32.mxu1 %v6624_v0  ;;  %v7502_v14 = vpack.c.bf16 %v2743_v58, %v2739_v20  ;;  %v2772_v20 = vld [vmem:[#allocation12 + $0x120] sm:$0xff]  ;;  %v2770_v58 = vld [vmem:[#allocation12 + $0x110] sm:$0xff] }
 0x7bb   :  { %5625 = vmatprep.subr.bf16.mxu1 %v7502_v14 }
 0x7bc   :  { %2566 = vmatmul.mubr.f32.gmra.mrb[26].mxu0 %v7428_v45  ;;  %2679 = vmatmul.mubr.f32.gmra.mrb[26].mxu1 %v7428_v45  ;;  %v2740_v45 = vld [vmem:[#allocation12 + $0x20] sm:$0xff] }
 0x7bd   :  { %2571 = vmatprep.mubr.f32.mxu0 %v6624_v0  ;;  %2684 = vmatprep.mubr.f32.mxu1 %v6624_v0  ;;  %v7504_v18 = vpack.c.bf16 %v2740_v45, %v2736_v62  ;;  %v7552_v62 = vpack.c.bf16 %v2772_v20, %v2768_v24  ;;  %v2774_v45 = vld [vmem:[#allocation12 + $0x130] sm:$0xff]  ;;  %v2792_v24 = vld [vmem:[#allocation12 + $0x1c0] sm:$0xff] }
 0x7be   :  { %v7556_v28 = vpack.c.bf16 %v2774_v45, %v2770_v58  ;;  %v2796_v20 = vld [vmem:[#allocation12 + $0x1e0] sm:$0xff]  ;;  %v7586_v58 = vpack.c.bf16 %v2799_v7, %v2795_v5 }
 0x7bf   :  { %5595 = vmatpush1.bf16.msra.mxu0 %v7504_v18  ;;  %v7588_v45 = vpack.c.bf16 %v2796_v20, %v2792_v24 }
 0x7c0   :  { %2572 = vmatmul.mubr.f32.gmra.mrb[28].mxu0 %v7466_v13  ;;  %2685 = vmatmul.mubr.f32.gmra.mrb[28].mxu1 %v7466_v13  ;;  %v7507_v13 = vpack.c.bf16 %v2742_v47, %v2738_v27  ;;  %v2777_v27 = vld [vmem:[#allocation12 + $0x148] sm:$0xff] }
 0x7c1   :  { %2577 = vmatprep.mubr.f32.mxu0 %v6624_v0  ;;  %2690 = vmatprep.mubr.f32.mxu1 %v6624_v0  ;;  %v2781_v47 = vld [vmem:[#allocation12 + $0x168] sm:$0xff] }
 0x7c2   :  { %5627 = vmatpush1.bf16.msra.mxu1 %v7507_v13  ;;  %5597 = vmatprep.subr.bf16.mxu0 %v7512_v46  ;;  %v7558_v60 = vpack.c.bf16 %v2781_v47, %v2777_v27  ;;  %v2794_v27 = vld [vmem:[#allocation12 + $0x1d0] sm:$0xff] }
 0x7c3   :  { %5629 = vmatprep.subr.bf16.mxu1 %v7514_v25  ;;  %5599 = vmatpush1.bf16.msra.mxu0 %v7516_v23  ;;  %v2798_v47 = vld [vmem:[#allocation12 + $0x1f0] sm:$0xff] }
 0x7c4   :  { %5601 = vmatprep.subr.bf16.mxu0 %v7524_v42  ;;  %v7591_v53 = vpack.c.bf16 %v2798_v47, %v2794_v27 }
 0x7c6   :  { %5631 = vmatpush1.bf16.msra.mxu1 %v7519_v63 }
 0x7c7   :  { %5633 = vmatprep.subr.bf16.mxu1 %v7526_v10  ;;  %5603 = vmatpush1.bf16.msra.mxu0 %v7528_v19 }
 0x7c8   :  { %5605 = vmatprep.subr.bf16.mxu0 %v7536_v33 }
 0x7ca   :  { %5635 = vmatpush1.bf16.msra.mxu1 %v7531_v54 }
 0x7cb   :  { %5637 = vmatprep.subr.bf16.mxu1 %v7538_v16  ;;  %5607 = vmatpush1.bf16.msra.mxu0 %v7540_v36 }
 0x7cc   :  { %5609 = vmatprep.subr.bf16.mxu0 %v7547_v12 }
 0x7ce   :  { %5639 = vmatpush1.bf16.msra.mxu1 %v7543_v17 }
 0x7cf   :  { %5641 = vmatprep.subr.bf16.mxu1 %v7549_v39  ;;  %5611 = vmatpush1.bf16.msra.mxu0 %v7552_v62 }
 0x7d0   :  { %5613 = vmatprep.subr.bf16.mxu0 %v7558_v60 }
 0x7d2   :  { %5643 = vmatpush1.bf16.msra.mxu1 %v7556_v28 }
 0x7d3   :  { %5645 = vmatprep.subr.bf16.mxu1 %v7560_v11  ;;  %5615 = vmatpush1.bf16.msra.mxu0 %v7563_v41 }
 0x7d4   :  { %5617 = vmatprep.subr.bf16.mxu0 %v7569_v32 }
 0x7d6   :  { %5647 = vmatpush1.bf16.msra.mxu1 %v7567_v6 }
 0x7d7   :  { %5649 = vmatprep.subr.bf16.mxu1 %v7572_v21  ;;  %5619 = vmatpush1.bf16.msra.mxu0 %v7575_v8 }
 0x7d8   :  { %5621 = vmatprep.subr.bf16.mxu0 %v7584_v29 }
 0x7da   :  { %5651 = vmatpush1.bf16.msra.mxu1 %v7579_v40 }
 0x7db   :  { %5653 = vmatprep.subr.bf16.mxu1 %v7586_v58  ;;  %5623 = vmatpush1.bf16.msra.mxu0 %v7588_v45 }
 0x7dc   :  { %5657 = vmatprep.subr.bf16.mxu0 %v7500_v3 }
 0x7de   :  { %5655 = vmatpush1.bf16.msra.mxu1 %v7591_v53 }
 0x7df   :  { %5689 = vmatprep.subr.bf16.mxu1 %v7502_v14 }
 0x85b   :  { %v2269_v44 = vpop.f32.mrb[14].mxu0  ;;  %v2340_v57 = vpop.f32.mrb[14].mxu1 }
 0x85c   :  { %v6142_v56 = vadd.f32 %v2269_v44, %v7113_v35  ;;  %v2271_v49 = vpop.f32.mrb[15].mxu0  ;;  %v2342_v2 = vpop.f32.mrb[15].mxu1  ;;  %v6158_v9 = vadd.f32 %v2340_v57, %v7130_v59 }
 0x85d   :  { %v6143_v48 = vadd.f32 %v2271_v49, %v7117_v38  ;;  %v6159_v43 = vadd.f32 %v2342_v2, %v7124_v52  ;;  %v2449_v49 = vld [vmem:[%s8108_s7] sm:$0xf] }
 0x85e   :  { %v4872_v4 = vmul.f32 -1.442695, %v6142_v56  ;;  %v7657_v2 = vrot.slane %v2449_v49, %v155_v31 }
 0x85f   :  { %v4873_v22 = vmul.f32 -1.442695, %v6143_v48  ;;  %v4874_v1 = vmul.f32 -1.442695, %v6159_v43  ;;  %v7661_v48 = vrot.slane %v2449_v49, %v159_v34  ;;  %v7672_v34 = vrot.slane %v2449_v49, %v163_v55 }
 0x860   :  { %6380 = vpow2.f32 %v4872_v4 }
 0x861   :  { %6382 = vpow2.f32 %v4873_v22 }
 0x862   :  { %6384 = vpow2.f32 %v4874_v1 }
 0x863   :  { %6386 = vtanh.f32 %v6158_v9 }
 0x86a   :  { %v6381_v15 = vpop.eup %6380 }
 0x86b   :  { %v6383_v5 = vpop.eup %6382  ;;  %v2352_v7 = vadd.f32 1.0, %v6381_v15 }
 0x86c   :  { %v2358_v24 = vadd.f32 1.0, %v6383_v5  ;;  %v6385_v35 = vpop.eup %6384 }
 0x86d   :  { %6388 = vrcp.f32 %v2352_v7  ;;  %v6387_v20 = vpop.eup %6386  ;;  %v2365_v26 = vadd.f32 1.0, %v6385_v35 }
 0x86e   :  { %6390 = vrcp.f32 %v2358_v24  ;;  %v7667_v24 = vrot.slane %v2449_v49, %v167_v37 }
 0x86f   :  { %6392 = vrcp.f32 %v2365_v26 }
 0x877   :  { %v6389_v38 = vpop.eup %6388 }
 0x878   :  { %v6391_v27 = vpop.eup %6390  ;;  %v2370_v47 = vmul.f32 %v6389_v38, %v6387_v20 }
 0x879   :  { %v2369_v44 = vmul.f32 %v6391_v27, %v7463_v51  ;;  %v6393_v59 = vpop.eup %6392  ;;  %v3226_v51 = vsel %vm3224_vm1, 1, %v6625_v50  ;;  %vm4833_vm1 = vcmask 130048  }
 0x87a   :  { %3228 = vperm.xlu0 %6266, %v3226_v51  }
 0x87b   :  { %v2371_v52 = vadd.f32 %v2370_v47, %v2369_v44 }
 0x87d   :  { %6394 = vtanh.f32 %v2371_v52 }
 0x887   :  { %v6395_v57 = vpop.eup %6394 }
 0x888   :  { %v2373_v56 = vmul.f32 %v6395_v57, %v6393_v59 }
 0x88a   :  { %2578 = vmatmul.mubr.f32.gmra.mrb[30].mxu0 %v2373_v56  ;;  %2691 = vmatmul.mubr.f32.gmra.mrb[30].mxu1 %v2373_v56 }
 0x88b   :  { %2864 = vmatprep.mubr.f32.mxu0 %v6624_v0  ;;  %2935 = vmatprep.mubr.f32.mxu1 %v6624_v0 }
 0x88e   :  { %2865 = vmatmul.mubr.f32.vlgmr.msra.gmra.mrb[16].mxu0 %v6624_v0  ;;  %2936 = vmatmul.mubr.f32.vlgmr.msra.gmra.mrb[16].mxu1 %v6624_v0 }
 0x88f   :  { %5659 = vmatpush1.bf16.msra.mxu0 %v7504_v18  ;;  %5691 = vmatpush1.bf16.msra.mxu1 %v7507_v13 }
 0x890   :  { %5661 = vmatprep.subr.bf16.mxu0 %v7512_v46  ;;  %5693 = vmatprep.subr.bf16.mxu1 %v7514_v25 }
 0x891   :  { %3115 = vmatprep.mubr.f32.mxu0 %v6624_v0  ;;  %3186 = vmatprep.mubr.f32.mxu1 %v6624_v0 }
 0x893   :  { %5663 = vmatpush1.bf16.msra.mxu0 %v7516_v23  ;;  %5695 = vmatpush1.bf16.msra.mxu1 %v7519_v63 }
 0x894   :  { %5665 = vmatprep.subr.bf16.mxu0 %v7524_v42  ;;  %5697 = vmatprep.subr.bf16.mxu1 %v7526_v10 }
 0x897   :  { %5667 = vmatpush1.bf16.msra.mxu0 %v7528_v19  ;;  %5699 = vmatpush1.bf16.msra.mxu1 %v7531_v54 }
 0x898   :  { %5669 = vmatprep.subr.bf16.mxu0 %v7536_v33  ;;  %5701 = vmatprep.subr.bf16.mxu1 %v7538_v16 }
 0x89b   :  { %5671 = vmatpush1.bf16.msra.mxu0 %v7540_v36  ;;  %5703 = vmatpush1.bf16.msra.mxu1 %v7543_v17 }
 0x89c   :  { %5673 = vmatprep.subr.bf16.mxu0 %v7547_v12  ;;  %5705 = vmatprep.subr.bf16.mxu1 %v7549_v39 }
 0x89f   :  { %5675 = vmatpush1.bf16.msra.mxu0 %v7552_v62  ;;  %5707 = vmatpush1.bf16.msra.mxu1 %v7556_v28 }
 0x8a0   :  { %5677 = vmatprep.subr.bf16.mxu0 %v7558_v60  ;;  %5709 = vmatprep.subr.bf16.mxu1 %v7560_v11 }
 0x8a3   :  { %5679 = vmatpush1.bf16.msra.mxu0 %v7563_v41  ;;  %5711 = vmatpush1.bf16.msra.mxu1 %v7567_v6 }
 0x8a4   :  { %5681 = vmatprep.subr.bf16.mxu0 %v7569_v32  ;;  %5713 = vmatprep.subr.bf16.mxu1 %v7572_v21 }
 0x8a7   :  { %5683 = vmatpush1.bf16.msra.mxu0 %v7575_v8  ;;  %5715 = vmatpush1.bf16.msra.mxu1 %v7579_v40 }
 0x8a8   :  { %5685 = vmatprep.subr.bf16.mxu0 %v7584_v29  ;;  %5717 = vmatprep.subr.bf16.mxu1 %v7586_v58 }
 0x8ab   :  { %5687 = vmatpush1.bf16.msra.mxu0 %v7588_v45  ;;  %5719 = vmatpush1.bf16.msra.mxu1 %v7591_v53 }
 0x8ac   :  { %5721 = vmatprep.subr.bf16.mxu0 %v7500_v3  ;;  %5753 = vmatprep.subr.bf16.mxu1 %v7502_v14 }
 0x961   :  { %v2866_v4 = vpop.f32.mrb[16].mxu0  ;;  %v2937_v22 = vpop.f32.mrb[16].mxu1 }
 0x962   :  { %v6160_v43 = vadd.f32 %v2866_v4, %v7657_v2  ;;  %v2868_v1 = vpop.f32.mrb[17].mxu0  ;;  %v2939_v9 = vpop.f32.mrb[17].mxu1  ;;  %v6176_v20 = vadd.f32 %v2937_v22, %v7672_v34  ;;  %v3477_v22 = vsel %vm3475_vm2, 1, %v6625_v50 }
 0x963   :  { %v6161_v15 = vadd.f32 %v2868_v1, %v7661_v48  ;;  %v6177_v31 = vadd.f32 %v2939_v9, %v7667_v24  ;;  %3479 = vperm.xlu1 %6267, %v3477_v22  }
 0x964   :  { %v4875_v5 = vmul.f32 -1.442695, %v6160_v43 }
 0x965   :  { %v4876_v7 = vmul.f32 -1.442695, %v6161_v15  ;;  %v4877_v35 = vmul.f32 -1.442695, %v6177_v31 }
 0x966   :  { %6396 = vpow2.f32 %v4875_v5 }
 0x967   :  { %6398 = vpow2.f32 %v4876_v7 }
 0x968   :  { %6400 = vpow2.f32 %v4877_v35 }
 0x969   :  { %6402 = vtanh.f32 %v6176_v20 }
 0x970   :  { %v6397_v38 = vpop.eup %6396 }
 0x971   :  { %v6399_v27 = vpop.eup %6398  ;;  %v2949_v47 = vadd.f32 1.0, %v6397_v38 }
 0x972   :  { %v2955_v26 = vadd.f32 1.0, %v6399_v27  ;;  %v6401_v37 = vpop.eup %6400 }
 0x973   :  { %6404 = vrcp.f32 %v2949_v47  ;;  %v6403_v44 = vpop.eup %6402  ;;  %v2962_v56 = vadd.f32 1.0, %v6401_v37 }
 0x974   :  { %6406 = vrcp.f32 %v2955_v26 }
 0x975   :  { %6408 = vrcp.f32 %v2962_v56 }
 0x97d   :  { %v6405_v52 = vpop.eup %6404 }
 0x97e   :  { %v6407_v59 = vpop.eup %6406  ;;  %v2967_v57 = vmul.f32 %v6405_v52, %v6403_v44 }
 0x97f   :  { %v2966_v30 = vmul.f32 0.0, %v6407_v59  ;;  %v6409_v51 = vpop.eup %6408 }
 0x981   :  { %v7675_v55 = vadd.f32 %v2967_v57, %v2966_v30 }
 0x983   :  { %6410 = vtanh.f32 %v7675_v55 }
 0x98d   :  { %v6411_v49 = vpop.eup %6410 }
 0x98e   :  { %v7678_v4 = vmul.f32 %v6411_v49, %v6409_v51  ;;  %v2978_v49 = vpop.permute.xlu0 %2977 }
 0x98f   :  { %vm2979_vm3 = vcmp.eq.s32.totalorder %v2978_v49, 1  ;;  %v3750_v49 = vld [vmem:[#allocation12 + $0x50] sm:$0xff] }
 0x990   :  { %3116 = vmatmul.mubr.f32.vlgmr.msra.gmra.mrb[18].mxu0 %v7678_v4  ;;  %3187 = vmatmul.mubr.f32.vlgmr.msra.gmra.mrb[18].mxu1 %v7678_v4 }
 0x991   :  { %5723 = vmatpush1.bf16.msra.mxu0 %v7504_v18  ;;  %5755 = vmatpush1.bf16.msra.mxu1 %v7507_v13 }
 0x992   :  { %5725 = vmatprep.subr.bf16.mxu0 %v7512_v46  ;;  %5757 = vmatprep.subr.bf16.mxu1 %v7514_v25  ;;  %v3229_v22 = vpop.permute.xlu0 %3228 }
 0x993   :  { %3366 = vmatprep.mubr.f32.mxu0 %v6624_v0  ;;  %3437 = vmatprep.mubr.f32.mxu1 %v6624_v0  ;;  %vm3230_vm4 = vcmp.eq.s32.totalorder %v3229_v22, 1  ;;  %v3754_v22 = vld [vmem:[#allocation12 + $0x70] sm:$0xff] }
 0x995   :  { %5727 = vmatpush1.bf16.msra.mxu0 %v7516_v23  ;;  %5759 = vmatpush1.bf16.msra.mxu1 %v7519_v63 }
 0x996   :  { %5729 = vmatprep.subr.bf16.mxu0 %v7524_v42  ;;  %5761 = vmatprep.subr.bf16.mxu1 %v7526_v10 }
 0x999   :  { %5731 = vmatpush1.bf16.msra.mxu0 %v7528_v19  ;;  %5763 = vmatpush1.bf16.msra.mxu1 %v7531_v54 }
 0x99a   :  { %5733 = vmatprep.subr.bf16.mxu0 %v7536_v33  ;;  %5765 = vmatprep.subr.bf16.mxu1 %v7538_v16 }
 0x99d   :  { %5735 = vmatpush1.bf16.msra.mxu0 %v7540_v36  ;;  %5767 = vmatpush1.bf16.msra.mxu1 %v7543_v17 }
 0x99e   :  { %5737 = vmatprep.subr.bf16.mxu0 %v7547_v12  ;;  %5769 = vmatprep.subr.bf16.mxu1 %v7549_v39 }
 0x9a1   :  { %5739 = vmatpush1.bf16.msra.mxu0 %v7552_v62  ;;  %5771 = vmatpush1.bf16.msra.mxu1 %v7556_v28 }
 0x9a2   :  { %5741 = vmatprep.subr.bf16.mxu0 %v7558_v60  ;;  %5773 = vmatprep.subr.bf16.mxu1 %v7560_v11 }
 0x9a5   :  { %5743 = vmatpush1.bf16.msra.mxu0 %v7563_v41  ;;  %5775 = vmatpush1.bf16.msra.mxu1 %v7567_v6 }
 0x9a6   :  { %5745 = vmatprep.subr.bf16.mxu0 %v7569_v32  ;;  %5777 = vmatprep.subr.bf16.mxu1 %v7572_v21 }
 0x9a9   :  { %5747 = vmatpush1.bf16.msra.mxu0 %v7575_v8  ;;  %5779 = vmatpush1.bf16.msra.mxu1 %v7579_v40 }
 0x9aa   :  { %5749 = vmatprep.subr.bf16.mxu0 %v7584_v29  ;;  %5781 = vmatprep.subr.bf16.mxu1 %v7586_v58 }
 0x9ad   :  { %5751 = vmatpush1.bf16.msra.mxu0 %v7588_v45  ;;  %5783 = vmatpush1.bf16.msra.mxu1 %v7591_v53 }
 0x9ae   :  { %5785 = vmatprep.subr.bf16.mxu0 %v7500_v3  ;;  %5817 = vmatprep.subr.bf16.mxu1 %v7502_v14 }
 0xa63   :  { %v3117_v43 = vpop.f32.mrb[18].mxu0  ;;  %v3188_v1 = vpop.f32.mrb[18].mxu1 }
 0xa64   :  { %v6162_v9 = vadd.f32 %v3117_v43, %v7657_v2  ;;  %v3119_v15 = vpop.f32.mrb[19].mxu0  ;;  %v3190_v5 = vpop.f32.mrb[19].mxu1  ;;  %v6178_v20 = vadd.f32 %v3188_v1, %v7672_v34 }
 0xa65   :  { %v6163_v7 = vadd.f32 %v3119_v15, %v7661_v48  ;;  %v6179_v3 = vadd.f32 %v3190_v5, %v7667_v24  ;;  %v2980_v15 = vsel %vm2979_vm3, %v7678_v4, 0.0  ;;  %v3743_v4 = vld [vmem:[#allocation12 + $0x18] sm:$0xff] }
 0xa66   :  { %v4878_v31 = vmul.f32 -1.442695, %v6162_v9 }
 0xa67   :  { %v4879_v35 = vmul.f32 -1.442695, %v6163_v7  ;;  %v4880_v14 = vmul.f32 -1.442695, %v6179_v3  ;;  %v3744_v3 = vld [vmem:[#allocation12 + $0x20] sm:$0xff] }
 0xa68   :  { %6412 = vpow2.f32 %v4878_v31  ;;  %v3747_v31 = vld [vmem:[#allocation12 + $0x38] sm:$0xff] }
 0xa69   :  { %6414 = vpow2.f32 %v4879_v35  ;;  %v3740_v35 = vld [vmem:[#allocation12] sm:$0xff] }
 0xa6a   :  { %6416 = vpow2.f32 %v4880_v14  ;;  %v7778_v14 = vpack.c.bf16 %v3747_v31, %v3743_v4  ;;  %v3774_v4 = vld [vmem:[#allocation12 + $0x110] sm:$0xff] }
 0xa6b   :  { %6418 = vtanh.f32 %v6178_v20  ;;  %v7780_v20 = vpack.c.bf16 %v3744_v3, %v3740_v35  ;;  %v3778_v31 = vld [vmem:[#allocation12 + $0x130] sm:$0xff]  ;;  %v3781_v3 = vld [vmem:[#allocation12 + $0x148] sm:$0xff] }
 0xa6c   :  { %v7831_v35 = vpack.c.bf16 %v3778_v31, %v3774_v4  ;;  %v3802_v4 = vld [vmem:[#allocation12 + $0x1f0] sm:$0xff] }
 0xa72   :  { %v6413_v38 = vpop.eup %6412 }
 0xa73   :  { %v6415_v27 = vpop.eup %6414  ;;  %v3200_v47 = vadd.f32 1.0, %v6413_v38  ;;  %v3742_v38 = vld [vmem:[#allocation12 + $0x10] sm:$0xff] }
 0xa74   :  { %v3206_v26 = vadd.f32 1.0, %v6415_v27  ;;  %v6417_v37 = vpop.eup %6416  ;;  %v3746_v27 = vld [vmem:[#allocation12 + $0x30] sm:$0xff] }
 0xa75   :  { %6420 = vrcp.f32 %v3200_v47  ;;  %v6419_v44 = vpop.eup %6418  ;;  %v3213_v56 = vadd.f32 1.0, %v6417_v37  ;;  %v7783_v47 = vpack.c.bf16 %v3746_v27, %v3742_v38  ;;  %v3753_v37 = vld [vmem:[#allocation12 + $0x68] sm:$0xff]  ;;  %v3783_v27 = vld [vmem:[#allocation12 + $0x158] sm:$0xff] }
 0xa76   :  { %6422 = vrcp.f32 %v3206_v26  ;;  %v3749_v26 = vld [vmem:[#allocation12 + $0x48] sm:$0xff] }
 0xa77   :  { %6424 = vrcp.f32 %v3213_v56  ;;  %v3752_v56 = vld [vmem:[#allocation12 + $0x60] sm:$0xff]  ;;  %v3785_v38 = vld [vmem:[#allocation12 + $0x168] sm:$0xff] }
 0xa7f   :  { %v6421_v52 = vpop.eup %6420 }
 0xa80   :  { %v6423_v59 = vpop.eup %6422  ;;  %v3218_v57 = vmul.f32 %v6421_v52, %v6419_v44  ;;  %v3751_v44 = vld [vmem:[#allocation12 + $0x58] sm:$0xff]  ;;  %v7788_v52 = vpack.c.bf16 %v3753_v37, %v3749_v26  ;;  %v7835_v26 = vpack.c.bf16 %v3785_v38, %v3781_v3  ;;  %v3979_v38 = vsel %vm3977_vm7, 1, %v6625_v50 }
 0xa81   :  { %v3217_v30 = vmul.f32 %v6423_v59, %v7675_v55  ;;  %v6425_v43 = vpop.eup %6424  ;;  %v3745_v55 = vld [vmem:[#allocation12 + $0x28] sm:$0xff]  ;;  %v3755_v59 = vld [vmem:[#allocation12 + $0x78] sm:$0xff]  ;;  %3981 = vperm.xlu0 %6266, %v3979_v38  }
 0xa82   :  { %v3787_v37 = vld [vmem:[#allocation12 + $0x178] sm:$0xff] }
 0xa83   :  { %v7723_v51 = vadd.f32 %v3218_v57, %v3217_v30  ;;  %v3748_v57 = vld [vmem:[#allocation12 + $0x40] sm:$0xff]  ;;  %v7790_v30 = vpack.c.bf16 %v3755_v59, %v3751_v44 }
 0xa84   :  { %v3780_v44 = vld [vmem:[#allocation12 + $0x140] sm:$0xff] }
 0xa85   :  { %6426 = vtanh.f32 %v7723_v51  ;;  %v3784_v59 = vld [vmem:[#allocation12 + $0x160] sm:$0xff] }
 0xa8f   :  { %v6427_v1 = vpop.eup %6426 }
 0xa90   :  { %v3221_v9 = vmul.f32 %v6427_v1, %v6425_v43  ;;  %v7795_v43 = vpack.c.bf16 %v3754_v22, %v3750_v49  ;;  %v3757_v1 = vld [vmem:[#allocation12 + $0x88] sm:$0xff]  ;;  %v3782_v49 = vld [vmem:[#allocation12 + $0x150] sm:$0xff] }
 0xa91   :  { %v3786_v22 = vld [vmem:[#allocation12 + $0x170] sm:$0xff] }
 0xa92   :  { %v7727_v5 = vsel %vm3230_vm4, %v3221_v9, %v2980_v15  ;;  %3367 = vmatmul.mubr.f32.vlgmr.msra.gmra.mrb[20].mxu0 %v3221_v9  ;;  %3438 = vmatmul.mubr.f32.vlgmr.msra.gmra.mrb[20].mxu1 %v3221_v9  ;;  %v3761_v9 = vld [vmem:[#allocation12 + $0xa8] sm:$0xff]  ;;  %v3759_v15 = vld [vmem:[#allocation12 + $0x98] sm:$0xff] }
 0xa93   :  { %5787 = vmatpush1.bf16.msra.mxu0 %v7504_v18  ;;  %5819 = vmatpush1.bf16.msra.mxu1 %v7507_v13  ;;  %v3728_v18 = vsel %vm3726_vm5, 1, %v6625_v50 }
 0xa94   :  { %5789 = vmatprep.subr.bf16.mxu0 %v7512_v46  ;;  %5821 = vmatprep.subr.bf16.mxu1 %v7514_v25 }
 0xa95   :  { %3617 = vmatprep.mubr.f32.mxu0 %v6624_v0  ;;  %3688 = vmatprep.mubr.f32.mxu1 %v6624_v0 }
 0xa96   :  { %3730 = vperm.xlu1 %6267, %v3728_v18   ;;  %v3763_v18 = vld [vmem:[#allocation12 + $0xb8] sm:$0xff] }
 0xa97   :  { %5791 = vmatpush1.bf16.msra.mxu0 %v7516_v23  ;;  %5823 = vmatpush1.bf16.msra.mxu1 %v7519_v63 }
 0xa98   :  { %5793 = vmatprep.subr.bf16.mxu0 %v7524_v42  ;;  %5825 = vmatprep.subr.bf16.mxu1 %v7526_v10 }
 0xa9b   :  { %5795 = vmatpush1.bf16.msra.mxu0 %v7528_v19  ;;  %5827 = vmatpush1.bf16.msra.mxu1 %v7531_v54 }
 0xa9c   :  { %5797 = vmatprep.subr.bf16.mxu0 %v7536_v33  ;;  %5829 = vmatprep.subr.bf16.mxu1 %v7538_v16 }
 0xa9f   :  { %5799 = vmatpush1.bf16.msra.mxu0 %v7540_v36  ;;  %5831 = vmatpush1.bf16.msra.mxu1 %v7543_v17 }
 0xaa0   :  { %5801 = vmatprep.subr.bf16.mxu0 %v7547_v12  ;;  %5833 = vmatprep.subr.bf16.mxu1 %v7549_v39 }
 0xaa3   :  { %5803 = vmatpush1.bf16.msra.mxu0 %v7552_v62  ;;  %5835 = vmatpush1.bf16.msra.mxu1 %v7556_v28 }
 0xaa4   :  { %5805 = vmatprep.subr.bf16.mxu0 %v7558_v60  ;;  %5837 = vmatprep.subr.bf16.mxu1 %v7560_v11 }
 0xaa7   :  { %5807 = vmatpush1.bf16.msra.mxu0 %v7563_v41  ;;  %5839 = vmatpush1.bf16.msra.mxu1 %v7567_v6 }
 0xaa8   :  { %5809 = vmatprep.subr.bf16.mxu0 %v7569_v32  ;;  %5841 = vmatprep.subr.bf16.mxu1 %v7572_v21 }
 0xaab   :  { %5811 = vmatpush1.bf16.msra.mxu0 %v7575_v8  ;;  %5843 = vmatpush1.bf16.msra.mxu1 %v7579_v40  ;;  %v3480_v8 = vpop.permute.xlu1 %3479 }
 0xaac   :  { %5813 = vmatprep.subr.bf16.mxu0 %v7584_v29  ;;  %5845 = vmatprep.subr.bf16.mxu1 %v7586_v58  ;;  %vm3481_vm6 = vcmp.eq.s32.totalorder %v3480_v8, 1 }
 0xaaf   :  { %5815 = vmatpush1.bf16.msra.mxu0 %v7588_v45  ;;  %5847 = vmatpush1.bf16.msra.mxu1 %v7591_v53  ;;  %v3741_v53 = vld [vmem:[#allocation12 + $0x8] sm:$0xff] }
 0xab0   :  { %v7776_v7 = vpack.c.bf16 %v3745_v55, %v3741_v53  ;;  %5881 = vmatprep.subr.bf16.mxu1 %v7778_v14 }
 0xab2   :  { %5849 = vmatprep.subr.bf16.mxu0 %v7776_v7 }
 0xb65   :  { %v3368_v13 = vpop.f32.mrb[20].mxu0  ;;  %v3439_v46 = vpop.f32.mrb[20].mxu1 }
 0xb66   :  { %v6164_v25 = vadd.f32 %v3368_v13, %v7657_v2  ;;  %v3370_v23 = vpop.f32.mrb[21].mxu0  ;;  %v3441_v63 = vpop.f32.mrb[21].mxu1  ;;  %v6180_v16 = vadd.f32 %v3439_v46, %v7672_v34  ;;  %v3756_v13 = vld [vmem:[#allocation12 + $0x80] sm:$0xff] }
 0xb67   :  { %v6165_v42 = vadd.f32 %v3370_v23, %v7661_v48  ;;  %v6181_v54 = vadd.f32 %v3441_v63, %v7667_v24  ;;  %v3760_v46 = vld [vmem:[#allocation12 + $0xa0] sm:$0xff]  ;;  %v3758_v63 = vld [vmem:[#allocation12 + $0x90] sm:$0xff] }
 0xb68   :  { %v4881_v10 = vmul.f32 -1.442695, %v6164_v25  ;;  %v7802_v25 = vpack.c.bf16 %v3763_v18, %v3759_v15  ;;  %v7804_v23 = vpack.c.bf16 %v3760_v46, %v3756_v13  ;;  %v3793_v15 = vld [vmem:[#allocation12 + $0x1a8] sm:$0xff]  ;;  %v3791_v18 = vld [vmem:[#allocation12 + $0x198] sm:$0xff] }
 0xb69   :  { %v4882_v19 = vmul.f32 -1.442695, %v6165_v42  ;;  %v4883_v33 = vmul.f32 -1.442695, %v6181_v54  ;;  %v3762_v42 = vld [vmem:[#allocation12 + $0xb0] sm:$0xff]  ;;  %v3769_v54 = vld [vmem:[#allocation12 + $0xe8] sm:$0xff] }
 0xb6a   :  { %6428 = vpow2.f32 %v4881_v10  ;;  %v7807_v10 = vpack.c.bf16 %v3762_v42, %v3758_v63  ;;  %v3795_v13 = vld [vmem:[#allocation12 + $0x1b8] sm:$0xff]  ;;  %v3788_v42 = vld [vmem:[#allocation12 + $0x180] sm:$0xff] }
 0xb6b   :  { %6430 = vpow2.f32 %v4882_v19  ;;  %v3765_v19 = vld [vmem:[#allocation12 + $0xc8] sm:$0xff]  ;;  %v7848_v63 = vpack.c.bf16 %v3795_v13, %v3791_v18 }
 0xb6c   :  { %6432 = vpow2.f32 %v4883_v33  ;;  %v3767_v33 = vld [vmem:[#allocation12 + $0xd8] sm:$0xff] }
 0xb6d   :  { %6434 = vtanh.f32 %v6180_v16  ;;  %v7812_v16 = vpack.c.bf16 %v3769_v54, %v3765_v19  ;;  %v3792_v19 = vld [vmem:[#allocation12 + $0x1a0] sm:$0xff]  ;;  %v3790_v54 = vld [vmem:[#allocation12 + $0x190] sm:$0xff] }
 0xb74   :  { %v6429_v36 = vpop.eup %6428 }
 0xb75   :  { %v6431_v17 = vpop.eup %6430  ;;  %v3451_v12 = vadd.f32 1.0, %v6429_v36  ;;  %v3771_v36 = vld [vmem:[#allocation12 + $0xf8] sm:$0xff] }
 0xb76   :  { %v3457_v39 = vadd.f32 1.0, %v6431_v17  ;;  %v6433_v62 = vpop.eup %6432  ;;  %v3764_v17 = vld [vmem:[#allocation12 + $0xc0] sm:$0xff] }
 0xb77   :  { %6436 = vrcp.f32 %v3451_v12  ;;  %v6435_v28 = vpop.eup %6434  ;;  %v3464_v6 = vadd.f32 1.0, %v6433_v62  ;;  %v3768_v12 = vld [vmem:[#allocation12 + $0xe0] sm:$0xff] }
 0xb78   :  { %6438 = vrcp.f32 %v3457_v39  ;;  %v7814_v39 = vpack.c.bf16 %v3771_v36, %v3767_v33  ;;  %v7816_v62 = vpack.c.bf16 %v3768_v12, %v3764_v17  ;;  %v7851_v33 = vpack.c.bf16 %v3792_v19, %v3788_v42  ;;  %v3794_v36 = vld [vmem:[#allocation12 + $0x1b0] sm:$0xff]  ;;  %v3797_v17 = vld [vmem:[#allocation12 + $0x1c8] sm:$0xff] }
 0xb79   :  { %6440 = vrcp.f32 %v3464_v6  ;;  %v3777_v6 = vld [vmem:[#allocation12 + $0x128] sm:$0xff] }
 0xb7a   :  { %v3801_v12 = vld [vmem:[#allocation12 + $0x1e8] sm:$0xff] }
 0xb81   :  { %v6437_v60 = vpop.eup %6436 }
 0xb82   :  { %v6439_v11 = vpop.eup %6438  ;;  %v3469_v41 = vmul.f32 %v6437_v60, %v6435_v28  ;;  %v3766_v28 = vld [vmem:[#allocation12 + $0xd0] sm:$0xff] }
 0xb83   :  { %v3468_v32 = vmul.f32 %v6439_v11, %v7723_v51  ;;  %v6441_v40 = vpop.eup %6440  ;;  %v7792_v51 = vpack.c.bf16 %v3752_v56, %v3748_v57  ;;  %v3770_v60 = vld [vmem:[#allocation12 + $0xf0] sm:$0xff]  ;;  %v7838_v57 = vpack.c.bf16 %v3787_v37, %v3783_v27  ;;  %v7840_v56 = vpack.c.bf16 %v3784_v59, %v3780_v44 }
 0xb84   :  { %v7819_v11 = vpack.c.bf16 %v3770_v60, %v3766_v28  ;;  %v7855_v28 = vpack.c.bf16 %v3794_v36, %v3790_v54  ;;  %v7857_v60 = vpack.c.bf16 %v3801_v12, %v3797_v17 }
 0xb85   :  { %v7768_v21 = vadd.f32 %v3469_v41, %v3468_v32  ;;  %v3773_v41 = vld [vmem:[#allocation12 + $0x108] sm:$0xff]  ;;  %v3775_v32 = vld [vmem:[#allocation12 + $0x118] sm:$0xff] }
 0xb86   :  { %v7824_v8 = vpack.c.bf16 %v3777_v6, %v3773_v41  ;;  %v3799_v41 = vld [vmem:[#allocation12 + $0x1d8] sm:$0xff] }
 0xb87   :  { %6442 = vtanh.f32 %v7768_v21  ;;  %v3803_v6 = vld [vmem:[#allocation12 + $0x1f8] sm:$0xff] }
 0xb91   :  { %v6443_v29 = vpop.eup %6442 }
 0xb92   :  { %v3472_v58 = vmul.f32 %v6443_v29, %v6441_v40  ;;  %v3779_v40 = vld [vmem:[#allocation12 + $0x138] sm:$0xff]  ;;  %v3772_v29 = vld [vmem:[#allocation12 + $0x100] sm:$0xff] }
 0xb93   :  { %v7826_v53 = vpack.c.bf16 %v3779_v40, %v3775_v32  ;;  %v3796_v32 = vld [vmem:[#allocation12 + $0x1c0] sm:$0xff]  ;;  %v7860_v40 = vpack.c.bf16 %v3803_v6, %v3799_v41 }
 0xb94   :  { %v7772_v45 = vsel %vm3481_vm6, %v3472_v58, %v7727_v5  ;;  %3618 = vmatmul.mubr.f32.vlgmr.msra.gmra.mrb[22].mxu0 %v3472_v58  ;;  %3689 = vmatmul.mubr.f32.vlgmr.msra.gmra.mrb[22].mxu1 %v3472_v58  ;;  %v7800_v5 = vpack.c.bf16 %v3761_v9, %v3757_v1  ;;  %v3776_v58 = vld [vmem:[#allocation12 + $0x120] sm:$0xff]  ;;  %v3789_v1 = vld [vmem:[#allocation12 + $0x188] sm:$0xff]  ;;  %v7843_v9 = vpack.c.bf16 %v3786_v22, %v3782_v49 }
 0xb95   :  { %3868 = vmatprep.mubr.f32.mxu0 %v6624_v0  ;;  %3939 = vmatprep.mubr.f32.mxu1 %v6624_v0  ;;  %v7828_v55 = vpack.c.bf16 %v3776_v58, %v3772_v29  ;;  %v7846_v46 = vpack.c.bf16 %v3793_v15, %v3789_v1  ;;  %v3800_v29 = vld [vmem:[#allocation12 + $0x1e0] sm:$0xff]  ;;  %v3798_v58 = vld [vmem:[#allocation12 + $0x1d0] sm:$0xff] }
 0xb96   :  { %5851 = vmatpush1.bf16.msra.mxu0 %v7780_v20  ;;  %5883 = vmatpush1.bf16.msra.mxu1 %v7783_v47  ;;  %v7863_v31 = vpack.c.bf16 %v3800_v29, %v3796_v32  ;;  %v7867_v3 = vpack.c.bf16 %v3802_v4, %v3798_v58 }
 0xb97   :  { %5853 = vmatprep.subr.bf16.mxu0 %v7788_v52  ;;  %5885 = vmatprep.subr.bf16.mxu1 %v7790_v30 }
 0xb9a   :  { %5855 = vmatpush1.bf16.msra.mxu0 %v7792_v51  ;;  %5887 = vmatpush1.bf16.msra.mxu1 %v7795_v43 }
 0xb9b   :  { %5857 = vmatprep.subr.bf16.mxu0 %v7800_v5  ;;  %5889 = vmatprep.subr.bf16.mxu1 %v7802_v25 }
 0xb9e   :  { %5859 = vmatpush1.bf16.msra.mxu0 %v7804_v23  ;;  %5891 = vmatpush1.bf16.msra.mxu1 %v7807_v10 }
 0xb9f   :  { %5861 = vmatprep.subr.bf16.mxu0 %v7812_v16  ;;  %5893 = vmatprep.subr.bf16.mxu1 %v7814_v39 }
 0xba2   :  { %5863 = vmatpush1.bf16.msra.mxu0 %v7816_v62  ;;  %5895 = vmatpush1.bf16.msra.mxu1 %v7819_v11 }
 0xba3   :  { %5865 = vmatprep.subr.bf16.mxu0 %v7824_v8  ;;  %5897 = vmatprep.subr.bf16.mxu1 %v7826_v53 }
 0xba6   :  { %5867 = vmatpush1.bf16.msra.mxu0 %v7828_v55  ;;  %5899 = vmatpush1.bf16.msra.mxu1 %v7831_v35 }
 0xba7   :  { %5869 = vmatprep.subr.bf16.mxu0 %v7835_v26  ;;  %5901 = vmatprep.subr.bf16.mxu1 %v7838_v57 }
 0xbaa   :  { %5871 = vmatpush1.bf16.msra.mxu0 %v7840_v56  ;;  %5903 = vmatpush1.bf16.msra.mxu1 %v7843_v9 }
 0xbab   :  { %5873 = vmatprep.subr.bf16.mxu0 %v7846_v46  ;;  %5905 = vmatprep.subr.bf16.mxu1 %v7848_v63 }
 0xbae   :  { %5875 = vmatpush1.bf16.msra.mxu0 %v7851_v33  ;;  %5907 = vmatpush1.bf16.msra.mxu1 %v7855_v28 }
 0xbaf   :  { %5877 = vmatprep.subr.bf16.mxu0 %v7857_v60  ;;  %5909 = vmatprep.subr.bf16.mxu1 %v7860_v40 }
 0xbb2   :  { %5879 = vmatpush1.bf16.msra.mxu0 %v7863_v31  ;;  %5911 = vmatpush1.bf16.msra.mxu1 %v7867_v3 }
 0xbb3   :  { %5913 = vmatprep.subr.bf16.mxu0 %v7776_v7  ;;  %5945 = vmatprep.subr.bf16.mxu1 %v7778_v14 }
 0xc67   :  { %v3619_v27 = vpop.f32.mrb[22].mxu0  ;;  %v3690_v37 = vpop.f32.mrb[22].mxu1 }
 0xc68   :  { %v6166_v44 = vadd.f32 %v3619_v27, %v7657_v2  ;;  %v3621_v59 = vpop.f32.mrb[23].mxu0  ;;  %v3692_v49 = vpop.f32.mrb[23].mxu1  ;;  %v6182_v42 = vadd.f32 %v3690_v37, %v7672_v34 }
 0xc69   :  { %v6167_v22 = vadd.f32 %v3621_v59, %v7661_v48  ;;  %v6183_v18 = vadd.f32 %v3692_v49, %v7667_v24  ;;  %v3731_v27 = vpop.permute.xlu1 %3730 }
 0xc6a   :  { %v4884_v1 = vmul.f32 -1.442695, %v6166_v44  ;;  %vm3732_vm8 = vcmp.eq.s32.totalorder %v3731_v27, 1 }
 0xc6b   :  { %v4885_v15 = vmul.f32 -1.442695, %v6167_v22  ;;  %v4886_v13 = vmul.f32 -1.442695, %v6183_v18 }
 0xc6c   :  { %6444 = vpow2.f32 %v4884_v1 }
 0xc6d   :  { %6446 = vpow2.f32 %v4885_v15 }
 0xc6e   :  { %6448 = vpow2.f32 %v4886_v13 }
 0xc6f   :  { %6450 = vtanh.f32 %v6182_v42 }
 0xc76   :  { %v6445_v19 = vpop.eup %6444 }
 0xc77   :  { %v6447_v54 = vpop.eup %6446  ;;  %v3702_v36 = vadd.f32 1.0, %v6445_v19 }
 0xc78   :  { %v3708_v17 = vadd.f32 1.0, %v6447_v54  ;;  %v6449_v12 = vpop.eup %6448 }
 0xc79   :  { %6452 = vrcp.f32 %v3702_v36  ;;  %v6451_v41 = vpop.eup %6450  ;;  %v3715_v58 = vadd.f32 1.0, %v6449_v12 }
 0xc7a   :  { %6454 = vrcp.f32 %v3708_v17 }
 0xc7b   :  { %6456 = vrcp.f32 %v3715_v58 }
 0xc83   :  { %v6453_v6 = vpop.eup %6452 }
 0xc84   :  { %v6455_v32 = vpop.eup %6454  ;;  %v3720_v29 = vmul.f32 %v6453_v6, %v6451_v41 }
 0xc85   :  { %v3719_v4 = vmul.f32 %v6455_v32, %v7768_v21  ;;  %v6457_v37 = vpop.eup %6456  ;;  %v4230_v21 = vsel %vm4228_vm9, 1, %v6625_v50 }
 0xc86   :  { %4232 = vperm.xlu1 %6267, %v4230_v21   ;;  %v3982_v21 = vpop.permute.xlu0 %3981 }
 0xc87   :  { %v7881_v38 = vadd.f32 %v3720_v29, %v3719_v4  ;;  %vm3983_vm10 = vcmp.eq.s32.totalorder %v3982_v21, 1 }
 0xc89   :  { %6458 = vtanh.f32 %v7881_v38 }
 0xc93   :  { %v6459_v44 = vpop.eup %6458 }
 0xc94   :  { %v3723_v59 = vmul.f32 %v6459_v44, %v6457_v37 }
 0xc96   :  { %v7885_v49 = vsel %vm3732_vm8, %v3723_v59, %v7772_v45  ;;  %3869 = vmatmul.mubr.f32.vlgmr.msra.gmra.mrb[24].mxu0 %v3723_v59  ;;  %3940 = vmatmul.mubr.f32.vlgmr.msra.gmra.mrb[24].mxu1 %v3723_v59 }
 0xc97   :  { %5915 = vmatpush1.bf16.msra.mxu0 %v7780_v20  ;;  %5947 = vmatpush1.bf16.msra.mxu1 %v7783_v47 }
 0xc98   :  { %5917 = vmatprep.subr.bf16.mxu0 %v7788_v52  ;;  %5949 = vmatprep.subr.bf16.mxu1 %v7790_v30 }
 0xc99   :  { %4119 = vmatprep.mubr.f32.mxu0 %v6624_v0  ;;  %4190 = vmatprep.mubr.f32.mxu1 %v6624_v0 }
 0xc9b   :  { %5919 = vmatpush1.bf16.msra.mxu0 %v7792_v51  ;;  %5951 = vmatpush1.bf16.msra.mxu1 %v7795_v43 }
 0xc9c   :  { %5921 = vmatprep.subr.bf16.mxu0 %v7800_v5  ;;  %5953 = vmatprep.subr.bf16.mxu1 %v7802_v25 }
 0xc9f   :  { %5923 = vmatpush1.bf16.msra.mxu0 %v7804_v23  ;;  %5955 = vmatpush1.bf16.msra.mxu1 %v7807_v10 }
 0xca0   :  { %5925 = vmatprep.subr.bf16.mxu0 %v7812_v16  ;;  %5957 = vmatprep.subr.bf16.mxu1 %v7814_v39 }
 0xca3   :  { %5927 = vmatpush1.bf16.msra.mxu0 %v7816_v62  ;;  %5959 = vmatpush1.bf16.msra.mxu1 %v7819_v11 }
 0xca4   :  { %5929 = vmatprep.subr.bf16.mxu0 %v7824_v8  ;;  %5961 = vmatprep.subr.bf16.mxu1 %v7826_v53 }
 0xca7   :  { %5931 = vmatpush1.bf16.msra.mxu0 %v7828_v55  ;;  %5963 = vmatpush1.bf16.msra.mxu1 %v7831_v35 }
 0xca8   :  { %5933 = vmatprep.subr.bf16.mxu0 %v7835_v26  ;;  %5965 = vmatprep.subr.bf16.mxu1 %v7838_v57 }
 0xcab   :  { %5935 = vmatpush1.bf16.msra.mxu0 %v7840_v56  ;;  %5967 = vmatpush1.bf16.msra.mxu1 %v7843_v9 }
 0xcac   :  { %5937 = vmatprep.subr.bf16.mxu0 %v7846_v46  ;;  %5969 = vmatprep.subr.bf16.mxu1 %v7848_v63 }
 0xcaf   :  { %5939 = vmatpush1.bf16.msra.mxu0 %v7851_v33  ;;  %5971 = vmatpush1.bf16.msra.mxu1 %v7855_v28 }
 0xcb0   :  { %5941 = vmatprep.subr.bf16.mxu0 %v7857_v60  ;;  %5973 = vmatprep.subr.bf16.mxu1 %v7860_v40 }
 0xcb3   :  { %5943 = vmatpush1.bf16.msra.mxu0 %v7863_v31  ;;  %5975 = vmatpush1.bf16.msra.mxu1 %v7867_v3 }
 0xcb4   :  { %5977 = vmatprep.subr.bf16.mxu0 %v7776_v7  ;;  %6009 = vmatprep.subr.bf16.mxu1 %v7778_v14 }
 0xd69   :  { %v3870_v45 = vpop.f32.mrb[24].mxu0  ;;  %v3941_v22 = vpop.f32.mrb[24].mxu1 }
 0xd6a   :  { %v6168_v1 = vadd.f32 %v3870_v45, %v7657_v2  ;;  %v3872_v15 = vpop.f32.mrb[25].mxu0  ;;  %v3943_v18 = vpop.f32.mrb[25].mxu1  ;;  %v6184_v61 = vadd.f32 %v3941_v22, %v7672_v34 }
 0xd6b   :  { %v6169_v13 = vadd.f32 %v3872_v15, %v7661_v48  ;;  %v6185_v54 = vadd.f32 %v3943_v18, %v7667_v24 }
 0xd6c   :  { %v4887_v42 = vmul.f32 -1.442695, %v6168_v1 }
 0xd6d   :  { %v4888_v19 = vmul.f32 -1.442695, %v6169_v13  ;;  %v4889_v36 = vmul.f32 -1.442695, %v6185_v54 }
 0xd6e   :  { %6460 = vpow2.f32 %v4887_v42 }
 0xd6f   :  { %6462 = vpow2.f32 %v4888_v19 }
 0xd70   :  { %6464 = vpow2.f32 %v4889_v36 }
 0xd71   :  { %6466 = vtanh.f32 %v6184_v61 }
 0xd78   :  { %v6461_v17 = vpop.eup %6460 }
 0xd79   :  { %v6463_v12 = vpop.eup %6462  ;;  %v3953_v41 = vadd.f32 1.0, %v6461_v17 }
 0xd7a   :  { %v3959_v6 = vadd.f32 1.0, %v6463_v12  ;;  %v6465_v32 = vpop.eup %6464 }
 0xd7b   :  { %6468 = vrcp.f32 %v3953_v41  ;;  %v6467_v29 = vpop.eup %6466  ;;  %v3966_v37 = vadd.f32 1.0, %v6465_v32 }
 0xd7c   :  { %6470 = vrcp.f32 %v3959_v6 }
 0xd7d   :  { %6472 = vrcp.f32 %v3966_v37 }
 0xd85   :  { %v6469_v58 = vpop.eup %6468 }
 0xd86   :  { %v6471_v4 = vpop.eup %6470  ;;  %v3971_v27 = vmul.f32 %v6469_v58, %v6467_v29 }
 0xd87   :  { %v3970_v44 = vmul.f32 %v6471_v4, %v7881_v38  ;;  %v6473_v45 = vpop.eup %6472  ;;  %v7971_v38 = vld [vmem:[%s8101_s0] sm:$0xff] }
 0xd88   :  { %vm4479_vm11 = vcmp.eq.s32.totalorder %v7971_v38, 6  ;;  %vm4730_vm13 = vcmp.eq.s32.totalorder %v7971_v38, 7  ;;  %v4742_v38 = vld [vmem:[%s8109_s8 + $0x10] sm:$0xff] }
 0xd89   :  { %v7928_v59 = vadd.f32 %v3971_v27, %v3970_v44 }
 0xd8b   :  { %6474 = vtanh.f32 %v7928_v59 }
 0xd95   :  { %v6475_v22 = vpop.eup %6474 }
 0xd96   :  { %v3974_v1 = vmul.f32 %v6475_v22, %v6473_v45 }
 0xd98   :  { %v7932_v15 = vsel %vm3983_vm10, %v3974_v1, %v7885_v49  ;;  %4120 = vmatmul.mubr.f32.vlgmr.msra.gmra.mrb[26].mxu0 %v3974_v1  ;;  %4191 = vmatmul.mubr.f32.vlgmr.msra.gmra.mrb[26].mxu1 %v3974_v1  ;;  %v4481_v49 = vsel %vm4479_vm11, 1, %v6625_v50  ;;  %v4233_v1 = vpop.permute.xlu1 %4232 }
 0xd99   :  { %5979 = vmatpush1.bf16.msra.mxu0 %v7780_v20  ;;  %6011 = vmatpush1.bf16.msra.mxu1 %v7783_v47  ;;  %vm4234_vm12 = vcmp.eq.s32.totalorder %v4233_v1, 1 }
 0xd9a   :  { %5981 = vmatprep.subr.bf16.mxu0 %v7788_v52  ;;  %6013 = vmatprep.subr.bf16.mxu1 %v7790_v30 }
 0xd9b   :  { %4370 = vmatprep.mubr.f32.mxu0 %v6624_v0  ;;  %4441 = vmatprep.mubr.f32.mxu1 %v6624_v0 }
 0xd9c   :  { %4483 = vperm.xlu0 %6266, %v4481_v49  }
 0xd9d   :  { %5983 = vmatpush1.bf16.msra.mxu0 %v7792_v51  ;;  %6015 = vmatpush1.bf16.msra.mxu1 %v7795_v43 }
 0xd9e   :  { %5985 = vmatprep.subr.bf16.mxu0 %v7800_v5  ;;  %6017 = vmatprep.subr.bf16.mxu1 %v7802_v25 }
 0xda1   :  { %5987 = vmatpush1.bf16.msra.mxu0 %v7804_v23  ;;  %6019 = vmatpush1.bf16.msra.mxu1 %v7807_v10 }
 0xda2   :  { %5989 = vmatprep.subr.bf16.mxu0 %v7812_v16  ;;  %6021 = vmatprep.subr.bf16.mxu1 %v7814_v39 }
 0xda5   :  { %5991 = vmatpush1.bf16.msra.mxu0 %v7816_v62  ;;  %6023 = vmatpush1.bf16.msra.mxu1 %v7819_v11 }
 0xda6   :  { %5993 = vmatprep.subr.bf16.mxu0 %v7824_v8  ;;  %6025 = vmatprep.subr.bf16.mxu1 %v7826_v53 }
 0xda9   :  { %5995 = vmatpush1.bf16.msra.mxu0 %v7828_v55  ;;  %6027 = vmatpush1.bf16.msra.mxu1 %v7831_v35 }
 0xdaa   :  { %5997 = vmatprep.subr.bf16.mxu0 %v7835_v26  ;;  %6029 = vmatprep.subr.bf16.mxu1 %v7838_v57 }
 0xdad   :  { %5999 = vmatpush1.bf16.msra.mxu0 %v7840_v56  ;;  %6031 = vmatpush1.bf16.msra.mxu1 %v7843_v9 }
 0xdae   :  { %6001 = vmatprep.subr.bf16.mxu0 %v7846_v46  ;;  %6033 = vmatprep.subr.bf16.mxu1 %v7848_v63 }
 0xdb1   :  { %6003 = vmatpush1.bf16.msra.mxu0 %v7851_v33  ;;  %6035 = vmatpush1.bf16.msra.mxu1 %v7855_v28 }
 0xdb2   :  { %6005 = vmatprep.subr.bf16.mxu0 %v7857_v60  ;;  %6037 = vmatprep.subr.bf16.mxu1 %v7860_v40 }
 0xdb5   :  { %6007 = vmatpush1.bf16.msra.mxu0 %v7863_v31  ;;  %6039 = vmatpush1.bf16.msra.mxu1 %v7867_v3 }
 0xdb6   :  { %6041 = vmatprep.subr.bf16.mxu0 %v7776_v7  ;;  %6073 = vmatprep.subr.bf16.mxu1 %v7778_v14 }
 0xe6b   :  { %v4121_v18 = vpop.f32.mrb[26].mxu0  ;;  %v4192_v13 = vpop.f32.mrb[26].mxu1 }
 0xe6c   :  { %v6170_v42 = vadd.f32 %v4121_v18, %v7657_v2  ;;  %v4123_v19 = vpop.f32.mrb[27].mxu0  ;;  %v4194_v54 = vpop.f32.mrb[27].mxu1  ;;  %v6186_v12 = vadd.f32 %v4192_v13, %v7672_v34 }
 0xe6d   :  { %v6171_v7 = vadd.f32 %v4123_v19, %v7661_v48  ;;  %v6187_v61 = vadd.f32 %v4194_v54, %v7667_v24  ;;  %v4743_v19 = vld [vmem:[%s8109_s8 + $0x18] sm:$0xff] }
 0xe6e   :  { %v4890_v36 = vmul.f32 -1.442695, %v6170_v42  ;;  %v6108_v54 = vpack.c.bf16 %v4743_v19, %v4742_v38 }
 0xe6f   :  { %v4891_v14 = vmul.f32 -1.442695, %v6171_v7  ;;  %v4892_v17 = vmul.f32 -1.442695, %v6187_v61  ;;  %v4744_v7 = vld [vmem:[%s8109_s8 + $0x20] sm:$0xff]  ;;  %v4746_v61 = vld [vmem:[%s8109_s8 + $0x30] sm:$0xff] }
 0xe70   :  { %6476 = vpow2.f32 %v4890_v36  ;;  %v4745_v36 = vld [vmem:[%s8109_s8 + $0x28] sm:$0xff] }
 0xe71   :  { %6478 = vpow2.f32 %v4891_v14  ;;  %v6111_v14 = vpack.c.bf16 %v4745_v36, %v4744_v7 }
 0xe72   :  { %6480 = vpow2.f32 %v4892_v17  ;;  %v4747_v17 = vld [vmem:[%s8109_s8 + $0x38] sm:$0xff] }
 0xe73   :  { %6482 = vtanh.f32 %v6186_v12  ;;  %v6114_v12 = vpack.c.bf16 %v4747_v17, %v4746_v61 }
 0xe7a   :  { %v6477_v41 = vpop.eup %6476 }
 0xe7b   :  { %v6479_v6 = vpop.eup %6478  ;;  %v4204_v32 = vadd.f32 1.0, %v6477_v41  ;;  %v4748_v41 = vld [vmem:[%s8109_s8 + $0x40] sm:$0xff] }
 0xe7c   :  { %v4210_v29 = vadd.f32 1.0, %v6479_v6  ;;  %v6481_v58 = vpop.eup %6480  ;;  %v4749_v6 = vld [vmem:[%s8109_s8 + $0x48] sm:$0xff] }
 0xe7d   :  { %6484 = vrcp.f32 %v4204_v32  ;;  %v6483_v4 = vpop.eup %6482  ;;  %v4217_v21 = vadd.f32 1.0, %v6481_v58  ;;  %v6117_v32 = vpack.c.bf16 %v4749_v6, %v4748_v41  ;;  %v4751_v58 = vld [vmem:[%s8109_s8 + $0x58] sm:$0xff] }
 0xe7e   :  { %6486 = vrcp.f32 %v4210_v29  ;;  %v4750_v29 = vld [vmem:[%s8109_s8 + $0x50] sm:$0xff] }
 0xe7f   :  { %6488 = vrcp.f32 %v4217_v21  ;;  %v4754_v21 = vld [vmem:[%s8109_s8 + $0x70] sm:$0xff] }
 0xe87   :  { %v6485_v27 = vpop.eup %6484 }
 0xe88   :  { %v6487_v37 = vpop.eup %6486  ;;  %v4222_v44 = vmul.f32 %v6485_v27, %v6483_v4  ;;  %v6120_v4 = vpack.c.bf16 %v4751_v58, %v4750_v29  ;;  %v4752_v27 = vld [vmem:[%s8109_s8 + $0x60] sm:$0xff] }
 0xe89   :  { %v4221_v45 = vmul.f32 %v6487_v37, %v7928_v59  ;;  %v6489_v49 = vpop.eup %6488  ;;  %v4753_v37 = vld [vmem:[%s8109_s8 + $0x68] sm:$0xff] }
 0xe8b   :  { %v7980_v22 = vadd.f32 %v4222_v44, %v4221_v45  ;;  %v6123_v44 = vpack.c.bf16 %v4753_v37, %v4752_v27  ;;  %v4755_v45 = vld [vmem:[%s8109_s8 + $0x78] sm:$0xff] }
 0xe8d   :  { %6490 = vtanh.f32 %v7980_v22 }
 0xe97   :  { %v6491_v18 = vpop.eup %6490 }
 0xe98   :  { %v4225_v13 = vmul.f32 %v6491_v18, %v6489_v49 }
 0xe9a   :  { %v7984_v42 = vsel %vm4234_vm12, %v4225_v13, %v7932_v15  ;;  %4371 = vmatmul.mubr.f32.vlgmr.msra.gmra.mrb[28].mxu0 %v4225_v13  ;;  %4442 = vmatmul.mubr.f32.vlgmr.msra.gmra.mrb[28].mxu1 %v4225_v13  ;;  %v6626_v15 = vmov 0.0|0.0  }
 0xe9b   :  { %6043 = vmatpush1.bf16.msra.mxu0 %v7780_v20  ;;  %6075 = vmatpush1.bf16.msra.mxu1 %v7783_v47  ;;  %v4732_v20 = vsel %vm4730_vm13, 1, %v6625_v50 }
 0xe9c   :  { %6045 = vmatprep.subr.bf16.mxu0 %v7788_v52  ;;  %6077 = vmatprep.subr.bf16.mxu1 %v7790_v30 }
 0xe9d   :  { %4621 = vmatprep.mubr.f32.mxu0 %v6624_v0  ;;  %4692 = vmatprep.mubr.f32.mxu1 %v6624_v0 }
 0xe9e   :  { %4734 = vperm.xlu1 %6267, %v4732_v20  }
 0xe9f   :  { %6047 = vmatpush1.bf16.msra.mxu0 %v7792_v51  ;;  %6079 = vmatpush1.bf16.msra.mxu1 %v7795_v43 }
 0xea0   :  { %6049 = vmatprep.subr.bf16.mxu0 %v7800_v5  ;;  %6081 = vmatprep.subr.bf16.mxu1 %v7802_v25 }
 0xea3   :  { %6051 = vmatpush1.bf16.msra.mxu0 %v7804_v23  ;;  %6083 = vmatpush1.bf16.msra.mxu1 %v7807_v10 }
 0xea4   :  { %6053 = vmatprep.subr.bf16.mxu0 %v7812_v16  ;;  %6085 = vmatprep.subr.bf16.mxu1 %v7814_v39 }
 0xea7   :  { %6055 = vmatpush1.bf16.msra.mxu0 %v7816_v62  ;;  %6087 = vmatpush1.bf16.msra.mxu1 %v7819_v11 }
 0xea8   :  { %6057 = vmatprep.subr.bf16.mxu0 %v7824_v8  ;;  %6089 = vmatprep.subr.bf16.mxu1 %v7826_v53 }
 0xeab   :  { %6059 = vmatpush1.bf16.msra.mxu0 %v7828_v55  ;;  %6091 = vmatpush1.bf16.msra.mxu1 %v7831_v35 }
 0xeac   :  { %6061 = vmatprep.subr.bf16.mxu0 %v7835_v26  ;;  %6093 = vmatprep.subr.bf16.mxu1 %v7838_v57 }
 0xeaf   :  { %6063 = vmatpush1.bf16.msra.mxu0 %v7840_v56  ;;  %6095 = vmatpush1.bf16.msra.mxu1 %v7843_v9 }
 0xeb0   :  { %6065 = vmatprep.subr.bf16.mxu0 %v7846_v46  ;;  %6097 = vmatprep.subr.bf16.mxu1 %v7848_v63  ;;  %v4484_v63 = vpop.permute.xlu0 %4483 }
 0xeb1   :  { %vm4485_vm14 = vcmp.eq.s32.totalorder %v4484_v63, 1 }
 0xeb3   :  { %6067 = vmatpush1.bf16.msra.mxu0 %v7851_v33  ;;  %6099 = vmatpush1.bf16.msra.mxu1 %v7855_v28 }
 0xeb4   :  { %6069 = vmatprep.subr.bf16.mxu0 %v7857_v60  ;;  %6101 = vmatprep.subr.bf16.mxu1 %v7860_v40 }
 0xeb7   :  { %6071 = vmatpush1.bf16.msra.mxu0 %v7863_v31  ;;  %6103 = vmatpush1.bf16.msra.mxu1 %v7867_v3  ;;  %v4740_v31 = vld [vmem:[%s8109_s8] sm:$0xff]  ;;  %v4741_v3 = vld [vmem:[%s8109_s8 + $0x8] sm:$0xff] }
 0xeb8   :  { %v6105_v59 = vpack.c.bf16 %v4741_v3, %v4740_v31  ;;  %6104 = vmatprep.subr.bf16.mxu0 %v6626_v15 }
 0xf6d   :  { %v4372_v47 = vpop.f32.mrb[28].mxu0  ;;  %v4443_v52 = vpop.f32.mrb[28].mxu1 }
 0xf6e   :  { %v6172_v30 = vadd.f32 %v4372_v47, %v7657_v2  ;;  %v4374_v51 = vpop.f32.mrb[29].mxu0  ;;  %v4445_v43 = vpop.f32.mrb[29].mxu1  ;;  %v6188_v39 = vadd.f32 %v4443_v52, %v7672_v34 }
 0xf6f   :  { %v6173_v5 = vadd.f32 %v4374_v51, %v7661_v48  ;;  %v6189_v10 = vadd.f32 %v4445_v43, %v7667_v24 }
 0xf70   :  { %v4893_v25 = vmul.f32 -1.442695, %v6172_v30 }
 0xf71   :  { %v4894_v23 = vmul.f32 -1.442695, %v6173_v5  ;;  %v4895_v16 = vmul.f32 -1.442695, %v6189_v10 }
 0xf72   :  { %6492 = vpow2.f32 %v4893_v25 }
 0xf73   :  { %6494 = vpow2.f32 %v4894_v23 }
 0xf74   :  { %6496 = vpow2.f32 %v4895_v16 }
 0xf75   :  { %6498 = vtanh.f32 %v6188_v39 }
 0xf7c   :  { %v6493_v62 = vpop.eup %6492 }
 0xf7d   :  { %v6495_v50 = vpop.eup %6494  ;;  %v4455_v11 = vadd.f32 1.0, %v6493_v62 }
 0xf7e   :  { %v4461_v8 = vadd.f32 1.0, %v6495_v50  ;;  %v6497_v53 = vpop.eup %6496 }
 0xf7f   :  { %6500 = vrcp.f32 %v4455_v11  ;;  %v6499_v55 = vpop.eup %6498  ;;  %v4468_v56 = vadd.f32 1.0, %v6497_v53  ;;  %v4735_v11 = vpop.permute.xlu1 %4734 }
 0xf80   :  { %6502 = vrcp.f32 %v4461_v8  ;;  %vm4736_vm0 = vcmp.eq.s32.totalorder %v4735_v11, 1 }
 0xf81   :  { %6504 = vrcp.f32 %v4468_v56 }
 0xf89   :  { %v6501_v35 = vpop.eup %6500 }
 0xf8a   :  { %v6503_v26 = vpop.eup %6502  ;;  %v4473_v57 = vmul.f32 %v6501_v35, %v6499_v55  ;;  %v4899_v35 = vld [vmem:[%s8110_s9] ss:$0 sm:$0xff] }
 0xf8b   :  { %v4472_v9 = vmul.f32 %v6503_v26, %v7980_v22  ;;  %v6505_v33 = vpop.eup %6504  ;;  %v6126_v22 = vpack.c.bf16 %v4755_v45, %v4754_v21 }
 0xf8d   :  { %v8025_v46 = vadd.f32 %v4473_v57, %v4472_v9 }
 0xf8f   :  { %6506 = vtanh.f32 %v8025_v46 }
 0xf99   :  { %v6507_v28 = vpop.eup %6506 }
 0xf9a   :  { %v4476_v60 = vmul.f32 %v6507_v28, %v6505_v33 }
 0xf9c   :  { %v8029_v40 = vsel %vm4485_vm14, %v4476_v60, %v7984_v42  ;;  %4622 = vmatmul.mubr.f32.vlgmr.msra.gmra.mrb[30].mxu0 %v4476_v60  ;;  %4693 = vmatmul.mubr.f32.vlgmr.msra.gmra.mrb[30].mxu1 %v4476_v60 }
 0xf9d   :  { %6106 = vmatpush3.bf16.msra.mxu0 %v6105_v59  ;;  %4949 = vmatprep.mubr.msk.f32.mxu0 %vm6627_vm15, %v6624_v0 }
 0xf9e   :  { %6107 = vmatprep.subr.bf16.mxu0 %v6626_v15 }
 0xfa1   :  { %6109 = vmatpush3.bf16.msra.mxu0 %v6108_v54 }
 0xfa2   :  { %6110 = vmatprep.subr.bf16.mxu0 %v6626_v15 }
 0xfa5   :  { %6112 = vmatpush3.bf16.msra.mxu0 %v6111_v14 }
 0xfa6   :  { %6113 = vmatprep.subr.bf16.mxu0 %v6626_v15 }
 0xfa9   :  { %6115 = vmatpush3.bf16.msra.mxu0 %v6114_v12 }
 0xfaa   :  { %6116 = vmatprep.subr.bf16.mxu0 %v6626_v15 }
 0xfad   :  { %6118 = vmatpush3.bf16.msra.mxu0 %v6117_v32 }
 0xfae   :  { %6119 = vmatprep.subr.bf16.mxu0 %v6626_v15 }
 0xfb1   :  { %6121 = vmatpush3.bf16.msra.mxu0 %v6120_v4 }
 0xfb2   :  { %6122 = vmatprep.subr.bf16.mxu0 %v6626_v15 }
 0xfb5   :  { %6124 = vmatpush3.bf16.msra.mxu0 %v6123_v44 }
 0xfb6   :  { %6125 = vmatprep.subr.bf16.mxu0 %v6626_v15 }
 0xfb9   :  { %6127 = vmatpush3.bf16.msra.mxu0 %v6126_v22 }
0x106f   :  { %v4623_v1 = vpop.f32.mrb[30].mxu0  ;;  %v4694_v49 = vpop.f32.mrb[30].mxu1 }
0x1070   :  { %v6174_v18 = vadd.f32 %v4623_v1, %v7657_v2  ;;  %v4625_v13 = vpop.f32.mrb[31].mxu0  ;;  %v4696_v42 = vpop.f32.mrb[31].mxu1  ;;  %v6190_v43 = vadd.f32 %v4694_v49, %v7672_v34 }
0x1071   :  { %v6175_v20 = vadd.f32 %v4625_v13, %v7661_v48  ;;  %v6191_v30 = vadd.f32 %v4696_v42, %v7667_v24 }
0x1072   :  { %v4896_v47 = vmul.f32 -1.442695, %v6174_v18 }
0x1073   :  { %v4897_v52 = vmul.f32 -1.442695, %v6175_v20  ;;  %v4898_v51 = vmul.f32 -1.442695, %v6191_v30 }
0x1074   :  { %6508 = vpow2.f32 %v4896_v47 }
0x1075   :  { %6510 = vpow2.f32 %v4897_v52 }
0x1076   :  { %6512 = vpow2.f32 %v4898_v51 }
0x1077   :  { %6514 = vtanh.f32 %v6190_v43 }
0x107e   :  { %v6509_v5 = vpop.eup %6508 }
0x107f   :  { %v6511_v25 = vpop.eup %6510  ;;  %v4706_v0 = vadd.f32 1.0, %v6509_v5 }
0x1080   :  { %v4712_v23 = vadd.f32 1.0, %v6511_v25  ;;  %v6513_v2 = vpop.eup %6512 }
0x1081   :  { %6516 = vrcp.f32 %v4706_v0  ;;  %v6515_v10 = vpop.eup %6514  ;;  %v4719_v62 = vadd.f32 1.0, %v6513_v2 }
0x1082   :  { %6518 = vrcp.f32 %v4712_v23 }
0x1083   :  { %6520 = vrcp.f32 %v4719_v62 }
0x108b   :  { %v6517_v48 = vpop.eup %6516 }
0x108c   :  { %v6519_v16 = vpop.eup %6518  ;;  %v4724_v39 = vmul.f32 %v6517_v48, %v6515_v10 }
0x108d   :  { %v4723_v50 = vmul.f32 %v6519_v16, %v8025_v46  ;;  %v6521_v34 = vpop.eup %6520 }
0x108f   :  { %v4725_v24 = vadd.f32 %v4724_v39, %v4723_v50 }
0x1091   :  { %6522 = vtanh.f32 %v4725_v24 }
0x109b   :  { %v6523_v8 = vpop.eup %6522 }
0x109c   :  { %v4727_v53 = vmul.f32 %v6523_v8, %v6521_v34 }
0x109e   :  { %v4737_v55 = vsel %vm4736_vm0, %v4727_v53, %v8029_v40 }
0x109f   :  { %4950 = vmatmul.mubr.f32.vlgmr.msra.gmra.mrb[32].mxu0 %v4737_v55 }
0x1172   :  { %v4829_v26 = vpop.f32.mrb[32].mxu0 }
0x1173   :  { %v4830_v57 = vadd.f32 %v4899_v35, %v4829_v26  ;;  %v4951_v56 = vpop.f32.mrb[33].mxu0 }
0x1175   :  { %4834 = vst.msk [vmem:[#allocation13] sm:$0xff] %vm4833_vm1, %v4830_v57 }
0x1176   :  { %6602 = shalt.err (!%p6599_p0)
}
0x1177   :  { %s6603_s28 = scalar_lea.hbm %s8111_s10, 128 }
0x1178   :  { %p6604_p1 = scmp.ne.s32.totalorder %s8111_s10, %s6603_s28  ;;  %p6607_p2 = scmp.lt.u32.totalorder %s6603_s28, %s8111_s10 }
0x117a   :  { %p6609_p3 = pnand %p6607_p2, %p6604_p1 }
0x117c   :  { %6612 = shalt.err (!%p6609_p3)
}
0x117d   :  { %4844 = dma.vmem_to_hbm [thread:$0]  %s4842_s22, 128, %s8111_s10, [#allocation9]  }
0x117e   :  { %6617 = dma.done.wait [#allocation9], 128  }
0x117f   :  { %6618 = vsyncadd [#allocation9], 4294967168 }
0x1180   :  { %4848 = vsyncpa [#allocation8], 1 }
0x1181   :  { %4849 = vsyncpa [#allocation11], 1 }
0x1182   :  { %4850 = vsyncpa [#allocation9], 1 }

</bundles_post_ra>
